<compile_context>
chip_gen: v7x
topology: tpu7x:2x2x1
jax: 0.10.0
libtpu: 0.0.40
codegen_flags: <defaults>
</compile_context>

<pallas_src>
import functools

import jax
import jax.numpy as jnp
from jax.experimental import pallas as pl
from jax.experimental.pallas import tpu as pltpu

_HIDDEN_DIMS = [2048, 1024, 512, 256, 128, 64]


# ----------------------------------------------------------------------------
# Fused MLP kernel: all layers in one pallas_call, everything VMEM-resident
# ----------------------------------------------------------------------------
def _fused_mlp_kernel(*refs, num_hidden):
    """refs = (x, [wq_i, scale_i, b_i] * num_hidden, w_last_row, b_last, out)."""
    x_ref = refs[0]
    o_ref = refs[-1]

    h = x_ref[...]                                   # bf16 activations (M, K0)
    idx = 1
    for _ in range(num_hidden):
        wq_ref, s_ref, b_ref = refs[idx], refs[idx + 1], refs[idx + 2]
        idx += 3
        # int8 is only an HBM storage format: dequantize in VMEM.  int8
        # values are exactly representable in bf16; the per-output-channel
        # scale is folded into the f32 epilogue below, so the MXU sees bf16.
        w = wq_ref[...].astype(jnp.float32).astype(jnp.bfloat16)
        z = jnp.dot(h, w, preferred_element_type=jnp.float32)   # MXU, f32 acc
        z = z * s_ref[...] + b_ref[...]                          # scale + bias
        h = jnp.maximum(z, 0.0).astype(jnp.bfloat16)             # ReLU (Dropout=id, eval)

    # Final Linear(hidden, 1): unpadded (1, hidden) weight row ->
    # VPU multiply + XLU lane reduce, single output column.
    wl_ref, bl_ref = refs[idx], refs[idx + 1]
    z = jnp.sum(h.astype(jnp.float32) * wl_ref[...].astype(jnp.float32),
                axis=-1, keepdims=True) + bl_ref[...]
    o_ref[...] = jax.nn.sigmoid(z)                               # EUP


def fused_mlp_forward(x, kernel_params):
    """x: (batch, input_dim) f32.

    kernel_params: [(w_int8, scale_f32, b_f32), ..., (w_last_row_bf16, b_last_f32)].
    Returns (batch, 1) f32 probabilities.
    """
    num_hidden = len(kernel_params) - 1
    M = x.shape[0]

    flat = [x.astype(jnp.bfloat16)]
    flops = 0
    bytes_accessed = M * x.shape[1] * 2 + M * 4
    max_w_elems = 1
    for wq, s, b in kernel_params[:-1]:
        flat.extend((wq, s, b))
        flops += 2 * M * wq.shape[0] * wq.shape[1]
        max_w_elems = max(max_w_elems, int(wq.size))
        bytes_accessed += int(wq.size) + int(s.size) * 4 + int(b.size) * 4
    w_last, b_last = kernel_params[-1]
    flat.extend((w_last, b_last))
    flops += 2 * M * w_last.shape[1]
    bytes_accessed += int(w_last.size) * 2 + int(b_last.size) * 4

    # VMEM budget derived from the real footprint: resident params (x2 slack),
    # the dequantized f32/bf16 weight temporaries of the largest layer, the
    # activations, plus fixed slack.  Capped well under v7x's 64 MiB VMEM.
    param_bytes = sum(int(a.size) * a.dtype.itemsize for a in flat)
    vmem_limit = int(2 * param_bytes + 6 * max_w_elems + 4 * M * 4096 + (8 << 20))
    vmem_limit = min(vmem_limit, 56 << 20)

    kernel = functools.partial(_fused_mlp_kernel, num_hidden=num_hidden)
    vmem_spec = pl.BlockSpec(memory_space=pltpu.MemorySpace.VMEM)

    return pl.pallas_call(
        kernel,
        out_shape=jax.ShapeDtypeStruct((M, 1), jnp.float32),
        in_specs=[vmem_spec] * len(flat),
        out_specs=vmem_spec,
        compiler_params=pltpu.CompilerParams(vmem_limit_bytes=vmem_limit),
        cost_estimate=pl.CostEstimate(
            flops=flops, transcendentals=M, bytes_accessed=bytes_accessed),
    )(*flat)


# ----------------------------------------------------------------------------
# Parameters
# ----------------------------------------------------------------------------
def init_params(key, input_dim, num_fc_layers):
    """Deterministic init mimicking nn.Linear's U(-1/sqrt(fan_in), +). f32."""
    num_layers = min(num_fc_layers, len(_HIDDEN_DIMS) + 1)
    dims = [input_dim] + _HIDDEN_DIMS[: num_layers - 1] + [1]

    params = []
    for i in range(len(dims) - 1):
        fan_in, fan_out = dims[i], dims[i + 1]
        key, kw, kb = jax.random.split(key, 3)
        bound = 1.0 / float(fan_in) ** 0.5
        w = jax.random.uniform(
            kw, (fan_in, fan_out), jnp.float32, minval=-bound, maxval=bound)
        b = jax.random.uniform(
            kb, (1, fan_out), jnp.float32, minval=-bound, maxval=bound)
        params.append((w, b))
    return params


def prepare_kernel_params(params):
    """Hidden layers: int8 weights + per-output-channel f32 scales + f32 bias.
    Final layer: unpadded (1, hidden) bf16 weight row + (1, 1) f32 bias."""
    prepared = []
    n = len(params)
    for i, (w, b) in enumerate(params):
        if i < n - 1:
            scale = jnp.maximum(
                jnp.max(jnp.abs(w), axis=0, keepdims=True), 1e-12) / 127.0
            wq = jnp.clip(jnp.round(w / scale), -127.0, 127.0).astype(jnp.int8)
            prepared.append((wq, scale.astype(jnp.float32), b.astype(jnp.float32)))
        else:
            prepared.append((w.T.astype(jnp.bfloat16),      # (1, hidden)
                             b.astype(jnp.float32)))        # (1, 1)
    return prepared


# ----------------------------------------------------------------------------
# Pure-JAX reference emulating the kernel's numerics
# (int8 dequant, bf16 MXU inputs, f32 accumulate / epilogues)
# ----------------------------------------------------------------------------
def reference_forward(x, kernel_params):
    h = x.astype(jnp.bfloat16)
    for wq, s, b in kernel_params[:-1]:
        w = wq.astype(jnp.float32).astype(jnp.bfloat16)
        z = jnp.dot(h, w, preferred_element_type=jnp.float32,
                    precision=jax.lax.Precision.HIGHEST)
        z = z * s + b
        h = jnp.maximum(z, 0.0).astype(jnp.bfloat16)
    w_last, b_last = kernel_params[-1]
    z = jnp.sum(h.astype(jnp.float32) * w_last.astype(jnp.float32),
                axis=-1, keepdims=True) + b_last
    return jax.nn.sigmoid(z)


# ----------------------------------------------------------------------------
# Main
# ----------------------------------------------------------------------------
if __name__ == "__main__":
    key = jax.random.PRNGKey(0)
    k_param, k_x = jax.random.split(key)

    batch = 8          # small tile-embedding batch; sublane-aligned
    input_dim = 384    # ViT-style embedding dim, multiple of 128
    num_fc_layers = 3  # Linear(384,2048)+ReLU, Linear(2048,1024)+ReLU, Linear(1024,1)

    params = init_params(k_param, input_dim, num_fc_layers)
    kparams = prepare_kernel_params(params)
    x = jax.random.normal(k_x, (batch, input_dim), jnp.float32)

    y = jax.block_until_ready(fused_mlp_forward(x, kparams))
    y_ref = reference_forward(x, kparams)

    assert y.shape == (batch, 1)
    assert bool(jnp.all((y > 0.0) & (y < 1.0)))
    assert jnp.allclose(y, y_ref, atol=1e-3, rtol=1e-3), float(
        jnp.max(jnp.abs(y - y_ref)))

    print("KERNEL_OK")
</pallas_src>

<mosaic_0001>
module attributes {stable_mosaic.version = 11 : i64} {
  func.func @_fused_mlp_kernel(%arg0: memref<8x384xbf16, #tpu.memory_space<vmem>>, %arg1: memref<384x2048xi8, #tpu.memory_space<vmem>>, %arg2: memref<1x2048xf32, #tpu.memory_space<vmem>>, %arg3: memref<1x2048xf32, #tpu.memory_space<vmem>>, %arg4: memref<2048x1024xi8, #tpu.memory_space<vmem>>, %arg5: memref<1x1024xf32, #tpu.memory_space<vmem>>, %arg6: memref<1x1024xf32, #tpu.memory_space<vmem>>, %arg7: memref<1x1024xbf16, #tpu.memory_space<vmem>>, %arg8: memref<1x1xf32, #tpu.memory_space<vmem>>, %arg9: memref<8x1xf32, #tpu.memory_space<vmem>>) attributes {dimension_semantics = [], scalar_prefetch = 0 : i64, scratch_operands = 0 : i64, tpu.core_type = #tpu.core_type<tc>} {
    %c0 = arith.constant 0 : index
    %c0_0 = arith.constant 0 : index
    %0 = vector.load %arg0[%c0, %c0_0] : memref<8x384xbf16, #tpu.memory_space<vmem>>, vector<8x384xbf16>
    %c0_1 = arith.constant 0 : index
    %c0_2 = arith.constant 0 : index
    %1 = vector.load %arg1[%c0_1, %c0_2] : memref<384x2048xi8, #tpu.memory_space<vmem>>, vector<384x2048xi8>
    %2 = arith.sitofp %1 : vector<384x2048xi8> to vector<384x2048xf32>
    %3 = arith.truncf %2 : vector<384x2048xf32> to vector<384x2048xbf16>
    %cst = arith.constant dense<0.000000e+00> : vector<8x2048xf32>
    %4 = tpu.matmul %0, %3, %cst {dimension_numbers = #tpu.dot_dimension_numbers<[1], [0], [0], [1], [0, 0, 1, 1], [], []>} : vector<8x384xbf16>, vector<384x2048xbf16>, vector<8x2048xf32> -> vector<8x2048xf32>
    %c0_3 = arith.constant 0 : index
    %c0_4 = arith.constant 0 : index
    %5 = vector.load %arg2[%c0_3, %c0_4] : memref<1x2048xf32, #tpu.memory_space<vmem>>, vector<1x2048xf32>
    %6 = vector.broadcast %5 : vector<1x2048xf32> to vector<8x2048xf32>
    %7 = arith.mulf %4, %6 : vector<8x2048xf32>
    %c0_5 = arith.constant 0 : index
    %c0_6 = arith.constant 0 : index
    %8 = vector.load %arg3[%c0_5, %c0_6] : memref<1x2048xf32, #tpu.memory_space<vmem>>, vector<1x2048xf32>
    %9 = vector.broadcast %8 : vector<1x2048xf32> to vector<8x2048xf32>
    %10 = arith.addf %7, %9 : vector<8x2048xf32>
    %cst_7 = arith.constant 0.000000e+00 : f32
    %11 = vector.broadcast %cst_7 : f32 to vector<8x2048xf32>
    %12 = arith.maximumf %10, %11 : vector<8x2048xf32>
    %13 = arith.truncf %12 : vector<8x2048xf32> to vector<8x2048xbf16>
    %c0_8 = arith.constant 0 : index
    %c0_9 = arith.constant 0 : index
    %14 = vector.load %arg4[%c0_8, %c0_9] : memref<2048x1024xi8, #tpu.memory_space<vmem>>, vector<2048x1024xi8>
    %15 = arith.sitofp %14 : vector<2048x1024xi8> to vector<2048x1024xf32>
    %16 = arith.truncf %15 : vector<2048x1024xf32> to vector<2048x1024xbf16>
    %cst_10 = arith.constant dense<0.000000e+00> : vector<8x1024xf32>
    %17 = tpu.matmul %13, %16, %cst_10 {dimension_numbers = #tpu.dot_dimension_numbers<[1], [0], [0], [1], [0, 0, 1, 1], [], []>} : vector<8x2048xbf16>, vector<2048x1024xbf16>, vector<8x1024xf32> -> vector<8x1024xf32>
    %c0_11 = arith.constant 0 : index
    %c0_12 = arith.constant 0 : index
    %18 = vector.load %arg5[%c0_11, %c0_12] : memref<1x1024xf32, #tpu.memory_space<vmem>>, vector<1x1024xf32>
    %19 = vector.broadcast %18 : vector<1x1024xf32> to vector<8x1024xf32>
    %20 = arith.mulf %17, %19 : vector<8x1024xf32>
    %c0_13 = arith.constant 0 : index
    %c0_14 = arith.constant 0 : index
    %21 = vector.load %arg6[%c0_13, %c0_14] : memref<1x1024xf32, #tpu.memory_space<vmem>>, vector<1x1024xf32>
    %22 = vector.broadcast %21 : vector<1x1024xf32> to vector<8x1024xf32>
    %23 = arith.addf %20, %22 : vector<8x1024xf32>
    %cst_15 = arith.constant 0.000000e+00 : f32
    %24 = vector.broadcast %cst_15 : f32 to vector<8x1024xf32>
    %25 = arith.maximumf %23, %24 : vector<8x1024xf32>
    %26 = arith.truncf %25 : vector<8x1024xf32> to vector<8x1024xbf16>
    %27 = arith.extf %26 : vector<8x1024xbf16> to vector<8x1024xf32>
    %c0_16 = arith.constant 0 : index
    %c0_17 = arith.constant 0 : index
    %28 = vector.load %arg7[%c0_16, %c0_17] : memref<1x1024xbf16, #tpu.memory_space<vmem>>, vector<1x1024xbf16>
    %29 = arith.extf %28 : vector<1x1024xbf16> to vector<1x1024xf32>
    %30 = vector.broadcast %29 : vector<1x1024xf32> to vector<8x1024xf32>
    %31 = arith.mulf %27, %30 : vector<8x1024xf32>
    %cst_18 = arith.constant dense<0.000000e+00> : vector<8xf32>
    %32 = vector.multi_reduction <add>, %31, %cst_18 [1] : vector<8x1024xf32> to vector<8xf32>
    %33 = vector.shape_cast %32 : vector<8xf32> to vector<8x1xf32>
    %c0_19 = arith.constant 0 : index
    %c0_20 = arith.constant 0 : index
    %34 = vector.load %arg8[%c0_19, %c0_20] : memref<1x1xf32, #tpu.memory_space<vmem>>, vector<1x1xf32>
    %35 = vector.broadcast %34 : vector<1x1xf32> to vector<8x1xf32>
    %36 = arith.addf %33, %35 : vector<8x1xf32>
    %37 = arith.negf %36 : vector<8x1xf32>
    %38 = math.exp %37 : vector<8x1xf32>
    %cst_21 = arith.constant 1.000000e+00 : f32
    %39 = vector.broadcast %cst_21 : f32 to vector<8x1xf32>
    %40 = arith.addf %39, %38 : vector<8x1xf32>
    %41 = arith.divf %39, %40 : vector<8x1xf32>
    %c0_22 = arith.constant 0 : index
    %c0_23 = arith.constant 0 : index
    %42 = vector.load %arg9[%c0_22, %c0_23] : memref<8x1xf32, #tpu.memory_space<vmem>>, vector<8x1xf32>
    tpu.vector_store %arg9[%c0_22, %c0_23], %41 {strides = array<i32>} : memref<8x1xf32, #tpu.memory_space<vmem>>, vector<8x1xf32>,
    return
  }
}

</mosaic_0001>

<bundles_post_ra>
// kernel: tpu_custom_call.1
= control target key start
LH: loop header
LB: loop body
LE: loop exit
PB: predicated region body
PF: predicated region fallthrough
CT: control target
= control target key end

     0   :  { %s5569_s0 = inlined_call_operand.hbm [shape: bf16[8,384], index: 0, kind: input, shape index: {}]   ;;  %s5570_s1 = inlined_call_operand.hbm [shape: s8[384,2048], index: 1, kind: input, shape index: {}]   ;;  %s5571_s2 = inlined_call_operand.hbm [shape: f32[1,2048], index: 2, kind: input, shape index: {}]   ;;  %s5572_s3 = inlined_call_operand.hbm [shape: f32[1,2048], index: 3, kind: input, shape index: {}]   ;;  %s5573_s4 = inlined_call_operand.hbm [shape: s8[2048,1024], index: 4, kind: input, shape index: {}]   ;;  %s5574_s5 = inlined_call_operand.hbm [shape: f32[1,1024], index: 5, kind: input, shape index: {}]   ;;  %s5575_s6 = inlined_call_operand.hbm [shape: f32[1,1024], index: 6, kind: input, shape index: {}]   ;;  %s5576_s7 = inlined_call_operand.hbm [shape: bf16[1,1024], index: 7, kind: input, shape index: {}]   ;;  %s5577_s8 = inlined_call_operand.<no memory space> [shape: f32[1,1], index: 8, kind: input, shape index: {}]   ;;  %s5578_s9 = inlined_call_operand.vmem [shape: f32[8,1], index: 9, kind: output, shape index: {}]  }
   0x1   :  { %v14_v0 = vstv %s5577_s8 }
   0x2   :  { %15 = vst [vmem:[#allocation2] sm:$0x1] %v14_v0 }
   0x3   :  { %16 = vsyncpa [#allocation4], 0 }
   0x4   :  { %17 = vsyncpa [#allocation6], 0 }
   0x5   :  { %18 = vsyncpa [#allocation9], 0 }
   0x6   :  { %19 = vsyncpa [#allocation12], 0 }
   0x7   :  { %20 = vsyncpa [#allocation15], 0  ;;  %s5063_s11 = smov [#allocation5]   ;;  %s4877_s15 = scalar_lea.hbm %s5570_s1, 24576 }
   0x8   :  { %s36_s12 = sshll.u32 %s5063_s11, 4  ;;  %p4878_p0 = scmp.ne.s32.totalorder %s5570_s1, %s4877_s15  ;;  %s37_s12 = int_to_ptr.vmem [resolvable:$true] %s36_s12 }
   0x9   :  { %p4881_p1 = scmp.lt.u32.totalorder %s4877_s15, %s5570_s1 }
   0xb   :  { %p4883_p2 = pnand %p4881_p1, %p4878_p0 }
   0xd   :  { %4886 = shalt.err (!%p4883_p2)
}
   0xe   :  { %s4887_s8 = scalar_lea.vmem %s37_s12, 24576  ;;  %p4892_p4 = scmp.lt.s32.totalorder %s37_s12, %s37_s12 }
   0xf   :  { %p4888_p3 = scmp.ne.s32.totalorder %s37_s12, %s4887_s8  ;;  %p4893_p5 = scmp.lt.s32.totalorder %s4887_s8, %s4887_s8 }
  0x11   :  { %p4894_p6 = por %p4893_p5, %p4892_p4 }
  0x13   :  { %p4895_p7 = pnand %p4894_p6, %p4888_p3 }
  0x15   :  { %4898 = shalt.err (!%p4895_p7)
}
  0x16   :  { %s5064_s20 = smov 2048   ;;  %s5065_s21 = smov 128  }
  0x17   :  { %42 = dma.hbm_to_vmem [thread:$0]  %s5570_s1, 24576, %s37_s12, [#allocation6], %s5064_s20, %s5064_s20, %s5065_s21  }
  0x18   :  { %s5066_s24 = smov [#allocation8]   ;;  %s5067_s26 = smov [#allocation11]  }
  0x19   :  { %s59_s25 = sshll.u32 %s5066_s24, 4  ;;  %s81_s27 = sshll.u32 %s5067_s26, 4  ;;  %s60_s25 = int_to_ptr.vmem [resolvable:$true] %s59_s25  ;;  %s82_s27 = int_to_ptr.vmem [resolvable:$true] %s81_s27 }
  0x1a   :  { %s4899_s30 = scalar_lea.hbm %s5572_s3, 256 }
  0x1b   :  { %p4900_p8 = scmp.ne.s32.totalorder %s5572_s3, %s4899_s30  ;;  %p4903_p9 = scmp.lt.u32.totalorder %s4899_s30, %s5572_s3 }
  0x1d   :  { %p4905_p10 = pnand %p4903_p9, %p4900_p8 }
  0x1f   :  { %4908 = shalt.err (!%p4905_p10)
}
  0x20   :  { %s4909_s1 = scalar_lea.vmem %s60_s25, 256  ;;  %p4914_p12 = scmp.lt.s32.totalorder %s60_s25, %s60_s25 }
  0x21   :  { %p4910_p11 = scmp.ne.s32.totalorder %s60_s25, %s4909_s1  ;;  %p4915_p13 = scmp.lt.s32.totalorder %s4909_s1, %s4909_s1 }
  0x23   :  { %p4916_p0 = por %p4915_p13, %p4914_p12 }
  0x25   :  { %p4917_p1 = pnand %p4916_p0, %p4910_p11 }
  0x27   :  { %4920 = shalt.err (!%p4917_p1)
}
  0x28   :  { %62 = dma.hbm_to_vmem [thread:$0]  %s5572_s3, 256, %s60_s25, [#allocation9]  }
  0x29   :  { %s4921_s18 = scalar_lea.hbm %s5574_s5, 128 }
  0x2a   :  { %p4922_p2 = scmp.ne.s32.totalorder %s5574_s5, %s4921_s18  ;;  %p4925_p3 = scmp.lt.u32.totalorder %s4921_s18, %s5574_s5 }
  0x2c   :  { %p4927_p4 = pnand %p4925_p3, %p4922_p2 }
  0x2e   :  { %4930 = shalt.err (!%p4927_p4)
}
  0x2f   :  { %s4931_s22 = scalar_lea.vmem %s82_s27, 128  ;;  %p4936_p6 = scmp.lt.s32.totalorder %s82_s27, %s82_s27 }
  0x30   :  { %p4932_p5 = scmp.ne.s32.totalorder %s82_s27, %s4931_s22  ;;  %p4937_p7 = scmp.lt.s32.totalorder %s4931_s22, %s4931_s22 }
  0x32   :  { %p4938_p8 = por %p4937_p7, %p4936_p6 }
  0x34   :  { %p4939_p9 = pnand %p4938_p8, %p4932_p5 }
  0x36   :  { %4942 = shalt.err (!%p4939_p9)
}
  0x37   :  { %84 = dma.hbm_to_vmem [thread:$0]  %s5574_s5, 128, %s82_s27, [#allocation12]  }
  0x38   :  { %s5068_s24 = smov [#allocation3]   ;;  %s5069_s26 = smov [#allocation7]  }
  0x39   :  { %s27_s25 = sshll.u32 %s5068_s24, 4  ;;  %s49_s28 = sshll.u32 %s5069_s26, 4  ;;  %s28_s25 = int_to_ptr.vmem [resolvable:$true] %s27_s25  ;;  %s50_s28 = int_to_ptr.vmem [resolvable:$true] %s49_s28 }
  0x3a   :  { %s4943_s10 = scalar_lea.hbm %s5569_s0, 192 }
  0x3b   :  { %p4944_p10 = scmp.ne.s32.totalorder %s5569_s0, %s4943_s10  ;;  %p4947_p11 = scmp.lt.u32.totalorder %s4943_s10, %s5569_s0 }
  0x3d   :  { %p4949_p12 = pnand %p4947_p11, %p4944_p10 }
  0x3f   :  { %4952 = shalt.err (!%p4949_p12)
}
  0x40   :  { %s4953_s5 = scalar_lea.vmem %s28_s25, 192  ;;  %p4958_p0 = scmp.lt.s32.totalorder %s28_s25, %s28_s25 }
  0x41   :  { %p4954_p13 = scmp.ne.s32.totalorder %s28_s25, %s4953_s5  ;;  %p4959_p1 = scmp.lt.s32.totalorder %s4953_s5, %s4953_s5 }
  0x43   :  { %p4960_p2 = por %p4959_p1, %p4958_p0 }
  0x45   :  { %p4961_p3 = pnand %p4960_p2, %p4954_p13 }
  0x47   :  { %4964 = shalt.err (!%p4961_p3)
}
  0x48   :  { %30 = dma.hbm_to_vmem [thread:$0]  %s5569_s0, 192, %s28_s25, [#allocation4]  }
  0x49   :  { %s4965_s17 = scalar_lea.hbm %s5571_s2, 256 }
  0x4a   :  { %p4966_p4 = scmp.ne.s32.totalorder %s5571_s2, %s4965_s17  ;;  %p4969_p5 = scmp.lt.u32.totalorder %s4965_s17, %s5571_s2 }
  0x4c   :  { %p4971_p6 = pnand %p4969_p5, %p4966_p4 }
  0x4e   :  { %4974 = shalt.err (!%p4971_p6)
}
  0x4f   :  { %s4975_s21 = scalar_lea.vmem %s50_s28, 256  ;;  %p4980_p8 = scmp.lt.s32.totalorder %s50_s28, %s50_s28 }
  0x50   :  { %p4976_p7 = scmp.ne.s32.totalorder %s50_s28, %s4975_s21  ;;  %p4981_p9 = scmp.lt.s32.totalorder %s4975_s21, %s4975_s21 }
  0x52   :  { %p4982_p10 = por %p4981_p9, %p4980_p8 }
  0x54   :  { %p4983_p11 = pnand %p4982_p10, %p4976_p7 }
  0x56   :  { %4986 = shalt.err (!%p4983_p11)
}
  0x57   :  { %52 = dma.hbm_to_vmem [thread:$0]  %s5571_s2, 256, %s50_s28, [#allocation6]  }
  0x58   :  { %s5070_s3 = smov [#allocation10]   ;;  %s4987_s26 = scalar_lea.hbm %s5573_s4, 65536 }
  0x59   :  { %s68_s23 = sshll.u32 %s5070_s3, 4  ;;  %p4988_p12 = scmp.ne.s32.totalorder %s5573_s4, %s4987_s26  ;;  %s69_s23 = int_to_ptr.vmem [resolvable:$true] %s68_s23 }
  0x5a   :  { %p4991_p13 = scmp.lt.u32.totalorder %s4987_s26, %s5573_s4 }
  0x5c   :  { %p4993_p0 = pnand %p4991_p13, %p4988_p12 }
  0x5e   :  { %4996 = shalt.err (!%p4993_p0)
}
  0x5f   :  { %s4997_s13 = scalar_lea.vmem %s69_s23, 65536  ;;  %p5002_p2 = scmp.lt.s32.totalorder %s69_s23, %s69_s23 }
  0x60   :  { %p4998_p1 = scmp.ne.s32.totalorder %s69_s23, %s4997_s13  ;;  %p5003_p3 = scmp.lt.s32.totalorder %s4997_s13, %s4997_s13 }
  0x62   :  { %p5004_p4 = por %p5003_p3, %p5002_p2 }
  0x64   :  { %p5005_p5 = pnand %p5004_p4, %p4998_p1 }
  0x66   :  { %5008 = shalt.err (!%p5005_p5)
}
  0x67   :  { %s5071_s2 = smov 1024   ;;  %s5072_s28 = smov 64  }
  0x68   :  { %74 = dma.hbm_to_vmem [thread:$0]  %s5573_s4, 65536, %s69_s23, [#allocation9], %s5071_s2, %s5071_s2, %s5072_s28  }
  0x69   :  { %s5073_s5 = smov [#allocation13]   ;;  %s5074_s12 = smov [#allocation14]  }
  0x6a   :  { %s91_s27 = sshll.u32 %s5073_s5, 4  ;;  %s101_s15 = sshll.u32 %s5074_s12, 4  ;;  %s92_s27 = int_to_ptr.vmem [resolvable:$true] %s91_s27  ;;  %s102_s15 = int_to_ptr.vmem [resolvable:$true] %s101_s15 }
  0x6b   :  { %s5009_s18 = scalar_lea.hbm %s5575_s6, 128 }
  0x6c   :  { %p5010_p6 = scmp.ne.s32.totalorder %s5575_s6, %s5009_s18  ;;  %p5013_p7 = scmp.lt.u32.totalorder %s5009_s18, %s5575_s6 }
  0x6e   :  { %p5015_p8 = pnand %p5013_p7, %p5010_p6 }
  0x70   :  { %5018 = shalt.err (!%p5015_p8)
}
  0x71   :  { %s5019_s4 = scalar_lea.vmem %s92_s27, 128  ;;  %p5024_p10 = scmp.lt.s32.totalorder %s92_s27, %s92_s27 }
  0x72   :  { %p5020_p9 = scmp.ne.s32.totalorder %s92_s27, %s5019_s4  ;;  %p5025_p11 = scmp.lt.s32.totalorder %s5019_s4, %s5019_s4 }
  0x74   :  { %p5026_p12 = por %p5025_p11, %p5024_p10 }
  0x76   :  { %p5027_p13 = pnand %p5026_p12, %p5020_p9 }
  0x78   :  { %5030 = shalt.err (!%p5027_p13)
}
  0x79   :  { %94 = dma.hbm_to_vmem [thread:$0]  %s5575_s6, 128, %s92_s27, [#allocation12]  }
  0x7a   :  { %s5031_s24 = scalar_lea.hbm %s5576_s7, 128 }
  0x7b   :  { %p5032_p0 = scmp.ne.s32.totalorder %s5576_s7, %s5031_s24  ;;  %p5035_p1 = scmp.lt.u32.totalorder %s5031_s24, %s5576_s7 }
  0x7d   :  { %p5037_p2 = pnand %p5035_p1, %p5032_p0 }
  0x7f   :  { %5040 = shalt.err (!%p5037_p2)
}
  0x80   :  { %s5041_s10 = scalar_lea.vmem %s102_s15, 128  ;;  %p5046_p4 = scmp.lt.s32.totalorder %s102_s15, %s102_s15 }
  0x81   :  { %p5042_p3 = scmp.ne.s32.totalorder %s102_s15, %s5041_s10  ;;  %p5047_p5 = scmp.lt.s32.totalorder %s5041_s10, %s5041_s10 }
  0x83   :  { %p5048_p6 = por %p5047_p5, %p5046_p4 }
  0x85   :  { %p5049_p7 = pnand %p5048_p6, %p5042_p3 }
  0x87   :  { %5052 = shalt.err (!%p5049_p7)
}
  0x88   :  { %104 = dma.hbm_to_vmem [thread:$0]  %s5576_s7, 128, %s102_s15, [#allocation15]  }
  0x89   :  { %5053 = dma.done.wait [#allocation4], 192  }
  0x8a   :  { %5054 = vsyncadd [#allocation4], 4294967104 }
  0x8b   :  { %5055 = dma.done.wait [#allocation6], 24832  }
  0x8c   :  { %5056 = vsyncadd [#allocation6], 4294942464 }
  0x8d   :  { %5057 = dma.done.wait [#allocation9], 65792  }
  0x8e   :  { %5058 = vsyncadd [#allocation9], 4294901504 }
  0x8f   :  { %5059 = dma.done.wait [#allocation12], 256  }
  0x90   :  { %5060 = vsyncadd [#allocation12], 4294967040 }
  0x91   :  { %5061 = dma.done.wait [#allocation15], 128  }
  0x92   :  { %5062 = vsyncadd [#allocation15], 4294967168  ;;  %v135_v1 = vld [vmem:[#allocation5 + $0x8] sm:$0xff]  ;;  %v137_v2 = vld [vmem:[#allocation5 + $0x18] sm:$0xff]  ;;  %vm4689_vm0 = vcmask 7168  }
  0x93   :  { %v134_v3 = vld [vmem:[#allocation5] sm:$0xff]  ;;  %v327_v4 = vunpack.c.l.s8.bf16 %v135_v1  ;;  %v343_v5 = vunpack.c.h.s8.bf16 %v135_v1  ;;  %v329_v6 = vunpack.c.l.s8.bf16 %v137_v2  ;;  %v345_v7 = vunpack.c.h.s8.bf16 %v137_v2  ;;  %v136_v8 = vld [vmem:[#allocation5 + $0x10] sm:$0xff]  ;;  %v151_v11 = vld [vmem:[#allocation5 + $0x88] sm:$0xff] }
  0x94   :  { %v326_v9 = vunpack.c.l.s8.bf16 %v134_v3  ;;  %v328_v10 = vunpack.c.l.s8.bf16 %v136_v8  ;;  %v153_v12 = vld [vmem:[#allocation5 + $0x98] sm:$0xff]  ;;  %v342_v13 = vunpack.c.h.s8.bf16 %v134_v3  ;;  %v344_v14 = vunpack.c.h.s8.bf16 %v136_v8  ;;  %v150_v17 = vld [vmem:[#allocation5 + $0x80] sm:$0xff]  ;;  %v152_v18 = vld [vmem:[#allocation5 + $0x90] sm:$0xff] }
  0x95   :  { %721 = vmatprep.subr.bf16.mxu0 %v327_v4  ;;  %803 = vmatprep.subr.bf16.mxu1 %v329_v6  ;;  %v359_v15 = vunpack.c.l.s8.bf16 %v151_v11  ;;  %v361_v16 = vunpack.c.l.s8.bf16 %v153_v12  ;;  %v358_v19 = vunpack.c.l.s8.bf16 %v150_v17  ;;  %v360_v20 = vunpack.c.l.s8.bf16 %v152_v18  ;;  %v167_v23 = vld [vmem:[#allocation5 + $0x108] sm:$0xff]  ;;  %v169_v24 = vld [vmem:[#allocation5 + $0x118] sm:$0xff]  ;;  %v166_v29 = vld [vmem:[#allocation5 + $0x100] sm:$0xff] }
  0x96   :  { %722 = vmatpush1.bf16.msra.mxu0 %v326_v9  ;;  %804 = vmatpush1.bf16.msra.mxu1 %v328_v10  ;;  %v375_v21 = vunpack.c.h.s8.bf16 %v151_v11  ;;  %v377_v22 = vunpack.c.h.s8.bf16 %v153_v12  ;;  %v374_v25 = vunpack.c.h.s8.bf16 %v150_v17  ;;  %v376_v26 = vunpack.c.h.s8.bf16 %v152_v18  ;;  %v168_v30 = vld [vmem:[#allocation5 + $0x110] sm:$0xff]  ;;  %v183_v37 = vld [vmem:[#allocation5 + $0x188] sm:$0xff]  ;;  %v185_v38 = vld [vmem:[#allocation5 + $0x198] sm:$0xff] }
  0x97   :  { %723 = vmatprep.subr.bf16.mxu0 %v343_v5  ;;  %805 = vmatprep.subr.bf16.mxu1 %v345_v7  ;;  %v391_v27 = vunpack.c.l.s8.bf16 %v167_v23  ;;  %v393_v28 = vunpack.c.l.s8.bf16 %v169_v24  ;;  %v5225_v31 = vld [vmem:[#allocation3] sm:$0xff]  ;;  %v390_v32 = vunpack.c.l.s8.bf16 %v166_v29  ;;  %v392_v33 = vunpack.c.l.s8.bf16 %v168_v30  ;;  %v182_v43 = vld [vmem:[#allocation5 + $0x180] sm:$0xff]  ;;  %v199_v49 = vld [vmem:[#allocation5 + $0x208] sm:$0xff] }
  0x98   :  { %v407_v34 = vunpack.c.h.s8.bf16 %v167_v23  ;;  %v409_v35 = vunpack.c.h.s8.bf16 %v169_v24  ;;  %v5229_v36 = vcombine.high %v5225_v31, %v5225_v31  ;;  %v406_v39 = vunpack.c.h.s8.bf16 %v166_v29  ;;  %v184_v44 = vld [vmem:[#allocation5 + $0x190] sm:$0xff]  ;;  %v201_v50 = vld [vmem:[#allocation5 + $0x218] sm:$0xff]  ;;  %v198_v55 = vld [vmem:[#allocation5 + $0x200] sm:$0xff] }
  0x99   :  { %v408_v40 = vunpack.c.h.s8.bf16 %v168_v30  ;;  %v423_v41 = vunpack.c.l.s8.bf16 %v183_v37  ;;  %v425_v42 = vunpack.c.l.s8.bf16 %v185_v38  ;;  %v422_v45 = vunpack.c.l.s8.bf16 %v182_v43  ;;  %v200_v56 = vld [vmem:[#allocation5 + $0x210] sm:$0xff]  ;;  %v215_v61 = vld [vmem:[#allocation5 + $0x288] sm:$0xff]  ;;  %v217_v62 = vld [vmem:[#allocation5 + $0x298] sm:$0xff] }
  0x9a   :  { %724 = vmatpush1.bf16.msra.mxu0 %v342_v13  ;;  %806 = vmatpush1.bf16.msra.mxu1 %v344_v14  ;;  %v424_v46 = vunpack.c.l.s8.bf16 %v184_v44  ;;  %v439_v47 = vunpack.c.h.s8.bf16 %v183_v37  ;;  %v441_v48 = vunpack.c.h.s8.bf16 %v185_v38  ;;  %v438_v51 = vunpack.c.h.s8.bf16 %v182_v43  ;;  %v214_v3 = vld [vmem:[#allocation5 + $0x280] sm:$0xff]  ;;  %v216_v4 = vld [vmem:[#allocation5 + $0x290] sm:$0xff]  ;;  %v231_v9 = vld [vmem:[#allocation5 + $0x308] sm:$0xff] }
  0x9b   :  { %725 = vmatprep.subr.bf16.mxu0 %v359_v15  ;;  %807 = vmatprep.subr.bf16.mxu1 %v361_v16  ;;  %v440_v52 = vunpack.c.h.s8.bf16 %v184_v44  ;;  %v455_v53 = vunpack.c.l.s8.bf16 %v199_v49  ;;  %v457_v54 = vunpack.c.l.s8.bf16 %v201_v50  ;;  %v454_v57 = vunpack.c.l.s8.bf16 %v198_v55  ;;  %v233_v10 = vld [vmem:[#allocation5 + $0x318] sm:$0xff]  ;;  %v230_v15 = vld [vmem:[#allocation5 + $0x300] sm:$0xff]  ;;  %v232_v16 = vld [vmem:[#allocation5 + $0x310] sm:$0xff] }
  0x9c   :  { %753 = vmatprep.mubr.bf16.mxu0 %v5229_v36  ;;  %835 = vmatprep.mubr.bf16.mxu1 %v5229_v36  ;;  %v456_v58 = vunpack.c.l.s8.bf16 %v200_v56  ;;  %v471_v59 = vunpack.c.h.s8.bf16 %v199_v49  ;;  %v473_v60 = vunpack.c.h.s8.bf16 %v201_v50  ;;  %v470_v63 = vunpack.c.h.s8.bf16 %v198_v55  ;;  %v281_v49 = vld [vmem:[#allocation5 + $0x498] sm:$0xff] }
  0x9d   :  { %v472_v0 = vunpack.c.h.s8.bf16 %v200_v56  ;;  %v487_v1 = vunpack.c.l.s8.bf16 %v215_v61  ;;  %v489_v2 = vunpack.c.l.s8.bf16 %v217_v62  ;;  %v486_v5 = vunpack.c.l.s8.bf16 %v214_v3 }
  0x9e   :  { %726 = vmatpush1.bf16.msra.mxu0 %v358_v19  ;;  %808 = vmatpush1.bf16.msra.mxu1 %v360_v20  ;;  %v488_v6 = vunpack.c.l.s8.bf16 %v216_v4  ;;  %v503_v7 = vunpack.c.h.s8.bf16 %v215_v61  ;;  %v505_v8 = vunpack.c.h.s8.bf16 %v217_v62  ;;  %v502_v11 = vunpack.c.h.s8.bf16 %v214_v3  ;;  %v297_v61 = vld [vmem:[#allocation5 + $0x518] sm:$0xff]  ;;  %v296_v3 = vld [vmem:[#allocation5 + $0x510] sm:$0xff] }
  0x9f   :  { %727 = vmatprep.subr.bf16.mxu0 %v375_v21  ;;  %809 = vmatprep.subr.bf16.mxu1 %v377_v22  ;;  %v504_v12 = vunpack.c.h.s8.bf16 %v216_v4  ;;  %v519_v13 = vunpack.c.l.s8.bf16 %v231_v9  ;;  %v521_v14 = vunpack.c.l.s8.bf16 %v233_v10  ;;  %v518_v17 = vunpack.c.l.s8.bf16 %v230_v15  ;;  %v247_v21 = vld [vmem:[#allocation5 + $0x388] sm:$0xff]  ;;  %v249_v22 = vld [vmem:[#allocation5 + $0x398] sm:$0xff] }
  0xa0   :  { %v520_v18 = vunpack.c.l.s8.bf16 %v232_v16  ;;  %v535_v19 = vunpack.c.h.s8.bf16 %v231_v9  ;;  %v537_v20 = vunpack.c.h.s8.bf16 %v233_v10  ;;  %v534_v23 = vunpack.c.h.s8.bf16 %v230_v15  ;;  %v313_v9 = vld [vmem:[#allocation5 + $0x598] sm:$0xff]  ;;  %v312_v15 = vld [vmem:[#allocation5 + $0x590] sm:$0xff] }
  0xa1   :  { %v536_v24 = vunpack.c.h.s8.bf16 %v232_v16  ;;  %v5235_v43 = vcombine.low %v5225_v31, %v5225_v31  ;;  %v5075_v55 = vmov 0  }
  0xa2   :  { %728 = vmatpush1.bf16.msra.mxu0 %v374_v25  ;;  %810 = vmatpush1.bf16.msra.mxu1 %v376_v26  ;;  %v551_v25 = vunpack.c.l.s8.bf16 %v247_v21  ;;  %v553_v26 = vunpack.c.l.s8.bf16 %v249_v22 }
  0xa3   :  { %729 = vmatprep.subr.bf16.mxu0 %v391_v27  ;;  %811 = vmatprep.subr.bf16.mxu1 %v393_v28  ;;  %v246_v27 = vld [vmem:[#allocation5 + $0x380] sm:$0xff]  ;;  %v248_v28 = vld [vmem:[#allocation5 + $0x390] sm:$0xff] }
  0xa4   :  { %v550_v29 = vunpack.c.l.s8.bf16 %v246_v27  ;;  %v552_v30 = vunpack.c.l.s8.bf16 %v248_v28  ;;  %v566_v37 = vunpack.c.h.s8.bf16 %v246_v27  ;;  %v568_v38 = vunpack.c.h.s8.bf16 %v248_v28  ;;  %v140_v27 = vld [vmem:[#allocation5 + $0x30] sm:$0xff]  ;;  %v5241_v28 = vld [vmem:[#allocation3 + $0x8] ss:$0 sps:$4 sm:$0xff]  }
  0xa6   :  { %730 = vmatpush1.bf16.msra.mxu0 %v390_v32  ;;  %812 = vmatpush1.bf16.msra.mxu1 %v392_v33  ;;  %v567_v32 = vunpack.c.h.s8.bf16 %v247_v21  ;;  %v569_v33 = vunpack.c.h.s8.bf16 %v249_v22  ;;  %v141_v21 = vld [vmem:[#allocation5 + $0x38] sm:$0xff] }
  0xa7   :  { %731 = vmatprep.subr.bf16.mxu0 %v407_v34  ;;  %813 = vmatprep.subr.bf16.mxu1 %v409_v35  ;;  %v263_v34 = vld [vmem:[#allocation5 + $0x408] sm:$0xff]  ;;  %v265_v35 = vld [vmem:[#allocation5 + $0x418] sm:$0xff] }
  0xaa   :  { %732 = vmatpush1.bf16.msra.mxu0 %v406_v39  ;;  %814 = vmatpush1.bf16.msra.mxu1 %v408_v40  ;;  %v583_v39 = vunpack.c.l.s8.bf16 %v263_v34  ;;  %v585_v40 = vunpack.c.l.s8.bf16 %v265_v35 }
  0xab   :  { %733 = vmatprep.subr.bf16.mxu0 %v423_v41  ;;  %815 = vmatprep.subr.bf16.mxu1 %v425_v42  ;;  %v262_v41 = vld [vmem:[#allocation5 + $0x400] sm:$0xff]  ;;  %v264_v42 = vld [vmem:[#allocation5 + $0x410] sm:$0xff] }
  0xac   :  { %v582_v44 = vunpack.c.l.s8.bf16 %v262_v41  ;;  %v598_v50 = vunpack.c.h.s8.bf16 %v262_v41  ;;  %v154_v41 = vld [vmem:[#allocation5 + $0xa0] sm:$0xff] }
  0xae   :  { %734 = vmatpush1.bf16.msra.mxu0 %v422_v45  ;;  %816 = vmatpush1.bf16.msra.mxu1 %v424_v46  ;;  %v584_v45 = vunpack.c.l.s8.bf16 %v264_v42  ;;  %v599_v46 = vunpack.c.h.s8.bf16 %v263_v34  ;;  %v155_v34 = vld [vmem:[#allocation5 + $0xa8] sm:$0xff] }
  0xaf   :  { %735 = vmatprep.subr.bf16.mxu0 %v439_v47  ;;  %817 = vmatprep.subr.bf16.mxu1 %v441_v48  ;;  %v601_v47 = vunpack.c.h.s8.bf16 %v265_v35  ;;  %v279_v48 = vld [vmem:[#allocation5 + $0x488] sm:$0xff]  ;;  %v157_v35 = vld [vmem:[#allocation5 + $0xb8] sm:$0xff] }
  0xb0   :  { %v615_v31 = vunpack.c.l.s8.bf16 %v279_v48 }
  0xb2   :  { %736 = vmatpush1.bf16.msra.mxu0 %v438_v51  ;;  %818 = vmatpush1.bf16.msra.mxu1 %v440_v52  ;;  %v600_v51 = vunpack.c.h.s8.bf16 %v264_v42  ;;  %v617_v52 = vunpack.c.l.s8.bf16 %v281_v49  ;;  %v156_v42 = vld [vmem:[#allocation5 + $0xb0] sm:$0xff] }
  0xb3   :  { %737 = vmatprep.subr.bf16.mxu0 %v455_v53  ;;  %819 = vmatprep.subr.bf16.mxu1 %v457_v54  ;;  %v278_v53 = vld [vmem:[#allocation5 + $0x480] sm:$0xff]  ;;  %v280_v54 = vld [vmem:[#allocation5 + $0x490] sm:$0xff] }
  0xb4   :  { %v614_v56 = vunpack.c.l.s8.bf16 %v278_v53  ;;  %v630_v62 = vunpack.c.h.s8.bf16 %v278_v53  ;;  %v170_v53 = vld [vmem:[#allocation5 + $0x120] sm:$0xff] }
  0xb6   :  { %738 = vmatpush1.bf16.msra.mxu0 %v454_v57  ;;  %820 = vmatpush1.bf16.msra.mxu1 %v456_v58  ;;  %v616_v57 = vunpack.c.l.s8.bf16 %v280_v54  ;;  %v631_v58 = vunpack.c.h.s8.bf16 %v279_v48  ;;  %v171_v48 = vld [vmem:[#allocation5 + $0x128] sm:$0xff] }
  0xb7   :  { %739 = vmatprep.subr.bf16.mxu0 %v471_v59  ;;  %821 = vmatprep.subr.bf16.mxu1 %v473_v60  ;;  %v633_v59 = vunpack.c.h.s8.bf16 %v281_v49  ;;  %v295_v60 = vld [vmem:[#allocation5 + $0x508] sm:$0xff]  ;;  %v173_v49 = vld [vmem:[#allocation5 + $0x138] sm:$0xff] }
  0xba   :  { %740 = vmatpush1.bf16.msra.mxu0 %v470_v63  ;;  %822 = vmatpush1.bf16.msra.mxu1 %v472_v0  ;;  %v632_v63 = vunpack.c.h.s8.bf16 %v280_v54  ;;  %v647_v0 = vunpack.c.l.s8.bf16 %v295_v60  ;;  %v172_v54 = vld [vmem:[#allocation5 + $0x130] sm:$0xff] }
  0xbb   :  { %741 = vmatprep.subr.bf16.mxu0 %v487_v1  ;;  %823 = vmatprep.subr.bf16.mxu1 %v489_v2  ;;  %v649_v1 = vunpack.c.l.s8.bf16 %v297_v61  ;;  %v294_v2 = vld [vmem:[#allocation5 + $0x500] sm:$0xff] }
  0xbc   :  { %v646_v4 = vunpack.c.l.s8.bf16 %v294_v2  ;;  %v662_v10 = vunpack.c.h.s8.bf16 %v294_v2  ;;  %v186_v2 = vld [vmem:[#allocation5 + $0x1a0] sm:$0xff] }
  0xbe   :  { %742 = vmatpush1.bf16.msra.mxu0 %v486_v5  ;;  %824 = vmatpush1.bf16.msra.mxu1 %v488_v6  ;;  %v648_v5 = vunpack.c.l.s8.bf16 %v296_v3  ;;  %v663_v6 = vunpack.c.h.s8.bf16 %v295_v60  ;;  %v187_v60 = vld [vmem:[#allocation5 + $0x1a8] sm:$0xff] }
  0xbf   :  { %743 = vmatprep.subr.bf16.mxu0 %v503_v7  ;;  %825 = vmatprep.subr.bf16.mxu1 %v505_v8  ;;  %v665_v7 = vunpack.c.h.s8.bf16 %v297_v61  ;;  %v311_v8 = vld [vmem:[#allocation5 + $0x588] sm:$0xff]  ;;  %v189_v61 = vld [vmem:[#allocation5 + $0x1b8] sm:$0xff] }
  0xc2   :  { %744 = vmatpush1.bf16.msra.mxu0 %v502_v11  ;;  %826 = vmatpush1.bf16.msra.mxu1 %v504_v12  ;;  %v664_v11 = vunpack.c.h.s8.bf16 %v296_v3  ;;  %v679_v12 = vunpack.c.l.s8.bf16 %v311_v8  ;;  %v188_v3 = vld [vmem:[#allocation5 + $0x1b0] sm:$0xff] }
  0xc3   :  { %745 = vmatprep.subr.bf16.mxu0 %v519_v13  ;;  %827 = vmatprep.subr.bf16.mxu1 %v521_v14  ;;  %v681_v13 = vunpack.c.l.s8.bf16 %v313_v9  ;;  %v310_v14 = vld [vmem:[#allocation5 + $0x580] sm:$0xff] }
  0xc4   :  { %v678_v16 = vunpack.c.l.s8.bf16 %v310_v14  ;;  %v694_v22 = vunpack.c.h.s8.bf16 %v310_v14  ;;  %v202_v14 = vld [vmem:[#allocation5 + $0x220] sm:$0xff] }
  0xc6   :  { %746 = vmatpush1.bf16.msra.mxu0 %v518_v17  ;;  %828 = vmatpush1.bf16.msra.mxu1 %v520_v18  ;;  %v680_v17 = vunpack.c.l.s8.bf16 %v312_v15  ;;  %v695_v18 = vunpack.c.h.s8.bf16 %v311_v8  ;;  %v203_v8 = vld [vmem:[#allocation5 + $0x228] sm:$0xff] }
  0xc7   :  { %747 = vmatprep.subr.bf16.mxu0 %v535_v19  ;;  %829 = vmatprep.subr.bf16.mxu1 %v537_v20  ;;  %v697_v19 = vunpack.c.h.s8.bf16 %v313_v9  ;;  %v139_v20 = vld [vmem:[#allocation5 + $0x28] sm:$0xff]  ;;  %v205_v9 = vld [vmem:[#allocation5 + $0x238] sm:$0xff] }
  0xca   :  { %748 = vmatpush1.bf16.msra.mxu0 %v534_v23  ;;  %830 = vmatpush1.bf16.msra.mxu1 %v536_v24  ;;  %v696_v23 = vunpack.c.h.s8.bf16 %v312_v15  ;;  %v331_v24 = vunpack.c.l.s8.bf16 %v139_v20  ;;  %v204_v15 = vld [vmem:[#allocation5 + $0x230] sm:$0xff] }
  0xcb   :  { %749 = vmatprep.subr.bf16.mxu0 %v551_v25  ;;  %831 = vmatprep.subr.bf16.mxu1 %v553_v26  ;;  %v333_v25 = vunpack.c.l.s8.bf16 %v141_v21  ;;  %v138_v26 = vld [vmem:[#allocation5 + $0x20] sm:$0xff] }
  0xce   :  { %750 = vmatpush1.bf16.msra.mxu0 %v550_v29  ;;  %832 = vmatpush1.bf16.msra.mxu1 %v552_v30  ;;  %v330_v29 = vunpack.c.l.s8.bf16 %v138_v26  ;;  %v332_v30 = vunpack.c.l.s8.bf16 %v140_v27 }
  0xcf   :  { %751 = vmatprep.subr.bf16.mxu0 %v567_v32  ;;  %833 = vmatprep.subr.bf16.mxu1 %v569_v33  ;;  %v347_v32 = vunpack.c.h.s8.bf16 %v139_v20  ;;  %v349_v33 = vunpack.c.h.s8.bf16 %v141_v21  ;;  %v219_v20 = vld [vmem:[#allocation5 + $0x2a8] sm:$0xff]  ;;  %v221_v21 = vld [vmem:[#allocation5 + $0x2b8] sm:$0xff] }
  0xd2   :  { %752 = vmatpush1.bf16.msra.mxu0 %v566_v37  ;;  %834 = vmatpush1.bf16.msra.mxu1 %v568_v38  ;;  %v346_v37 = vunpack.c.h.s8.bf16 %v138_v26  ;;  %v348_v38 = vunpack.c.h.s8.bf16 %v140_v27  ;;  %v218_v26 = vld [vmem:[#allocation5 + $0x2a0] sm:$0xff]  ;;  %v220_v27 = vld [vmem:[#allocation5 + $0x2b0] sm:$0xff] }
  0xd3   :  { %762 = vmatprep.subr.bf16.mxu0 %v583_v39  ;;  %844 = vmatprep.subr.bf16.mxu1 %v585_v40  ;;  %v363_v39 = vunpack.c.l.s8.bf16 %v155_v34  ;;  %v365_v40 = vunpack.c.l.s8.bf16 %v157_v35 }
  0xd5   :  { %754 = vmatmul.mubr.bf16.vlgmr.msra.gmra.mrb[0].mxu0 %v5235_v43  ;;  %836 = vmatmul.mubr.bf16.vlgmr.msra.gmra.mrb[0].mxu1 %v5235_v43 }
  0xd6   :  { %763 = vmatpush1.bf16.msra.mxu0 %v582_v44  ;;  %845 = vmatpush1.bf16.msra.mxu1 %v584_v45  ;;  %v362_v44 = vunpack.c.l.s8.bf16 %v154_v41  ;;  %v364_v45 = vunpack.c.l.s8.bf16 %v156_v42 }
  0xd7   :  { %764 = vmatprep.subr.bf16.mxu0 %v599_v46  ;;  %846 = vmatprep.subr.bf16.mxu1 %v601_v47  ;;  %v379_v46 = vunpack.c.h.s8.bf16 %v155_v34  ;;  %v381_v47 = vunpack.c.h.s8.bf16 %v157_v35  ;;  %v235_v34 = vld [vmem:[#allocation5 + $0x328] sm:$0xff]  ;;  %v237_v35 = vld [vmem:[#allocation5 + $0x338] sm:$0xff] }
  0xd8   :  { %794 = vmatprep.mubr.bf16.mxu0 %v5075_v55  ;;  %876 = vmatprep.mubr.bf16.mxu1 %v5075_v55 }
  0xda   :  { %765 = vmatpush1.bf16.msra.mxu0 %v598_v50  ;;  %847 = vmatpush1.bf16.msra.mxu1 %v600_v51  ;;  %v378_v50 = vunpack.c.h.s8.bf16 %v154_v41  ;;  %v380_v51 = vunpack.c.h.s8.bf16 %v156_v42  ;;  %v234_v41 = vld [vmem:[#allocation5 + $0x320] sm:$0xff]  ;;  %v236_v42 = vld [vmem:[#allocation5 + $0x330] sm:$0xff] }
  0xdb   :  { %766 = vmatprep.subr.bf16.mxu0 %v615_v31  ;;  %848 = vmatprep.subr.bf16.mxu1 %v617_v52  ;;  %v395_v31 = vunpack.c.l.s8.bf16 %v171_v48  ;;  %v397_v52 = vunpack.c.l.s8.bf16 %v173_v49 }
  0xde   :  { %767 = vmatpush1.bf16.msra.mxu0 %v614_v56  ;;  %849 = vmatpush1.bf16.msra.mxu1 %v616_v57  ;;  %v394_v56 = vunpack.c.l.s8.bf16 %v170_v53  ;;  %v396_v57 = vunpack.c.l.s8.bf16 %v172_v54 }
  0xdf   :  { %768 = vmatprep.subr.bf16.mxu0 %v631_v58  ;;  %850 = vmatprep.subr.bf16.mxu1 %v633_v59  ;;  %v411_v58 = vunpack.c.h.s8.bf16 %v171_v48  ;;  %v413_v59 = vunpack.c.h.s8.bf16 %v173_v49  ;;  %v251_v48 = vld [vmem:[#allocation5 + $0x3a8] sm:$0xff]  ;;  %v253_v49 = vld [vmem:[#allocation5 + $0x3b8] sm:$0xff] }
  0xe2   :  { %769 = vmatpush1.bf16.msra.mxu0 %v630_v62  ;;  %851 = vmatpush1.bf16.msra.mxu1 %v632_v63  ;;  %v410_v62 = vunpack.c.h.s8.bf16 %v170_v53  ;;  %v412_v63 = vunpack.c.h.s8.bf16 %v172_v54  ;;  %v250_v53 = vld [vmem:[#allocation5 + $0x3a0] sm:$0xff]  ;;  %v252_v54 = vld [vmem:[#allocation5 + $0x3b0] sm:$0xff] }
  0xe3   :  { %770 = vmatprep.subr.bf16.mxu0 %v647_v0  ;;  %852 = vmatprep.subr.bf16.mxu1 %v649_v1  ;;  %v427_v0 = vunpack.c.l.s8.bf16 %v187_v60  ;;  %v429_v1 = vunpack.c.l.s8.bf16 %v189_v61 }
  0xe6   :  { %771 = vmatpush1.bf16.msra.mxu0 %v646_v4  ;;  %853 = vmatpush1.bf16.msra.mxu1 %v648_v5  ;;  %v426_v4 = vunpack.c.l.s8.bf16 %v186_v2  ;;  %v428_v5 = vunpack.c.l.s8.bf16 %v188_v3 }
  0xe7   :  { %772 = vmatprep.subr.bf16.mxu0 %v663_v6  ;;  %854 = vmatprep.subr.bf16.mxu1 %v665_v7  ;;  %v443_v6 = vunpack.c.h.s8.bf16 %v187_v60  ;;  %v445_v7 = vunpack.c.h.s8.bf16 %v189_v61  ;;  %v267_v60 = vld [vmem:[#allocation5 + $0x428] sm:$0xff]  ;;  %v269_v61 = vld [vmem:[#allocation5 + $0x438] sm:$0xff] }
  0xea   :  { %773 = vmatpush1.bf16.msra.mxu0 %v662_v10  ;;  %855 = vmatpush1.bf16.msra.mxu1 %v664_v11  ;;  %v442_v10 = vunpack.c.h.s8.bf16 %v186_v2  ;;  %v444_v11 = vunpack.c.h.s8.bf16 %v188_v3  ;;  %v266_v2 = vld [vmem:[#allocation5 + $0x420] sm:$0xff]  ;;  %v268_v3 = vld [vmem:[#allocation5 + $0x430] sm:$0xff] }
  0xeb   :  { %774 = vmatprep.subr.bf16.mxu0 %v679_v12  ;;  %856 = vmatprep.subr.bf16.mxu1 %v681_v13  ;;  %v459_v12 = vunpack.c.l.s8.bf16 %v203_v8  ;;  %v461_v13 = vunpack.c.l.s8.bf16 %v205_v9 }
  0xee   :  { %775 = vmatpush1.bf16.msra.mxu0 %v678_v16  ;;  %857 = vmatpush1.bf16.msra.mxu1 %v680_v17  ;;  %v458_v16 = vunpack.c.l.s8.bf16 %v202_v14  ;;  %v460_v17 = vunpack.c.l.s8.bf16 %v204_v15 }
  0xef   :  { %776 = vmatprep.subr.bf16.mxu0 %v695_v18  ;;  %858 = vmatprep.subr.bf16.mxu1 %v697_v19  ;;  %v475_v18 = vunpack.c.h.s8.bf16 %v203_v8  ;;  %v477_v19 = vunpack.c.h.s8.bf16 %v205_v9  ;;  %v283_v8 = vld [vmem:[#allocation5 + $0x4a8] sm:$0xff]  ;;  %v285_v9 = vld [vmem:[#allocation5 + $0x4b8] sm:$0xff] }
  0xf2   :  { %777 = vmatpush1.bf16.msra.mxu0 %v694_v22  ;;  %859 = vmatpush1.bf16.msra.mxu1 %v696_v23  ;;  %v474_v22 = vunpack.c.h.s8.bf16 %v202_v14  ;;  %v476_v23 = vunpack.c.h.s8.bf16 %v204_v15  ;;  %v282_v14 = vld [vmem:[#allocation5 + $0x4a0] sm:$0xff]  ;;  %v284_v15 = vld [vmem:[#allocation5 + $0x4b0] sm:$0xff] }
  0xf3   :  { %885 = vmatprep.subr.bf16.mxu0 %v331_v24  ;;  %967 = vmatprep.subr.bf16.mxu1 %v333_v25  ;;  %v491_v24 = vunpack.c.l.s8.bf16 %v219_v20  ;;  %v493_v25 = vunpack.c.l.s8.bf16 %v221_v21 }
  0xf5   :  { %795 = vmatmul.mubr.bf16.vlgmr.msra.gmra.mrb[0].mxu0 %v5241_v28  ;;  %877 = vmatmul.mubr.bf16.vlgmr.msra.gmra.mrb[0].mxu1 %v5241_v28 }
  0xf6   :  { %886 = vmatpush1.bf16.msra.mxu0 %v330_v29  ;;  %968 = vmatpush1.bf16.msra.mxu1 %v332_v30  ;;  %v490_v29 = vunpack.c.l.s8.bf16 %v218_v26  ;;  %v492_v30 = vunpack.c.l.s8.bf16 %v220_v27 }
  0xf7   :  { %887 = vmatprep.subr.bf16.mxu0 %v347_v32  ;;  %969 = vmatprep.subr.bf16.mxu1 %v349_v33  ;;  %v507_v32 = vunpack.c.h.s8.bf16 %v219_v20  ;;  %v509_v33 = vunpack.c.h.s8.bf16 %v221_v21  ;;  %v299_v20 = vld [vmem:[#allocation5 + $0x528] sm:$0xff]  ;;  %v301_v21 = vld [vmem:[#allocation5 + $0x538] sm:$0xff] }
  0xf8   :  { %917 = vmatprep.mubr.bf16.mxu0 %v5229_v36  ;;  %999 = vmatprep.mubr.bf16.mxu1 %v5229_v36 }
  0xfa   :  { %888 = vmatpush1.bf16.msra.mxu0 %v346_v37  ;;  %970 = vmatpush1.bf16.msra.mxu1 %v348_v38  ;;  %v506_v37 = vunpack.c.h.s8.bf16 %v218_v26  ;;  %v508_v38 = vunpack.c.h.s8.bf16 %v220_v27  ;;  %v298_v26 = vld [vmem:[#allocation5 + $0x520] sm:$0xff]  ;;  %v300_v27 = vld [vmem:[#allocation5 + $0x530] sm:$0xff] }
  0xfb   :  { %889 = vmatprep.subr.bf16.mxu0 %v363_v39  ;;  %971 = vmatprep.subr.bf16.mxu1 %v365_v40  ;;  %v523_v39 = vunpack.c.l.s8.bf16 %v235_v34  ;;  %v525_v40 = vunpack.c.l.s8.bf16 %v237_v35 }
  0xfe   :  { %890 = vmatpush1.bf16.msra.mxu0 %v362_v44  ;;  %972 = vmatpush1.bf16.msra.mxu1 %v364_v45  ;;  %v522_v44 = vunpack.c.l.s8.bf16 %v234_v41  ;;  %v524_v45 = vunpack.c.l.s8.bf16 %v236_v42 }
  0xff   :  { %891 = vmatprep.subr.bf16.mxu0 %v379_v46  ;;  %973 = vmatprep.subr.bf16.mxu1 %v381_v47  ;;  %v539_v46 = vunpack.c.h.s8.bf16 %v235_v34  ;;  %v541_v47 = vunpack.c.h.s8.bf16 %v237_v35  ;;  %v315_v34 = vld [vmem:[#allocation5 + $0x5a8] sm:$0xff]  ;;  %v317_v35 = vld [vmem:[#allocation5 + $0x5b8] sm:$0xff] }
 0x102   :  { %892 = vmatpush1.bf16.msra.mxu0 %v378_v50  ;;  %974 = vmatpush1.bf16.msra.mxu1 %v380_v51  ;;  %v538_v50 = vunpack.c.h.s8.bf16 %v234_v41  ;;  %v540_v51 = vunpack.c.h.s8.bf16 %v236_v42  ;;  %v314_v41 = vld [vmem:[#allocation5 + $0x5a0] sm:$0xff]  ;;  %v316_v42 = vld [vmem:[#allocation5 + $0x5b0] sm:$0xff] }
 0x103   :  { %893 = vmatprep.subr.bf16.mxu0 %v395_v31  ;;  %975 = vmatprep.subr.bf16.mxu1 %v397_v52  ;;  %v555_v31 = vunpack.c.l.s8.bf16 %v251_v48  ;;  %v557_v52 = vunpack.c.l.s8.bf16 %v253_v49 }
 0x106   :  { %894 = vmatpush1.bf16.msra.mxu0 %v394_v56  ;;  %976 = vmatpush1.bf16.msra.mxu1 %v396_v57  ;;  %v554_v56 = vunpack.c.l.s8.bf16 %v250_v53  ;;  %v556_v57 = vunpack.c.l.s8.bf16 %v252_v54 }
 0x107   :  { %895 = vmatprep.subr.bf16.mxu0 %v411_v58  ;;  %977 = vmatprep.subr.bf16.mxu1 %v413_v59  ;;  %v571_v58 = vunpack.c.h.s8.bf16 %v251_v48  ;;  %v573_v59 = vunpack.c.h.s8.bf16 %v253_v49  ;;  %v143_v48 = vld [vmem:[#allocation5 + $0x48] sm:$0xff]  ;;  %v145_v49 = vld [vmem:[#allocation5 + $0x58] sm:$0xff] }
 0x10a   :  { %896 = vmatpush1.bf16.msra.mxu0 %v410_v62  ;;  %978 = vmatpush1.bf16.msra.mxu1 %v412_v63  ;;  %v570_v62 = vunpack.c.h.s8.bf16 %v250_v53  ;;  %v572_v63 = vunpack.c.h.s8.bf16 %v252_v54  ;;  %v142_v53 = vld [vmem:[#allocation5 + $0x40] sm:$0xff]  ;;  %v144_v54 = vld [vmem:[#allocation5 + $0x50] sm:$0xff] }
 0x10b   :  { %897 = vmatprep.subr.bf16.mxu0 %v427_v0  ;;  %979 = vmatprep.subr.bf16.mxu1 %v429_v1  ;;  %v587_v0 = vunpack.c.l.s8.bf16 %v267_v60  ;;  %v589_v1 = vunpack.c.l.s8.bf16 %v269_v61 }
 0x10e   :  { %898 = vmatpush1.bf16.msra.mxu0 %v426_v4  ;;  %980 = vmatpush1.bf16.msra.mxu1 %v428_v5  ;;  %v586_v4 = vunpack.c.l.s8.bf16 %v266_v2  ;;  %v588_v5 = vunpack.c.l.s8.bf16 %v268_v3 }
 0x10f   :  { %899 = vmatprep.subr.bf16.mxu0 %v443_v6  ;;  %981 = vmatprep.subr.bf16.mxu1 %v445_v7  ;;  %v603_v6 = vunpack.c.h.s8.bf16 %v267_v60  ;;  %v605_v7 = vunpack.c.h.s8.bf16 %v269_v61  ;;  %v159_v60 = vld [vmem:[#allocation5 + $0xc8] sm:$0xff]  ;;  %v161_v61 = vld [vmem:[#allocation5 + $0xd8] sm:$0xff] }
 0x112   :  { %900 = vmatpush1.bf16.msra.mxu0 %v442_v10  ;;  %982 = vmatpush1.bf16.msra.mxu1 %v444_v11  ;;  %v602_v10 = vunpack.c.h.s8.bf16 %v266_v2  ;;  %v604_v11 = vunpack.c.h.s8.bf16 %v268_v3  ;;  %v158_v2 = vld [vmem:[#allocation5 + $0xc0] sm:$0xff]  ;;  %v160_v3 = vld [vmem:[#allocation5 + $0xd0] sm:$0xff] }
 0x113   :  { %901 = vmatprep.subr.bf16.mxu0 %v459_v12  ;;  %983 = vmatprep.subr.bf16.mxu1 %v461_v13  ;;  %v619_v12 = vunpack.c.l.s8.bf16 %v283_v8  ;;  %v621_v13 = vunpack.c.l.s8.bf16 %v285_v9 }
 0x116   :  { %902 = vmatpush1.bf16.msra.mxu0 %v458_v16  ;;  %984 = vmatpush1.bf16.msra.mxu1 %v460_v17  ;;  %v618_v16 = vunpack.c.l.s8.bf16 %v282_v14  ;;  %v620_v17 = vunpack.c.l.s8.bf16 %v284_v15 }
 0x117   :  { %903 = vmatprep.subr.bf16.mxu0 %v475_v18  ;;  %985 = vmatprep.subr.bf16.mxu1 %v477_v19  ;;  %v635_v18 = vunpack.c.h.s8.bf16 %v283_v8  ;;  %v637_v19 = vunpack.c.h.s8.bf16 %v285_v9  ;;  %v175_v8 = vld [vmem:[#allocation5 + $0x148] sm:$0xff]  ;;  %v177_v9 = vld [vmem:[#allocation5 + $0x158] sm:$0xff] }
 0x11a   :  { %904 = vmatpush1.bf16.msra.mxu0 %v474_v22  ;;  %986 = vmatpush1.bf16.msra.mxu1 %v476_v23  ;;  %v634_v22 = vunpack.c.h.s8.bf16 %v282_v14  ;;  %v636_v23 = vunpack.c.h.s8.bf16 %v284_v15  ;;  %v174_v14 = vld [vmem:[#allocation5 + $0x140] sm:$0xff]  ;;  %v176_v15 = vld [vmem:[#allocation5 + $0x150] sm:$0xff] }
 0x11b   :  { %905 = vmatprep.subr.bf16.mxu0 %v491_v24  ;;  %987 = vmatprep.subr.bf16.mxu1 %v493_v25  ;;  %v651_v24 = vunpack.c.l.s8.bf16 %v299_v20  ;;  %v653_v25 = vunpack.c.l.s8.bf16 %v301_v21 }
 0x11e   :  { %906 = vmatpush1.bf16.msra.mxu0 %v490_v29  ;;  %988 = vmatpush1.bf16.msra.mxu1 %v492_v30  ;;  %v650_v29 = vunpack.c.l.s8.bf16 %v298_v26  ;;  %v652_v30 = vunpack.c.l.s8.bf16 %v300_v27 }
 0x11f   :  { %907 = vmatprep.subr.bf16.mxu0 %v507_v32  ;;  %989 = vmatprep.subr.bf16.mxu1 %v509_v33  ;;  %v667_v32 = vunpack.c.h.s8.bf16 %v299_v20  ;;  %v669_v33 = vunpack.c.h.s8.bf16 %v301_v21  ;;  %v191_v20 = vld [vmem:[#allocation5 + $0x1c8] sm:$0xff]  ;;  %v193_v21 = vld [vmem:[#allocation5 + $0x1d8] sm:$0xff] }
 0x122   :  { %908 = vmatpush1.bf16.msra.mxu0 %v506_v37  ;;  %990 = vmatpush1.bf16.msra.mxu1 %v508_v38  ;;  %v666_v37 = vunpack.c.h.s8.bf16 %v298_v26  ;;  %v668_v38 = vunpack.c.h.s8.bf16 %v300_v27  ;;  %v190_v26 = vld [vmem:[#allocation5 + $0x1c0] sm:$0xff]  ;;  %v192_v27 = vld [vmem:[#allocation5 + $0x1d0] sm:$0xff] }
 0x123   :  { %909 = vmatprep.subr.bf16.mxu0 %v523_v39  ;;  %991 = vmatprep.subr.bf16.mxu1 %v525_v40  ;;  %v683_v39 = vunpack.c.l.s8.bf16 %v315_v34  ;;  %v685_v40 = vunpack.c.l.s8.bf16 %v317_v35 }
 0x126   :  { %910 = vmatpush1.bf16.msra.mxu0 %v522_v44  ;;  %992 = vmatpush1.bf16.msra.mxu1 %v524_v45  ;;  %v682_v44 = vunpack.c.l.s8.bf16 %v314_v41  ;;  %v684_v45 = vunpack.c.l.s8.bf16 %v316_v42 }
 0x127   :  { %911 = vmatprep.subr.bf16.mxu0 %v539_v46  ;;  %993 = vmatprep.subr.bf16.mxu1 %v541_v47  ;;  %v699_v46 = vunpack.c.h.s8.bf16 %v315_v34  ;;  %v701_v47 = vunpack.c.h.s8.bf16 %v317_v35  ;;  %v207_v34 = vld [vmem:[#allocation5 + $0x248] sm:$0xff]  ;;  %v209_v35 = vld [vmem:[#allocation5 + $0x258] sm:$0xff] }
 0x12a   :  { %912 = vmatpush1.bf16.msra.mxu0 %v538_v50  ;;  %994 = vmatpush1.bf16.msra.mxu1 %v540_v51  ;;  %v698_v50 = vunpack.c.h.s8.bf16 %v314_v41  ;;  %v700_v51 = vunpack.c.h.s8.bf16 %v316_v42  ;;  %v206_v41 = vld [vmem:[#allocation5 + $0x240] sm:$0xff]  ;;  %v208_v42 = vld [vmem:[#allocation5 + $0x250] sm:$0xff] }
 0x12b   :  { %913 = vmatprep.subr.bf16.mxu0 %v555_v31  ;;  %995 = vmatprep.subr.bf16.mxu1 %v557_v52  ;;  %v335_v31 = vunpack.c.l.s8.bf16 %v143_v48  ;;  %v337_v52 = vunpack.c.l.s8.bf16 %v145_v49 }
 0x12e   :  { %914 = vmatpush1.bf16.msra.mxu0 %v554_v56  ;;  %996 = vmatpush1.bf16.msra.mxu1 %v556_v57  ;;  %v334_v56 = vunpack.c.l.s8.bf16 %v142_v53  ;;  %v336_v57 = vunpack.c.l.s8.bf16 %v144_v54 }
 0x12f   :  { %915 = vmatprep.subr.bf16.mxu0 %v571_v58  ;;  %997 = vmatprep.subr.bf16.mxu1 %v573_v59  ;;  %v351_v58 = vunpack.c.h.s8.bf16 %v143_v48  ;;  %v353_v59 = vunpack.c.h.s8.bf16 %v145_v49  ;;  %v223_v48 = vld [vmem:[#allocation5 + $0x2c8] sm:$0xff]  ;;  %v225_v49 = vld [vmem:[#allocation5 + $0x2d8] sm:$0xff] }
 0x132   :  { %916 = vmatpush1.bf16.msra.mxu0 %v570_v62  ;;  %998 = vmatpush1.bf16.msra.mxu1 %v572_v63  ;;  %v350_v62 = vunpack.c.h.s8.bf16 %v142_v53  ;;  %v352_v63 = vunpack.c.h.s8.bf16 %v144_v54  ;;  %v222_v53 = vld [vmem:[#allocation5 + $0x2c0] sm:$0xff]  ;;  %v224_v54 = vld [vmem:[#allocation5 + $0x2d0] sm:$0xff] }
 0x133   :  { %926 = vmatprep.subr.bf16.mxu0 %v587_v0  ;;  %1008 = vmatprep.subr.bf16.mxu1 %v589_v1  ;;  %v367_v0 = vunpack.c.l.s8.bf16 %v159_v60  ;;  %v369_v1 = vunpack.c.l.s8.bf16 %v161_v61 }
 0x135   :  { %918 = vmatmul.mubr.bf16.vlgmr.msra.gmra.mrb[4].mxu0 %v5235_v43  ;;  %1000 = vmatmul.mubr.bf16.vlgmr.msra.gmra.mrb[4].mxu1 %v5235_v43 }
 0x136   :  { %927 = vmatpush1.bf16.msra.mxu0 %v586_v4  ;;  %1009 = vmatpush1.bf16.msra.mxu1 %v588_v5  ;;  %v366_v4 = vunpack.c.l.s8.bf16 %v158_v2  ;;  %v368_v5 = vunpack.c.l.s8.bf16 %v160_v3 }
 0x137   :  { %928 = vmatprep.subr.bf16.mxu0 %v603_v6  ;;  %1010 = vmatprep.subr.bf16.mxu1 %v605_v7  ;;  %v383_v6 = vunpack.c.h.s8.bf16 %v159_v60  ;;  %v385_v7 = vunpack.c.h.s8.bf16 %v161_v61  ;;  %v239_v60 = vld [vmem:[#allocation5 + $0x348] sm:$0xff]  ;;  %v241_v61 = vld [vmem:[#allocation5 + $0x358] sm:$0xff] }
 0x138   :  { %958 = vmatprep.mubr.bf16.mxu0 %v5075_v55  ;;  %1040 = vmatprep.mubr.bf16.mxu1 %v5075_v55 }
 0x13a   :  { %929 = vmatpush1.bf16.msra.mxu0 %v602_v10  ;;  %1011 = vmatpush1.bf16.msra.mxu1 %v604_v11  ;;  %v382_v10 = vunpack.c.h.s8.bf16 %v158_v2  ;;  %v384_v11 = vunpack.c.h.s8.bf16 %v160_v3  ;;  %v238_v2 = vld [vmem:[#allocation5 + $0x340] sm:$0xff]  ;;  %v240_v3 = vld [vmem:[#allocation5 + $0x350] sm:$0xff] }
 0x13b   :  { %930 = vmatprep.subr.bf16.mxu0 %v619_v12  ;;  %1012 = vmatprep.subr.bf16.mxu1 %v621_v13  ;;  %v399_v12 = vunpack.c.l.s8.bf16 %v175_v8  ;;  %v401_v13 = vunpack.c.l.s8.bf16 %v177_v9 }
 0x13e   :  { %931 = vmatpush1.bf16.msra.mxu0 %v618_v16  ;;  %1013 = vmatpush1.bf16.msra.mxu1 %v620_v17  ;;  %v398_v16 = vunpack.c.l.s8.bf16 %v174_v14  ;;  %v400_v17 = vunpack.c.l.s8.bf16 %v176_v15 }
 0x13f   :  { %932 = vmatprep.subr.bf16.mxu0 %v635_v18  ;;  %1014 = vmatprep.subr.bf16.mxu1 %v637_v19  ;;  %v415_v18 = vunpack.c.h.s8.bf16 %v175_v8  ;;  %v417_v19 = vunpack.c.h.s8.bf16 %v177_v9  ;;  %v255_v8 = vld [vmem:[#allocation5 + $0x3c8] sm:$0xff]  ;;  %v257_v9 = vld [vmem:[#allocation5 + $0x3d8] sm:$0xff] }
 0x142   :  { %933 = vmatpush1.bf16.msra.mxu0 %v634_v22  ;;  %1015 = vmatpush1.bf16.msra.mxu1 %v636_v23  ;;  %v414_v22 = vunpack.c.h.s8.bf16 %v174_v14  ;;  %v416_v23 = vunpack.c.h.s8.bf16 %v176_v15  ;;  %v254_v14 = vld [vmem:[#allocation5 + $0x3c0] sm:$0xff]  ;;  %v256_v15 = vld [vmem:[#allocation5 + $0x3d0] sm:$0xff] }
 0x143   :  { %934 = vmatprep.subr.bf16.mxu0 %v651_v24  ;;  %1016 = vmatprep.subr.bf16.mxu1 %v653_v25  ;;  %v431_v24 = vunpack.c.l.s8.bf16 %v191_v20  ;;  %v433_v25 = vunpack.c.l.s8.bf16 %v193_v21 }
 0x146   :  { %935 = vmatpush1.bf16.msra.mxu0 %v650_v29  ;;  %1017 = vmatpush1.bf16.msra.mxu1 %v652_v30  ;;  %v430_v29 = vunpack.c.l.s8.bf16 %v190_v26  ;;  %v432_v30 = vunpack.c.l.s8.bf16 %v192_v27 }
 0x147   :  { %936 = vmatprep.subr.bf16.mxu0 %v667_v32  ;;  %1018 = vmatprep.subr.bf16.mxu1 %v669_v33  ;;  %v447_v32 = vunpack.c.h.s8.bf16 %v191_v20  ;;  %v449_v33 = vunpack.c.h.s8.bf16 %v193_v21  ;;  %v271_v20 = vld [vmem:[#allocation5 + $0x448] sm:$0xff]  ;;  %v273_v21 = vld [vmem:[#allocation5 + $0x458] sm:$0xff] }
 0x14a   :  { %937 = vmatpush1.bf16.msra.mxu0 %v666_v37  ;;  %1019 = vmatpush1.bf16.msra.mxu1 %v668_v38  ;;  %v446_v37 = vunpack.c.h.s8.bf16 %v190_v26  ;;  %v448_v38 = vunpack.c.h.s8.bf16 %v192_v27  ;;  %v270_v26 = vld [vmem:[#allocation5 + $0x440] sm:$0xff]  ;;  %v272_v27 = vld [vmem:[#allocation5 + $0x450] sm:$0xff] }
 0x14b   :  { %938 = vmatprep.subr.bf16.mxu0 %v683_v39  ;;  %1020 = vmatprep.subr.bf16.mxu1 %v685_v40  ;;  %v463_v39 = vunpack.c.l.s8.bf16 %v207_v34  ;;  %v465_v40 = vunpack.c.l.s8.bf16 %v209_v35 }
 0x14e   :  { %939 = vmatpush1.bf16.msra.mxu0 %v682_v44  ;;  %1021 = vmatpush1.bf16.msra.mxu1 %v684_v45  ;;  %v462_v44 = vunpack.c.l.s8.bf16 %v206_v41  ;;  %v464_v45 = vunpack.c.l.s8.bf16 %v208_v42 }
 0x14f   :  { %940 = vmatprep.subr.bf16.mxu0 %v699_v46  ;;  %1022 = vmatprep.subr.bf16.mxu1 %v701_v47  ;;  %v479_v46 = vunpack.c.h.s8.bf16 %v207_v34  ;;  %v481_v47 = vunpack.c.h.s8.bf16 %v209_v35  ;;  %v287_v34 = vld [vmem:[#allocation5 + $0x4c8] sm:$0xff]  ;;  %v289_v35 = vld [vmem:[#allocation5 + $0x4d8] sm:$0xff] }
 0x152   :  { %941 = vmatpush1.bf16.msra.mxu0 %v698_v50  ;;  %1023 = vmatpush1.bf16.msra.mxu1 %v700_v51  ;;  %v478_v50 = vunpack.c.h.s8.bf16 %v206_v41  ;;  %v480_v51 = vunpack.c.h.s8.bf16 %v208_v42  ;;  %v286_v41 = vld [vmem:[#allocation5 + $0x4c0] sm:$0xff]  ;;  %v288_v42 = vld [vmem:[#allocation5 + $0x4d0] sm:$0xff] }
 0x153   :  { %1049 = vmatprep.subr.bf16.mxu0 %v335_v31  ;;  %1131 = vmatprep.subr.bf16.mxu1 %v337_v52  ;;  %v495_v31 = vunpack.c.l.s8.bf16 %v223_v48  ;;  %v497_v52 = vunpack.c.l.s8.bf16 %v225_v49 }
 0x155   :  { %959 = vmatmul.mubr.bf16.vlgmr.msra.gmra.mrb[4].mxu0 %v5241_v28  ;;  %1041 = vmatmul.mubr.bf16.vlgmr.msra.gmra.mrb[4].mxu1 %v5241_v28 }
 0x156   :  { %1050 = vmatpush1.bf16.msra.mxu0 %v334_v56  ;;  %1132 = vmatpush1.bf16.msra.mxu1 %v336_v57  ;;  %v494_v56 = vunpack.c.l.s8.bf16 %v222_v53  ;;  %v496_v57 = vunpack.c.l.s8.bf16 %v224_v54 }
 0x157   :  { %1051 = vmatprep.subr.bf16.mxu0 %v351_v58  ;;  %1133 = vmatprep.subr.bf16.mxu1 %v353_v59  ;;  %v511_v58 = vunpack.c.h.s8.bf16 %v223_v48  ;;  %v513_v59 = vunpack.c.h.s8.bf16 %v225_v49  ;;  %v303_v48 = vld [vmem:[#allocation5 + $0x548] sm:$0xff]  ;;  %v305_v49 = vld [vmem:[#allocation5 + $0x558] sm:$0xff] }
 0x158   :  { %1081 = vmatprep.mubr.bf16.mxu0 %v5229_v36  ;;  %1163 = vmatprep.mubr.bf16.mxu1 %v5229_v36 }
 0x15a   :  { %1052 = vmatpush1.bf16.msra.mxu0 %v350_v62  ;;  %1134 = vmatpush1.bf16.msra.mxu1 %v352_v63  ;;  %v510_v62 = vunpack.c.h.s8.bf16 %v222_v53  ;;  %v512_v63 = vunpack.c.h.s8.bf16 %v224_v54  ;;  %v302_v53 = vld [vmem:[#allocation5 + $0x540] sm:$0xff]  ;;  %v304_v54 = vld [vmem:[#allocation5 + $0x550] sm:$0xff] }
 0x15b   :  { %1053 = vmatprep.subr.bf16.mxu0 %v367_v0  ;;  %1135 = vmatprep.subr.bf16.mxu1 %v369_v1  ;;  %v527_v0 = vunpack.c.l.s8.bf16 %v239_v60  ;;  %v529_v1 = vunpack.c.l.s8.bf16 %v241_v61 }
 0x15e   :  { %1054 = vmatpush1.bf16.msra.mxu0 %v366_v4  ;;  %1136 = vmatpush1.bf16.msra.mxu1 %v368_v5  ;;  %v526_v4 = vunpack.c.l.s8.bf16 %v238_v2  ;;  %v528_v5 = vunpack.c.l.s8.bf16 %v240_v3 }
 0x15f   :  { %1055 = vmatprep.subr.bf16.mxu0 %v383_v6  ;;  %1137 = vmatprep.subr.bf16.mxu1 %v385_v7  ;;  %v543_v6 = vunpack.c.h.s8.bf16 %v239_v60  ;;  %v545_v7 = vunpack.c.h.s8.bf16 %v241_v61  ;;  %v319_v60 = vld [vmem:[#allocation5 + $0x5c8] sm:$0xff]  ;;  %v321_v61 = vld [vmem:[#allocation5 + $0x5d8] sm:$0xff] }
 0x162   :  { %1056 = vmatpush1.bf16.msra.mxu0 %v382_v10  ;;  %1138 = vmatpush1.bf16.msra.mxu1 %v384_v11  ;;  %v542_v10 = vunpack.c.h.s8.bf16 %v238_v2  ;;  %v544_v11 = vunpack.c.h.s8.bf16 %v240_v3  ;;  %v318_v2 = vld [vmem:[#allocation5 + $0x5c0] sm:$0xff]  ;;  %v320_v3 = vld [vmem:[#allocation5 + $0x5d0] sm:$0xff] }
 0x163   :  { %1057 = vmatprep.subr.bf16.mxu0 %v399_v12  ;;  %1139 = vmatprep.subr.bf16.mxu1 %v401_v13  ;;  %v559_v12 = vunpack.c.l.s8.bf16 %v255_v8  ;;  %v561_v13 = vunpack.c.l.s8.bf16 %v257_v9 }
 0x166   :  { %1058 = vmatpush1.bf16.msra.mxu0 %v398_v16  ;;  %1140 = vmatpush1.bf16.msra.mxu1 %v400_v17  ;;  %v558_v16 = vunpack.c.l.s8.bf16 %v254_v14  ;;  %v560_v17 = vunpack.c.l.s8.bf16 %v256_v15 }
 0x167   :  { %1059 = vmatprep.subr.bf16.mxu0 %v415_v18  ;;  %1141 = vmatprep.subr.bf16.mxu1 %v417_v19  ;;  %v575_v18 = vunpack.c.h.s8.bf16 %v255_v8  ;;  %v577_v19 = vunpack.c.h.s8.bf16 %v257_v9  ;;  %v147_v8 = vld [vmem:[#allocation5 + $0x68] sm:$0xff]  ;;  %v149_v9 = vld [vmem:[#allocation5 + $0x78] sm:$0xff] }
 0x16a   :  { %1060 = vmatpush1.bf16.msra.mxu0 %v414_v22  ;;  %1142 = vmatpush1.bf16.msra.mxu1 %v416_v23  ;;  %v574_v22 = vunpack.c.h.s8.bf16 %v254_v14  ;;  %v576_v23 = vunpack.c.h.s8.bf16 %v256_v15  ;;  %v146_v14 = vld [vmem:[#allocation5 + $0x60] sm:$0xff]  ;;  %v148_v15 = vld [vmem:[#allocation5 + $0x70] sm:$0xff] }
 0x16b   :  { %1061 = vmatprep.subr.bf16.mxu0 %v431_v24  ;;  %1143 = vmatprep.subr.bf16.mxu1 %v433_v25  ;;  %v591_v24 = vunpack.c.l.s8.bf16 %v271_v20  ;;  %v593_v25 = vunpack.c.l.s8.bf16 %v273_v21 }
 0x16e   :  { %1062 = vmatpush1.bf16.msra.mxu0 %v430_v29  ;;  %1144 = vmatpush1.bf16.msra.mxu1 %v432_v30  ;;  %v590_v29 = vunpack.c.l.s8.bf16 %v270_v26  ;;  %v592_v30 = vunpack.c.l.s8.bf16 %v272_v27 }
 0x16f   :  { %1063 = vmatprep.subr.bf16.mxu0 %v447_v32  ;;  %1145 = vmatprep.subr.bf16.mxu1 %v449_v33  ;;  %v607_v32 = vunpack.c.h.s8.bf16 %v271_v20  ;;  %v609_v33 = vunpack.c.h.s8.bf16 %v273_v21  ;;  %v163_v20 = vld [vmem:[#allocation5 + $0xe8] sm:$0xff]  ;;  %v165_v21 = vld [vmem:[#allocation5 + $0xf8] sm:$0xff] }
 0x172   :  { %1064 = vmatpush1.bf16.msra.mxu0 %v446_v37  ;;  %1146 = vmatpush1.bf16.msra.mxu1 %v448_v38  ;;  %v606_v37 = vunpack.c.h.s8.bf16 %v270_v26  ;;  %v608_v38 = vunpack.c.h.s8.bf16 %v272_v27  ;;  %v162_v26 = vld [vmem:[#allocation5 + $0xe0] sm:$0xff]  ;;  %v164_v27 = vld [vmem:[#allocation5 + $0xf0] sm:$0xff] }
 0x173   :  { %1065 = vmatprep.subr.bf16.mxu0 %v463_v39  ;;  %1147 = vmatprep.subr.bf16.mxu1 %v465_v40  ;;  %v623_v39 = vunpack.c.l.s8.bf16 %v287_v34  ;;  %v625_v40 = vunpack.c.l.s8.bf16 %v289_v35 }
 0x176   :  { %1066 = vmatpush1.bf16.msra.mxu0 %v462_v44  ;;  %1148 = vmatpush1.bf16.msra.mxu1 %v464_v45  ;;  %v622_v44 = vunpack.c.l.s8.bf16 %v286_v41  ;;  %v624_v45 = vunpack.c.l.s8.bf16 %v288_v42 }
 0x177   :  { %1067 = vmatprep.subr.bf16.mxu0 %v479_v46  ;;  %1149 = vmatprep.subr.bf16.mxu1 %v481_v47  ;;  %v639_v46 = vunpack.c.h.s8.bf16 %v287_v34  ;;  %v641_v47 = vunpack.c.h.s8.bf16 %v289_v35  ;;  %v181_v34 = vld [vmem:[#allocation5 + $0x178] sm:$0xff]  ;;  %v386_v35 = vunpack.c.h.s8.bf16 %v162_v26 }
 0x17a   :  { %1068 = vmatpush1.bf16.msra.mxu0 %v478_v50  ;;  %1150 = vmatpush1.bf16.msra.mxu1 %v480_v51  ;;  %v638_v50 = vunpack.c.h.s8.bf16 %v286_v41  ;;  %v640_v51 = vunpack.c.h.s8.bf16 %v288_v42 }
 0x17b   :  { %1069 = vmatprep.subr.bf16.mxu0 %v495_v31  ;;  %1151 = vmatprep.subr.bf16.mxu1 %v497_v52  ;;  %v655_v31 = vunpack.c.l.s8.bf16 %v303_v48  ;;  %v657_v52 = vunpack.c.l.s8.bf16 %v305_v49 }
 0x17e   :  { %1070 = vmatpush1.bf16.msra.mxu0 %v494_v56  ;;  %1152 = vmatpush1.bf16.msra.mxu1 %v496_v57  ;;  %v654_v56 = vunpack.c.l.s8.bf16 %v302_v53  ;;  %v656_v57 = vunpack.c.l.s8.bf16 %v304_v54 }
 0x17f   :  { %1071 = vmatprep.subr.bf16.mxu0 %v511_v58  ;;  %1153 = vmatprep.subr.bf16.mxu1 %v513_v59  ;;  %v671_v58 = vunpack.c.h.s8.bf16 %v303_v48  ;;  %v673_v59 = vunpack.c.h.s8.bf16 %v305_v49 }
 0x182   :  { %1072 = vmatpush1.bf16.msra.mxu0 %v510_v62  ;;  %1154 = vmatpush1.bf16.msra.mxu1 %v512_v63  ;;  %v670_v62 = vunpack.c.h.s8.bf16 %v302_v53  ;;  %v672_v63 = vunpack.c.h.s8.bf16 %v304_v54 }
 0x183   :  { %1073 = vmatprep.subr.bf16.mxu0 %v527_v0  ;;  %1155 = vmatprep.subr.bf16.mxu1 %v529_v1  ;;  %v687_v0 = vunpack.c.l.s8.bf16 %v319_v60  ;;  %v689_v1 = vunpack.c.l.s8.bf16 %v321_v61 }
 0x186   :  { %1074 = vmatpush1.bf16.msra.mxu0 %v526_v4  ;;  %1156 = vmatpush1.bf16.msra.mxu1 %v528_v5  ;;  %v686_v4 = vunpack.c.l.s8.bf16 %v318_v2  ;;  %v688_v5 = vunpack.c.l.s8.bf16 %v320_v3 }
 0x187   :  { %1075 = vmatprep.subr.bf16.mxu0 %v543_v6  ;;  %1157 = vmatprep.subr.bf16.mxu1 %v545_v7  ;;  %v703_v6 = vunpack.c.h.s8.bf16 %v319_v60  ;;  %v705_v7 = vunpack.c.h.s8.bf16 %v321_v61 }
 0x18a   :  { %1076 = vmatpush1.bf16.msra.mxu0 %v542_v10  ;;  %1158 = vmatpush1.bf16.msra.mxu1 %v544_v11  ;;  %v702_v10 = vunpack.c.h.s8.bf16 %v318_v2  ;;  %v704_v11 = vunpack.c.h.s8.bf16 %v320_v3  ;;  %v211_v2 = vld [vmem:[#allocation5 + $0x268] sm:$0xff]  ;;  %v213_v3 = vld [vmem:[#allocation5 + $0x278] sm:$0xff] }
 0x18b   :  { %1077 = vmatprep.subr.bf16.mxu0 %v559_v12  ;;  %1159 = vmatprep.subr.bf16.mxu1 %v561_v13  ;;  %v339_v12 = vunpack.c.l.s8.bf16 %v147_v8  ;;  %v341_v13 = vunpack.c.l.s8.bf16 %v149_v9 }
 0x18e   :  { %1078 = vmatpush1.bf16.msra.mxu0 %v558_v16  ;;  %1160 = vmatpush1.bf16.msra.mxu1 %v560_v17  ;;  %v338_v16 = vunpack.c.l.s8.bf16 %v146_v14  ;;  %v340_v17 = vunpack.c.l.s8.bf16 %v148_v15 }
 0x18f   :  { %1079 = vmatprep.subr.bf16.mxu0 %v575_v18  ;;  %1161 = vmatprep.subr.bf16.mxu1 %v577_v19  ;;  %v355_v18 = vunpack.c.h.s8.bf16 %v147_v8  ;;  %v357_v19 = vunpack.c.h.s8.bf16 %v149_v9  ;;  %v210_v8 = vld [vmem:[#allocation5 + $0x260] sm:$0xff]  ;;  %v212_v9 = vld [vmem:[#allocation5 + $0x270] sm:$0xff] }
 0x192   :  { %1080 = vmatpush1.bf16.msra.mxu0 %v574_v22  ;;  %1162 = vmatpush1.bf16.msra.mxu1 %v576_v23  ;;  %v354_v22 = vunpack.c.h.s8.bf16 %v146_v14  ;;  %v356_v23 = vunpack.c.h.s8.bf16 %v148_v15  ;;  %v227_v14 = vld [vmem:[#allocation5 + $0x2e8] sm:$0xff]  ;;  %v229_v15 = vld [vmem:[#allocation5 + $0x2f8] sm:$0xff] }
 0x193   :  { %1090 = vmatprep.subr.bf16.mxu0 %v591_v24  ;;  %1172 = vmatprep.subr.bf16.mxu1 %v593_v25  ;;  %v371_v24 = vunpack.c.l.s8.bf16 %v163_v20  ;;  %v373_v25 = vunpack.c.l.s8.bf16 %v165_v21 }
 0x195   :  { %1082 = vmatmul.mubr.bf16.vlgmr.msra.gmra.mrb[8].mxu0 %v5235_v43  ;;  %1164 = vmatmul.mubr.bf16.vlgmr.msra.gmra.mrb[8].mxu1 %v5235_v43 }
 0x196   :  { %1091 = vmatpush1.bf16.msra.mxu0 %v590_v29  ;;  %1173 = vmatpush1.bf16.msra.mxu1 %v592_v30  ;;  %v370_v29 = vunpack.c.l.s8.bf16 %v162_v26  ;;  %v372_v30 = vunpack.c.l.s8.bf16 %v164_v27  ;;  %v243_v26 = vld [vmem:[#allocation5 + $0x368] sm:$0xff] }
 0x197   :  { %1092 = vmatprep.subr.bf16.mxu0 %v607_v32  ;;  %1174 = vmatprep.subr.bf16.mxu1 %v609_v33  ;;  %v389_v32 = vunpack.c.h.s8.bf16 %v165_v21  ;;  %v179_v33 = vld [vmem:[#allocation5 + $0x168] sm:$0xff]  ;;  %v228_v21 = vld [vmem:[#allocation5 + $0x2f0] sm:$0xff] }
 0x198   :  { %1122 = vmatprep.mubr.bf16.mxu0 %v5075_v55  ;;  %1204 = vmatprep.mubr.bf16.mxu1 %v5075_v55 }
 0x19a   :  { %1093 = vmatpush1.bf16.msra.mxu0 %v606_v37  ;;  %1175 = vmatpush1.bf16.msra.mxu1 %v608_v38  ;;  %v388_v37 = vunpack.c.h.s8.bf16 %v164_v27  ;;  %v403_v38 = vunpack.c.l.s8.bf16 %v179_v33  ;;  %v245_v27 = vld [vmem:[#allocation5 + $0x378] sm:$0xff] }
 0x19b   :  { %1094 = vmatprep.subr.bf16.mxu0 %v623_v39  ;;  %1176 = vmatprep.subr.bf16.mxu1 %v625_v40  ;;  %v405_v39 = vunpack.c.l.s8.bf16 %v181_v34  ;;  %v178_v40 = vld [vmem:[#allocation5 + $0x160] sm:$0xff] }
 0x19c   :  { %v402_v41 = vunpack.c.l.s8.bf16 %v178_v40  ;;  %v418_v48 = vunpack.c.h.s8.bf16 %v178_v40  ;;  %v259_v40 = vld [vmem:[#allocation5 + $0x3e8] sm:$0xff] }
 0x19e   :  { %1095 = vmatpush1.bf16.msra.mxu0 %v622_v44  ;;  %1177 = vmatpush1.bf16.msra.mxu1 %v624_v45  ;;  %v419_v44 = vunpack.c.h.s8.bf16 %v179_v33  ;;  %v421_v45 = vunpack.c.h.s8.bf16 %v181_v34  ;;  %v242_v33 = vld [vmem:[#allocation5 + $0x360] sm:$0xff]  ;;  %v244_v34 = vld [vmem:[#allocation5 + $0x370] sm:$0xff] }
 0x19f   :  { %1096 = vmatprep.subr.bf16.mxu0 %v639_v46  ;;  %1178 = vmatprep.subr.bf16.mxu1 %v641_v47  ;;  %v195_v46 = vld [vmem:[#allocation5 + $0x1e8] sm:$0xff]  ;;  %v197_v47 = vld [vmem:[#allocation5 + $0x1f8] sm:$0xff] }
 0x1a2   :  { %1097 = vmatpush1.bf16.msra.mxu0 %v638_v50  ;;  %1179 = vmatpush1.bf16.msra.mxu1 %v640_v51  ;;  %v435_v50 = vunpack.c.l.s8.bf16 %v195_v46  ;;  %v437_v51 = vunpack.c.l.s8.bf16 %v197_v47 }
 0x1a3   :  { %1098 = vmatprep.subr.bf16.mxu0 %v655_v31  ;;  %1180 = vmatprep.subr.bf16.mxu1 %v657_v52  ;;  %v194_v31 = vld [vmem:[#allocation5 + $0x1e0] sm:$0xff]  ;;  %v196_v52 = vld [vmem:[#allocation5 + $0x1f0] sm:$0xff] }
 0x1a4   :  { %v434_v60 = vunpack.c.l.s8.bf16 %v194_v31  ;;  %v436_v61 = vunpack.c.l.s8.bf16 %v196_v52 }
 0x1a6   :  { %1099 = vmatpush1.bf16.msra.mxu0 %v654_v56  ;;  %1181 = vmatpush1.bf16.msra.mxu1 %v656_v57 }
 0x1a7   :  { %1100 = vmatprep.subr.bf16.mxu0 %v671_v58  ;;  %1182 = vmatprep.subr.bf16.mxu1 %v673_v59 }
 0x1aa   :  { %1101 = vmatpush1.bf16.msra.mxu0 %v670_v62  ;;  %1183 = vmatpush1.bf16.msra.mxu1 %v672_v63 }
 0x1ab   :  { %1102 = vmatprep.subr.bf16.mxu0 %v687_v0  ;;  %1184 = vmatprep.subr.bf16.mxu1 %v689_v1  ;;  %v451_v0 = vunpack.c.h.s8.bf16 %v195_v46  ;;  %v453_v1 = vunpack.c.h.s8.bf16 %v197_v47  ;;  %v258_v46 = vld [vmem:[#allocation5 + $0x3e0] sm:$0xff]  ;;  %v260_v47 = vld [vmem:[#allocation5 + $0x3f0] sm:$0xff] }
 0x1ae   :  { %1103 = vmatpush1.bf16.msra.mxu0 %v686_v4  ;;  %1185 = vmatpush1.bf16.msra.mxu1 %v688_v5  ;;  %v450_v4 = vunpack.c.h.s8.bf16 %v194_v31  ;;  %v452_v5 = vunpack.c.h.s8.bf16 %v196_v52  ;;  %v275_v31 = vld [vmem:[#allocation5 + $0x468] sm:$0xff]  ;;  %v277_v52 = vld [vmem:[#allocation5 + $0x478] sm:$0xff] }
 0x1af   :  { %1104 = vmatprep.subr.bf16.mxu0 %v703_v6  ;;  %1186 = vmatprep.subr.bf16.mxu1 %v705_v7  ;;  %v467_v6 = vunpack.c.l.s8.bf16 %v211_v2  ;;  %v469_v7 = vunpack.c.l.s8.bf16 %v213_v3 }
 0x1b2   :  { %1105 = vmatpush1.bf16.msra.mxu0 %v702_v10  ;;  %1187 = vmatpush1.bf16.msra.mxu1 %v704_v11  ;;  %v466_v10 = vunpack.c.l.s8.bf16 %v210_v8  ;;  %v468_v11 = vunpack.c.l.s8.bf16 %v212_v9 }
 0x1b3   :  { %1213 = vmatprep.subr.bf16.mxu0 %v339_v12  ;;  %1295 = vmatprep.subr.bf16.mxu1 %v341_v13  ;;  %v483_v12 = vunpack.c.h.s8.bf16 %v211_v2  ;;  %v485_v13 = vunpack.c.h.s8.bf16 %v213_v3  ;;  %v611_v2 = vunpack.c.h.s8.bf16 %v275_v31  ;;  %v613_v3 = vunpack.c.h.s8.bf16 %v277_v52 }
 0x1b5   :  { %1123 = vmatmul.mubr.bf16.vlgmr.msra.gmra.mrb[8].mxu0 %v5241_v28  ;;  %1205 = vmatmul.mubr.bf16.vlgmr.msra.gmra.mrb[8].mxu1 %v5241_v28  ;;  %v387_v28 = vunpack.c.h.s8.bf16 %v163_v20  ;;  %v226_v20 = vld [vmem:[#allocation5 + $0x2e0] sm:$0xff] }
 0x1b6   :  { %1214 = vmatpush1.bf16.msra.mxu0 %v338_v16  ;;  %1296 = vmatpush1.bf16.msra.mxu1 %v340_v17  ;;  %v482_v16 = vunpack.c.h.s8.bf16 %v210_v8  ;;  %v484_v17 = vunpack.c.h.s8.bf16 %v212_v9 }
 0x1b7   :  { %1215 = vmatprep.subr.bf16.mxu0 %v355_v18  ;;  %1297 = vmatprep.subr.bf16.mxu1 %v357_v19  ;;  %v499_v18 = vunpack.c.l.s8.bf16 %v227_v14  ;;  %v501_v19 = vunpack.c.l.s8.bf16 %v229_v15 }
 0x1b8   :  { %1245 = vmatprep.mubr.bf16.mxu0 %v5229_v36  ;;  %1327 = vmatprep.mubr.bf16.mxu1 %v5229_v36  ;;  %v180_v36 = vld [vmem:[#allocation5 + $0x170] sm:$0xff] }
 0x1b9   :  { %v404_v42 = vunpack.c.l.s8.bf16 %v180_v36  ;;  %v420_v49 = vunpack.c.h.s8.bf16 %v180_v36  ;;  %v261_v36 = vld [vmem:[#allocation5 + $0x3f8] sm:$0xff] }
 0x1ba   :  { %1216 = vmatpush1.bf16.msra.mxu0 %v354_v22  ;;  %1298 = vmatpush1.bf16.msra.mxu1 %v356_v23  ;;  %v498_v22 = vunpack.c.l.s8.bf16 %v226_v20  ;;  %v500_v23 = vunpack.c.l.s8.bf16 %v228_v21 }
 0x1bb   :  { %1217 = vmatprep.subr.bf16.mxu0 %v371_v24  ;;  %1299 = vmatprep.subr.bf16.mxu1 %v373_v25  ;;  %v515_v24 = vunpack.c.h.s8.bf16 %v227_v14  ;;  %v517_v25 = vunpack.c.h.s8.bf16 %v229_v15 }
 0x1be   :  { %1218 = vmatpush1.bf16.msra.mxu0 %v370_v29  ;;  %1300 = vmatpush1.bf16.msra.mxu1 %v372_v30  ;;  %v514_v29 = vunpack.c.h.s8.bf16 %v226_v20  ;;  %v516_v30 = vunpack.c.h.s8.bf16 %v228_v21 }
 0x1bf   :  { %1219 = vmatprep.subr.bf16.mxu0 %v387_v28  ;;  %1301 = vmatprep.subr.bf16.mxu1 %v389_v32  ;;  %v531_v28 = vunpack.c.l.s8.bf16 %v243_v26  ;;  %v533_v32 = vunpack.c.l.s8.bf16 %v245_v27 }
 0x1c2   :  { %1220 = vmatpush1.bf16.msra.mxu0 %v386_v35  ;;  %1302 = vmatpush1.bf16.msra.mxu1 %v388_v37  ;;  %v530_v35 = vunpack.c.l.s8.bf16 %v242_v33  ;;  %v532_v37 = vunpack.c.l.s8.bf16 %v244_v34 }
 0x1c3   :  { %1221 = vmatprep.subr.bf16.mxu0 %v403_v38  ;;  %1303 = vmatprep.subr.bf16.mxu1 %v405_v39  ;;  %v547_v38 = vunpack.c.h.s8.bf16 %v243_v26  ;;  %v549_v39 = vunpack.c.h.s8.bf16 %v245_v27 }
 0x1c6   :  { %1222 = vmatpush1.bf16.msra.mxu0 %v402_v41  ;;  %1304 = vmatpush1.bf16.msra.mxu1 %v404_v42  ;;  %v546_v41 = vunpack.c.h.s8.bf16 %v242_v33  ;;  %v548_v42 = vunpack.c.h.s8.bf16 %v244_v34  ;;  %v325_v33 = vld [vmem:[#allocation5 + $0x5f8] sm:$0xff]  ;;  %v5284_v34 = vld [vmem:[#allocation8] sm:$0xff] }
 0x1c7   :  { %1223 = vmatprep.subr.bf16.mxu0 %v419_v44  ;;  %1305 = vmatprep.subr.bf16.mxu1 %v421_v45  ;;  %v563_v44 = vunpack.c.l.s8.bf16 %v259_v40  ;;  %v565_v45 = vunpack.c.l.s8.bf16 %v261_v36 }
 0x1c8   :  { %v5263_v53 = vpop.f32.mrb[0].mxu0  ;;  %v5265_v54 = vpop.f32.mrb[0].mxu1 }
 0x1c9   :  { %v5267_v56 = vpop.f32.mrb[1].mxu0  ;;  %v5269_v57 = vpop.f32.mrb[1].mxu1 }
 0x1ca   :  { %v800_v58 = vpop.f32.mrb[2].mxu0  ;;  %v882_v59 = vpop.f32.mrb[2].mxu1  ;;  %1224 = vmatpush1.bf16.msra.mxu0 %v418_v48  ;;  %1306 = vmatpush1.bf16.msra.mxu1 %v420_v49  ;;  %v562_v48 = vunpack.c.l.s8.bf16 %v258_v46  ;;  %v564_v49 = vunpack.c.l.s8.bf16 %v260_v47 }
 0x1cb   :  { %v801_v62 = vpop.f32.mrb[3].mxu0  ;;  %v883_v63 = vpop.f32.mrb[3].mxu1  ;;  %1225 = vmatprep.subr.bf16.mxu0 %v435_v50  ;;  %1307 = vmatprep.subr.bf16.mxu1 %v437_v51  ;;  %v579_v50 = vunpack.c.h.s8.bf16 %v259_v40  ;;  %v581_v51 = vunpack.c.h.s8.bf16 %v261_v36  ;;  %v578_v58 = vunpack.c.h.s8.bf16 %v258_v46  ;;  %v580_v59 = vunpack.c.h.s8.bf16 %v260_v47  ;;  %v322_v40 = vld [vmem:[#allocation5 + $0x5e0] sm:$0xff]  ;;  %v324_v36 = vld [vmem:[#allocation5 + $0x5f0] sm:$0xff] }
 0x1cc   :  { %v274_v62 = vld [vmem:[#allocation5 + $0x460] sm:$0xff]  ;;  %v276_v63 = vld [vmem:[#allocation5 + $0x470] sm:$0xff]  ;;  %v709_v47 = vunpack.c.h.s8.bf16 %v325_v33 }
 0x1ce   :  { %1226 = vmatpush1.bf16.msra.mxu0 %v434_v60  ;;  %1308 = vmatpush1.bf16.msra.mxu1 %v436_v61  ;;  %v595_v60 = vunpack.c.l.s8.bf16 %v275_v31  ;;  %v597_v61 = vunpack.c.l.s8.bf16 %v277_v52  ;;  %v708_v31 = vunpack.c.h.s8.bf16 %v324_v36 }
 0x1cf   :  { %1227 = vmatprep.subr.bf16.mxu0 %v451_v0  ;;  %1309 = vmatprep.subr.bf16.mxu1 %v453_v1  ;;  %v594_v0 = vunpack.c.l.s8.bf16 %v274_v62  ;;  %v596_v1 = vunpack.c.l.s8.bf16 %v276_v63 }
 0x1d2   :  { %1228 = vmatpush1.bf16.msra.mxu0 %v450_v4  ;;  %1310 = vmatpush1.bf16.msra.mxu1 %v452_v5  ;;  %v291_v4 = vld [vmem:[#allocation5 + $0x4e8] sm:$0xff]  ;;  %v293_v5 = vld [vmem:[#allocation5 + $0x4f8] sm:$0xff] }
 0x1d3   :  { %1229 = vmatprep.subr.bf16.mxu0 %v467_v6  ;;  %1311 = vmatprep.subr.bf16.mxu1 %v469_v7  ;;  %v610_v6 = vunpack.c.h.s8.bf16 %v274_v62  ;;  %v612_v7 = vunpack.c.h.s8.bf16 %v276_v63  ;;  %v627_v8 = vunpack.c.l.s8.bf16 %v291_v4  ;;  %v629_v9 = vunpack.c.l.s8.bf16 %v293_v5 }
 0x1d4   :  { %v645_v15 = vunpack.c.h.s8.bf16 %v293_v5 }
 0x1d6   :  { %1230 = vmatpush1.bf16.msra.mxu0 %v466_v10  ;;  %1312 = vmatpush1.bf16.msra.mxu1 %v468_v11  ;;  %v290_v10 = vld [vmem:[#allocation5 + $0x4e0] sm:$0xff]  ;;  %v292_v11 = vld [vmem:[#allocation5 + $0x4f0] sm:$0xff] }
 0x1d7   :  { %1231 = vmatprep.subr.bf16.mxu0 %v483_v12  ;;  %1313 = vmatprep.subr.bf16.mxu1 %v485_v13  ;;  %v1381_v12 = vlaneseq  ;;  %v626_v13 = vunpack.c.l.s8.bf16 %v290_v10  ;;  %v628_v14 = vunpack.c.l.s8.bf16 %v292_v11  ;;  %v644_v20 = vunpack.c.h.s8.bf16 %v292_v11 }
 0x1da   :  { %1232 = vmatpush1.bf16.msra.mxu0 %v482_v16  ;;  %1314 = vmatpush1.bf16.msra.mxu1 %v484_v17  ;;  %v5275_v16 = vshrl.u32 %v1381_v12, 7  ;;  %v307_v17 = vld [vmem:[#allocation5 + $0x568] sm:$0xff] }
 0x1db   :  { %1233 = vmatprep.subr.bf16.mxu0 %v499_v18  ;;  %1315 = vmatprep.subr.bf16.mxu1 %v501_v19  ;;  %v309_v18 = vld [vmem:[#allocation5 + $0x578] sm:$0xff]  ;;  %v642_v19 = vunpack.c.h.s8.bf16 %v290_v10  ;;  %v659_v21 = vunpack.c.l.s8.bf16 %v307_v17  ;;  %v1619_v10 = vld [vmem:[#allocation10 + $0x50] sm:$0xff] }
 0x1dc   :  { %v2139_v12 = vunpack.c.l.s8.bf16 %v1619_v10 }
 0x1de   :  { %1234 = vmatpush1.bf16.msra.mxu0 %v498_v22  ;;  %1316 = vmatpush1.bf16.msra.mxu1 %v500_v23  ;;  %v306_v22 = vld [vmem:[#allocation5 + $0x560] sm:$0xff]  ;;  %v308_v23 = vld [vmem:[#allocation5 + $0x570] sm:$0xff] }
 0x1df   :  { %1235 = vmatprep.subr.bf16.mxu0 %v515_v24  ;;  %1317 = vmatprep.subr.bf16.mxu1 %v517_v25  ;;  %v5278_v24 = vsub.s32 1, %v5275_v16  ;;  %v5280_v25 = vld [vmem:[#allocation7] sm:$0xff]  ;;  %v658_v26 = vunpack.c.l.s8.bf16 %v306_v22  ;;  %v660_v27 = vunpack.c.l.s8.bf16 %v308_v23 }
 0x1e2   :  { %1236 = vmatpush1.bf16.msra.mxu0 %v514_v29  ;;  %1318 = vmatpush1.bf16.msra.mxu1 %v516_v30  ;;  %v675_v29 = vunpack.c.h.s8.bf16 %v307_v17  ;;  %v677_v30 = vunpack.c.h.s8.bf16 %v309_v18 }
 0x1e3   :  { %1237 = vmatprep.subr.bf16.mxu0 %v531_v28  ;;  %1319 = vmatprep.subr.bf16.mxu1 %v533_v32  ;;  %v1388_v28 = vrot.slane %v5280_v25, %v5278_v24  ;;  %v323_v32 = vld [vmem:[#allocation5 + $0x5e8] sm:$0xff] }
 0x1e4   :  { %v707_v46 = vunpack.c.h.s8.bf16 %v323_v32 }
 0x1e6   :  { %1238 = vmatpush1.bf16.msra.mxu0 %v530_v35  ;;  %1320 = vmatpush1.bf16.msra.mxu1 %v532_v37  ;;  %v674_v35 = vunpack.c.h.s8.bf16 %v306_v22  ;;  %v676_v37 = vunpack.c.h.s8.bf16 %v308_v23 }
 0x1e7   :  { %1239 = vmatprep.subr.bf16.mxu0 %v547_v38  ;;  %1321 = vmatprep.subr.bf16.mxu1 %v549_v39  ;;  %v691_v38 = vunpack.c.l.s8.bf16 %v323_v32  ;;  %v693_v39 = vunpack.c.l.s8.bf16 %v325_v33 }
 0x1ea   :  { %1240 = vmatpush1.bf16.msra.mxu0 %v546_v41  ;;  %1322 = vmatpush1.bf16.msra.mxu1 %v548_v42  ;;  %v1462_v41 = vmul.f32 %v1388_v28, %v5267_v56  ;;  %v1488_v42 = vrot.slane %v5284_v34, %v5278_v24 }
 0x1eb   :  { %1241 = vmatprep.subr.bf16.mxu0 %v563_v44  ;;  %1323 = vmatprep.subr.bf16.mxu1 %v565_v45  ;;  %v690_v44 = vunpack.c.l.s8.bf16 %v322_v40  ;;  %v692_v45 = vunpack.c.l.s8.bf16 %v324_v36 }
 0x1ee   :  { %1242 = vmatpush1.bf16.msra.mxu0 %v562_v48  ;;  %1324 = vmatpush1.bf16.msra.mxu1 %v564_v49  ;;  %v1562_v48 = vadd.f32 %v1488_v42, %v1462_v41  ;;  %v1610_v49 = vld [vmem:[#allocation10 + $0x8] sm:$0xff] }
 0x1ef   :  { %1243 = vmatprep.subr.bf16.mxu0 %v579_v50  ;;  %1325 = vmatprep.subr.bf16.mxu1 %v581_v51  ;;  %v1612_v50 = vld [vmem:[#allocation10 + $0x18] sm:$0xff]  ;;  %v706_v51 = vunpack.c.h.s8.bf16 %v322_v40  ;;  %v2122_v56 = vunpack.c.l.s8.bf16 %v1610_v49  ;;  %v1635_v40 = vld [vmem:[#allocation10 + $0xd0] sm:$0xff] }
 0x1f0   :  { %v2124_v52 = vunpack.c.l.s8.bf16 %v1612_v50 }
 0x1f2   :  { %1244 = vmatpush1.bf16.msra.mxu0 %v578_v58  ;;  %1326 = vmatpush1.bf16.msra.mxu1 %v580_v59  ;;  %v1609_v58 = vld [vmem:[#allocation10] sm:$0xff]  ;;  %v1578_v59 = vmax.f32 %v1562_v48, 0.0  ;;  %v2171_v48 = vunpack.c.l.s8.bf16 %v1635_v40 }
 0x1f3   :  { %1254 = vmatprep.subr.bf16.mxu0 %v595_v60  ;;  %1336 = vmatprep.subr.bf16.mxu1 %v597_v61  ;;  %v1611_v60 = vld [vmem:[#allocation10 + $0x10] sm:$0xff]  ;;  %v2121_v61 = vunpack.c.l.s8.bf16 %v1609_v58  ;;  %v2129_v5 = vunpack.c.h.s8.bf16 %v1609_v58 }
 0x1f4   :  { %v2123_v62 = vunpack.c.l.s8.bf16 %v1611_v60  ;;  %v5289_v63 = vpack.c.bf16 %v1578_v59, %v1578_v59  ;;  %v1641_v59 = vld [vmem:[#allocation10 + $0x100] sm:$0xff] }
 0x1f5   :  { %1246 = vmatmul.mubr.bf16.vlgmr.msra.gmra.mrb[12].mxu0 %v5235_v43  ;;  %1328 = vmatmul.mubr.bf16.vlgmr.msra.gmra.mrb[12].mxu1 %v5235_v43  ;;  %v643_v43 = vunpack.c.h.s8.bf16 %v291_v4  ;;  %v1620_v4 = vld [vmem:[#allocation10 + $0x58] sm:$0xff] }
 0x1f6   :  { %1255 = vmatpush1.bf16.msra.mxu0 %v594_v0  ;;  %1337 = vmatpush1.bf16.msra.mxu1 %v596_v1  ;;  %v2130_v0 = vunpack.c.h.s8.bf16 %v1610_v49  ;;  %v2132_v1 = vunpack.c.h.s8.bf16 %v1612_v50 }
 0x1f7   :  { %1256 = vmatprep.subr.bf16.mxu0 %v611_v2  ;;  %1338 = vmatprep.subr.bf16.mxu1 %v613_v3  ;;  %v1618_v2 = vld [vmem:[#allocation10 + $0x48] sm:$0xff]  ;;  %v4869_v3 = vld [vmem:[#allocation3 + $0x8] ss:$0 sps:$4 sm:$0xff]  }
 0x1f8   :  { %1286 = vmatprep.mubr.bf16.mxu0 %v5075_v55  ;;  %1368 = vmatprep.mubr.bf16.mxu1 %v5075_v55  ;;  %v661_v55 = vunpack.c.l.s8.bf16 %v309_v18  ;;  %v2147_v18 = vunpack.c.h.s8.bf16 %v1619_v10  ;;  %v1651_v10 = vld [vmem:[#allocation10 + $0x150] sm:$0xff] }
 0x1fa   :  { %1257 = vmatpush1.bf16.msra.mxu0 %v610_v6  ;;  %1339 = vmatpush1.bf16.msra.mxu1 %v612_v7  ;;  %v2131_v6 = vunpack.c.h.s8.bf16 %v1611_v60  ;;  %v2138_v7 = vunpack.c.l.s8.bf16 %v1618_v2 }
 0x1fb   :  { %1258 = vmatprep.subr.bf16.mxu0 %v627_v8  ;;  %1340 = vmatprep.subr.bf16.mxu1 %v629_v9  ;;  %v1617_v8 = vld [vmem:[#allocation10 + $0x40] sm:$0xff]  ;;  %v2140_v9 = vunpack.c.l.s8.bf16 %v1620_v4 }
 0x1fc   :  { %v2137_v11 = vunpack.c.l.s8.bf16 %v1617_v8  ;;  %v2145_v17 = vunpack.c.h.s8.bf16 %v1617_v8  ;;  %v1649_v8 = vld [vmem:[#allocation10 + $0x140] sm:$0xff] }
 0x1fe   :  { %1259 = vmatpush1.bf16.msra.mxu0 %v626_v13  ;;  %1341 = vmatpush1.bf16.msra.mxu1 %v628_v14  ;;  %v2146_v13 = vunpack.c.h.s8.bf16 %v1618_v2  ;;  %v2148_v14 = vunpack.c.h.s8.bf16 %v1620_v4  ;;  %v1652_v4 = vld [vmem:[#allocation10 + $0x158] sm:$0xff] }
 0x1ff   :  { %1260 = vmatprep.subr.bf16.mxu0 %v643_v43  ;;  %1342 = vmatprep.subr.bf16.mxu1 %v645_v15  ;;  %v1626_v43 = vld [vmem:[#allocation10 + $0x88] sm:$0xff]  ;;  %v1628_v15 = vld [vmem:[#allocation10 + $0x98] sm:$0xff] }
 0x202   :  { %1261 = vmatpush1.bf16.msra.mxu0 %v642_v19  ;;  %1343 = vmatpush1.bf16.msra.mxu1 %v644_v20  ;;  %v2154_v19 = vunpack.c.l.s8.bf16 %v1626_v43  ;;  %v1625_v20 = vld [vmem:[#allocation10 + $0x80] sm:$0xff] }
 0x203   :  { %1262 = vmatprep.subr.bf16.mxu0 %v659_v21  ;;  %1344 = vmatprep.subr.bf16.mxu1 %v661_v55  ;;  %v2156_v21 = vunpack.c.l.s8.bf16 %v1628_v15  ;;  %v1627_v55 = vld [vmem:[#allocation10 + $0x90] sm:$0xff]  ;;  %v2153_v22 = vunpack.c.l.s8.bf16 %v1625_v20  ;;  %v2161_v28 = vunpack.c.h.s8.bf16 %v1625_v20 }
 0x204   :  { %v2155_v23 = vunpack.c.l.s8.bf16 %v1627_v55  ;;  %v2163_v32 = vunpack.c.h.s8.bf16 %v1627_v55 }
 0x206   :  { %1263 = vmatpush1.bf16.msra.mxu0 %v658_v26  ;;  %1345 = vmatpush1.bf16.msra.mxu1 %v660_v27  ;;  %v2162_v26 = vunpack.c.h.s8.bf16 %v1626_v43  ;;  %v2164_v27 = vunpack.c.h.s8.bf16 %v1628_v15  ;;  %v1658_v43 = vld [vmem:[#allocation10 + $0x188] sm:$0xff]  ;;  %v1660_v15 = vld [vmem:[#allocation10 + $0x198] sm:$0xff] }
 0x207   :  { %1264 = vmatprep.subr.bf16.mxu0 %v675_v29  ;;  %1346 = vmatprep.subr.bf16.mxu1 %v677_v30  ;;  %v1634_v29 = vld [vmem:[#allocation10 + $0xc8] sm:$0xff]  ;;  %v1636_v30 = vld [vmem:[#allocation10 + $0xd8] sm:$0xff]  ;;  %v2218_v20 = vunpack.c.l.s8.bf16 %v1658_v43  ;;  %v2220_v55 = vunpack.c.l.s8.bf16 %v1660_v15 }
 0x208   :  { %v2170_v33 = vunpack.c.l.s8.bf16 %v1634_v29  ;;  %v2178_v49 = vunpack.c.h.s8.bf16 %v1634_v29  ;;  %v2180_v50 = vunpack.c.h.s8.bf16 %v1636_v30 }
 0x20a   :  { %1265 = vmatpush1.bf16.msra.mxu0 %v674_v35  ;;  %1347 = vmatpush1.bf16.msra.mxu1 %v676_v37  ;;  %v1633_v35 = vld [vmem:[#allocation10 + $0xc0] sm:$0xff] }
 0x20b   :  { %1266 = vmatprep.subr.bf16.mxu0 %v691_v38  ;;  %1348 = vmatprep.subr.bf16.mxu1 %v693_v39  ;;  %v2172_v39 = vunpack.c.l.s8.bf16 %v1636_v30  ;;  %v2226_v30 = vunpack.c.h.s8.bf16 %v1658_v43 }
 0x20e   :  { %1267 = vmatpush1.bf16.msra.mxu0 %v690_v44  ;;  %1349 = vmatpush1.bf16.msra.mxu1 %v692_v45  ;;  %v2169_v45 = vunpack.c.l.s8.bf16 %v1633_v35 }
 0x20f   :  { %1268 = vmatprep.subr.bf16.mxu0 %v707_v46  ;;  %1350 = vmatprep.subr.bf16.mxu1 %v709_v47 }
 0x212   :  { %1269 = vmatpush1.bf16.msra.mxu0 %v706_v51  ;;  %1351 = vmatpush1.bf16.msra.mxu1 %v708_v31  ;;  %v1642_v51 = vld [vmem:[#allocation10 + $0x108] sm:$0xff]  ;;  %v1644_v31 = vld [vmem:[#allocation10 + $0x118] sm:$0xff] }
 0x213   :  { %3145 = vmatprep.subr.bf16.mxu0 %v2122_v56  ;;  %3473 = vmatprep.subr.bf16.mxu1 %v2124_v52  ;;  %v2177_v56 = vunpack.c.h.s8.bf16 %v1633_v35  ;;  %v2179_v52 = vunpack.c.h.s8.bf16 %v1635_v40  ;;  %v2186_v58 = vunpack.c.l.s8.bf16 %v1642_v51  ;;  %v2188_v60 = vunpack.c.l.s8.bf16 %v1644_v31  ;;  %v1668_v35 = vld [vmem:[#allocation10 + $0x1d8] sm:$0xff] }
 0x214   :  { %v2196_v2 = vunpack.c.h.s8.bf16 %v1644_v31 }
 0x215   :  { %1287 = vmatmul.mubr.bf16.vlgmr.msra.gmra.mrb[12].mxu0 %v4869_v3  ;;  %1369 = vmatmul.mubr.bf16.vlgmr.msra.gmra.mrb[12].mxu1 %v4869_v3  ;;  %v1650_v3 = vld [vmem:[#allocation10 + $0x148] sm:$0xff] }
 0x216   :  { %3146 = vmatpush1.bf16.msra.mxu0 %v2121_v61  ;;  %3177 = vmatprep.mubr.bf16.mxu0 %v5289_v63  ;;  %v1643_v61 = vld [vmem:[#allocation10 + $0x110] sm:$0xff] }
 0x217   :  { %3474 = vmatpush1.bf16.msra.mxu1 %v2123_v62  ;;  %3505 = vmatprep.mubr.bf16.mxu1 %v5289_v63  ;;  %v2185_v62 = vunpack.c.l.s8.bf16 %v1641_v59 }
 0x218   :  { %3147 = vmatprep.subr.bf16.mxu0 %v2130_v0  ;;  %3475 = vmatprep.subr.bf16.mxu1 %v2132_v1  ;;  %v2187_v0 = vunpack.c.l.s8.bf16 %v1643_v61  ;;  %v2194_v1 = vunpack.c.h.s8.bf16 %v1642_v51 }
 0x21a   :  { %3148 = vmatpush1.bf16.msra.mxu0 %v2129_v5  ;;  %v2193_v5 = vunpack.c.h.s8.bf16 %v1641_v59 }
 0x21b   :  { %3476 = vmatpush1.bf16.msra.mxu1 %v2131_v6  ;;  %3149 = vmatprep.subr.bf16.mxu0 %v2138_v7  ;;  %v2195_v6 = vunpack.c.h.s8.bf16 %v1643_v61  ;;  %v2202_v7 = vunpack.c.l.s8.bf16 %v1650_v3 }
 0x21c   :  { %3477 = vmatprep.subr.bf16.mxu1 %v2140_v9  ;;  %v2204_v9 = vunpack.c.l.s8.bf16 %v1652_v4 }
 0x21e   :  { %3150 = vmatpush1.bf16.msra.mxu0 %v2137_v11  ;;  %v2201_v11 = vunpack.c.l.s8.bf16 %v1649_v8 }
 0x21f   :  { %3478 = vmatpush1.bf16.msra.mxu1 %v2139_v12  ;;  %3151 = vmatprep.subr.bf16.mxu0 %v2146_v13  ;;  %v2203_v12 = vunpack.c.l.s8.bf16 %v1651_v10  ;;  %v2210_v13 = vunpack.c.h.s8.bf16 %v1650_v3  ;;  %v1675_v3 = vld [vmem:[#allocation10 + $0x210] sm:$0xff] }
 0x220   :  { %3479 = vmatprep.subr.bf16.mxu1 %v2148_v14  ;;  %v2212_v14 = vunpack.c.h.s8.bf16 %v1652_v4 }
 0x222   :  { %3152 = vmatpush1.bf16.msra.mxu0 %v2145_v17  ;;  %v2209_v17 = vunpack.c.h.s8.bf16 %v1649_v8 }
 0x223   :  { %3480 = vmatpush1.bf16.msra.mxu1 %v2147_v18  ;;  %3153 = vmatprep.subr.bf16.mxu0 %v2154_v19  ;;  %v5302_v18 = vsub.s32 0, %v5275_v16  ;;  %v2211_v19 = vunpack.c.h.s8.bf16 %v1651_v10 }
 0x224   :  { %3481 = vmatprep.subr.bf16.mxu1 %v2156_v21  ;;  %v1657_v21 = vld [vmem:[#allocation10 + $0x180] sm:$0xff] }
 0x226   :  { %3154 = vmatpush1.bf16.msra.mxu0 %v2153_v22  ;;  %v1659_v22 = vld [vmem:[#allocation10 + $0x190] sm:$0xff] }
 0x227   :  { %3482 = vmatpush1.bf16.msra.mxu1 %v2155_v23  ;;  %3155 = vmatprep.subr.bf16.mxu0 %v2162_v26  ;;  %v5305_v23 = vsub.s32 3, %v5275_v16  ;;  %v2217_v26 = vunpack.c.l.s8.bf16 %v1657_v21  ;;  %v2219_v29 = vunpack.c.l.s8.bf16 %v1659_v22 }
 0x228   :  { %v5293_v37 = vpop.f32.mrb[4].mxu0  ;;  %v5295_v38 = vpop.f32.mrb[4].mxu1  ;;  %3483 = vmatprep.subr.bf16.mxu1 %v2164_v27  ;;  %v1384_v27 = vrot.slane %v5280_v25, %v5302_v18 }
 0x229   :  { %v5297_v36 = vpop.f32.mrb[5].mxu0  ;;  %v5299_v41 = vpop.f32.mrb[5].mxu1 }
 0x22a   :  { %v964_v42 = vpop.f32.mrb[6].mxu0  ;;  %v1046_v44 = vpop.f32.mrb[6].mxu1  ;;  %3156 = vmatpush1.bf16.msra.mxu0 %v2161_v28  ;;  %v2228_v28 = vunpack.c.h.s8.bf16 %v1660_v15  ;;  %v1461_v40 = vmul.f32 %v1384_v27, %v5263_v53  ;;  %v1681_v15 = vld [vmem:[#allocation10 + $0x240] sm:$0xff]  ;;  %v1692_v27 = vld [vmem:[#allocation10 + $0x298] sm:$0xff] }
 0x22b   :  { %3484 = vmatpush1.bf16.msra.mxu1 %v2163_v32  ;;  %v965_v46 = vpop.f32.mrb[7].mxu0  ;;  %v1047_v47 = vpop.f32.mrb[7].mxu1  ;;  %3157 = vmatprep.subr.bf16.mxu0 %v2170_v33  ;;  %v1666_v32 = vld [vmem:[#allocation10 + $0x1c8] sm:$0xff]  ;;  %v1396_v33 = vrot.slane %v5280_v25, %v5305_v23  ;;  %v1484_v42 = vrot.slane %v5284_v34, %v5302_v18  ;;  %v2227_v44 = vunpack.c.h.s8.bf16 %v1659_v22 }
 0x22c   :  { %3485 = vmatprep.subr.bf16.mxu1 %v2172_v39  ;;  %v2225_v39 = vunpack.c.h.s8.bf16 %v1657_v21  ;;  %v1665_v46 = vld [vmem:[#allocation10 + $0x1c0] sm:$0xff]  ;;  %v2236_v47 = vunpack.c.l.s8.bf16 %v1668_v35 }
 0x22d   :  { %v2233_v51 = vunpack.c.l.s8.bf16 %v1665_v46  ;;  %v1561_v31 = vadd.f32 %v1484_v42, %v1461_v40  ;;  %v2241_v61 = vunpack.c.h.s8.bf16 %v1665_v46  ;;  %v1700_v46 = vld [vmem:[#allocation10 + $0x2d8] sm:$0xff] }
 0x22e   :  { %3158 = vmatpush1.bf16.msra.mxu0 %v2169_v45  ;;  %v2234_v45 = vunpack.c.l.s8.bf16 %v1666_v32 }
 0x22f   :  { %3486 = vmatpush1.bf16.msra.mxu1 %v2171_v48  ;;  %3159 = vmatprep.subr.bf16.mxu0 %v2178_v49  ;;  %v1667_v48 = vld [vmem:[#allocation10 + $0x1d0] sm:$0xff]  ;;  %v1464_v49 = vmul.f32 %v1396_v33, %v5269_v57  ;;  %v2284_v33 = vunpack.c.l.s8.bf16 %v1692_v27 }
 0x230   :  { %3487 = vmatprep.subr.bf16.mxu1 %v2180_v50  ;;  %v1496_v50 = vrot.slane %v5284_v34, %v5305_v23  ;;  %v2235_v53 = vunpack.c.l.s8.bf16 %v1667_v48  ;;  %v2243_v57 = vunpack.c.h.s8.bf16 %v1667_v48 }
 0x232   :  { %3160 = vmatpush1.bf16.msra.mxu0 %v2177_v56  ;;  %v2242_v56 = vunpack.c.h.s8.bf16 %v1666_v32  ;;  %v1564_v59 = vadd.f32 %v1496_v50, %v1464_v49  ;;  %v1689_v32 = vld [vmem:[#allocation10 + $0x280] sm:$0xff] }
 0x233   :  { %3488 = vmatpush1.bf16.msra.mxu1 %v2179_v52  ;;  %3161 = vmatprep.subr.bf16.mxu0 %v2186_v58  ;;  %v2244_v52 = vunpack.c.h.s8.bf16 %v1668_v35  ;;  %v1674_v58 = vld [vmem:[#allocation10 + $0x208] sm:$0xff]  ;;  %v1691_v35 = vld [vmem:[#allocation10 + $0x290] sm:$0xff]  ;;  %v1697_v50 = vld [vmem:[#allocation10 + $0x2c0] sm:$0xff] }
 0x234   :  { %3489 = vmatprep.subr.bf16.mxu1 %v2188_v60  ;;  %v1676_v60 = vld [vmem:[#allocation10 + $0x218] sm:$0xff]  ;;  %v1580_v4 = vmax.f32 %v1564_v59, 0.0  ;;  %v2258_v8 = vunpack.c.h.s8.bf16 %v1674_v58  ;;  %v2283_v40 = vunpack.c.l.s8.bf16 %v1691_v35  ;;  %v2291_v48 = vunpack.c.h.s8.bf16 %v1691_v35  ;;  %v1706_v59 = vld [vmem:[#allocation10 + $0x308] sm:$0xff] }
 0x235   :  { %v5329_v35 = vsub.s32 5, %v5275_v16 }
 0x236   :  { %3162 = vmatpush1.bf16.msra.mxu0 %v2185_v62  ;;  %v1577_v62 = vmax.f32 %v1561_v31, 0.0  ;;  %v5319_v10 = vpack.c.bf16 %v1580_v4, %v1580_v4  ;;  %v1699_v31 = vld [vmem:[#allocation10 + $0x2d0] sm:$0xff] }
 0x237   :  { %3490 = vmatpush1.bf16.msra.mxu1 %v2187_v0  ;;  %3163 = vmatprep.subr.bf16.mxu0 %v2194_v1  ;;  %v2250_v0 = vunpack.c.l.s8.bf16 %v1674_v58  ;;  %v1673_v1 = vld [vmem:[#allocation10 + $0x200] sm:$0xff]  ;;  %v2308_v58 = vunpack.c.h.s8.bf16 %v1700_v46 }
 0x238   :  { %3491 = vmatprep.subr.bf16.mxu1 %v2196_v2  ;;  %v2252_v2 = vunpack.c.l.s8.bf16 %v1676_v60 }
 0x23a   :  { %3164 = vmatpush1.bf16.msra.mxu0 %v2193_v5  ;;  %v2249_v5 = vunpack.c.l.s8.bf16 %v1673_v1 }
 0x23b   :  { %3492 = vmatpush1.bf16.msra.mxu1 %v2195_v6  ;;  %3165 = vmatprep.subr.bf16.mxu0 %v2202_v7  ;;  %v5317_v6 = vpack.c.bf16 %v1577_v62, %v1577_v62  ;;  %v2251_v7 = vunpack.c.l.s8.bf16 %v1675_v3  ;;  %v2307_v62 = vunpack.c.h.s8.bf16 %v1699_v31 }
 0x23c   :  { %3493 = vmatprep.subr.bf16.mxu1 %v2204_v9  ;;  %v1682_v9 = vld [vmem:[#allocation10 + $0x248] sm:$0xff] }
 0x23d   :  { %v2266_v43 = vunpack.c.l.s8.bf16 %v1682_v9 }
 0x23e   :  { %3166 = vmatpush1.bf16.msra.mxu0 %v2201_v11  ;;  %v2260_v11 = vunpack.c.h.s8.bf16 %v1676_v60  ;;  %v1708_v60 = vld [vmem:[#allocation10 + $0x318] sm:$0xff] }
 0x23f   :  { %3494 = vmatpush1.bf16.msra.mxu1 %v2203_v12  ;;  %3167 = vmatprep.subr.bf16.mxu0 %v2210_v13  ;;  %v1684_v12 = vld [vmem:[#allocation10 + $0x258] sm:$0xff]  ;;  %v2257_v13 = vunpack.c.h.s8.bf16 %v1673_v1  ;;  %v2316_v1 = vunpack.c.l.s8.bf16 %v1708_v60 }
 0x240   :  { %3495 = vmatprep.subr.bf16.mxu1 %v2212_v14  ;;  %v2259_v14 = vunpack.c.h.s8.bf16 %v1675_v3  ;;  %v2276_v22 = vunpack.c.h.s8.bf16 %v1684_v12 }
 0x242   :  { %3168 = vmatpush1.bf16.msra.mxu0 %v2209_v17  ;;  %v2268_v17 = vunpack.c.l.s8.bf16 %v1684_v12 }
 0x243   :  { %3496 = vmatpush1.bf16.msra.mxu1 %v2211_v19  ;;  %3169 = vmatprep.subr.bf16.mxu0 %v2218_v20  ;;  %v1683_v19 = vld [vmem:[#allocation10 + $0x250] sm:$0xff]  ;;  %v2265_v20 = vunpack.c.l.s8.bf16 %v1681_v15 }
 0x244   :  { %3497 = vmatprep.subr.bf16.mxu1 %v2220_v55  ;;  %v2267_v21 = vunpack.c.l.s8.bf16 %v1683_v19  ;;  %v2274_v55 = vunpack.c.h.s8.bf16 %v1682_v9  ;;  %v1716_v9 = vld [vmem:[#allocation10 + $0x358] sm:$0xff] }
 0x246   :  { %3170 = vmatpush1.bf16.msra.mxu0 %v2217_v26  ;;  %v1690_v26 = vld [vmem:[#allocation10 + $0x288] sm:$0xff] }
 0x247   :  { %3498 = vmatpush1.bf16.msra.mxu1 %v2219_v29  ;;  %3171 = vmatprep.subr.bf16.mxu0 %v2226_v30  ;;  %v2273_v29 = vunpack.c.h.s8.bf16 %v1681_v15  ;;  %v2275_v30 = vunpack.c.h.s8.bf16 %v1683_v19  ;;  %v2290_v42 = vunpack.c.h.s8.bf16 %v1690_v26  ;;  %v1715_v15 = vld [vmem:[#allocation10 + $0x350] sm:$0xff] }
 0x248   :  { %3499 = vmatprep.subr.bf16.mxu1 %v2228_v28  ;;  %v2282_v28 = vunpack.c.l.s8.bf16 %v1690_v26  ;;  %v2331_v19 = vunpack.c.l.s8.bf16 %v1715_v15 }
 0x24a   :  { %3172 = vmatpush1.bf16.msra.mxu0 %v2225_v39  ;;  %v2281_v39 = vunpack.c.l.s8.bf16 %v1689_v32 }
 0x24b   :  { %3500 = vmatpush1.bf16.msra.mxu1 %v2227_v44  ;;  %3173 = vmatprep.subr.bf16.mxu0 %v2234_v45  ;;  %v2292_v44 = vunpack.c.h.s8.bf16 %v1692_v27  ;;  %v1698_v45 = vld [vmem:[#allocation10 + $0x2c8] sm:$0xff]  ;;  %v5326_v27 = vsub.s32 2, %v5275_v16 }
 0x24c   :  { %3501 = vmatprep.subr.bf16.mxu1 %v2236_v47  ;;  %v2289_v47 = vunpack.c.h.s8.bf16 %v1689_v32  ;;  %v2298_v49 = vunpack.c.l.s8.bf16 %v1698_v45 }
 0x24e   :  { %3174 = vmatpush1.bf16.msra.mxu0 %v2233_v51  ;;  %v2300_v51 = vunpack.c.l.s8.bf16 %v1700_v46  ;;  %v1730_v46 = vld [vmem:[#allocation10 + $0x3c8] sm:$0xff] }
 0x24f   :  { %3502 = vmatpush1.bf16.msra.mxu1 %v2235_v53  ;;  %3175 = vmatprep.subr.bf16.mxu0 %v2242_v56  ;;  %v2297_v53 = vunpack.c.l.s8.bf16 %v1697_v50  ;;  %v2299_v56 = vunpack.c.l.s8.bf16 %v1699_v31 }
 0x250   :  { %3503 = vmatprep.subr.bf16.mxu1 %v2244_v52  ;;  %v2306_v52 = vunpack.c.h.s8.bf16 %v1698_v45 }
 0x252   :  { %3176 = vmatpush1.bf16.msra.mxu0 %v2241_v61  ;;  %v2305_v61 = vunpack.c.h.s8.bf16 %v1697_v50 }
 0x253   :  { %3504 = vmatpush1.bf16.msra.mxu1 %v2243_v57  ;;  %3186 = vmatprep.subr.bf16.mxu0 %v2250_v0  ;;  %v2314_v57 = vunpack.c.l.s8.bf16 %v1706_v59  ;;  %v1705_v0 = vld [vmem:[#allocation10 + $0x300] sm:$0xff] }
 0x254   :  { %3514 = vmatprep.subr.bf16.mxu1 %v2252_v2  ;;  %v1707_v2 = vld [vmem:[#allocation10 + $0x310] sm:$0xff]  ;;  %v2313_v3 = vunpack.c.l.s8.bf16 %v1705_v0 }
 0x255   :  { %3178 = vmatmul.mubr.bf16.vlgmr.msra.gmra.mrb[16].mxu0 %v5317_v6  ;;  %v2315_v4 = vunpack.c.l.s8.bf16 %v1707_v2  ;;  %v2323_v12 = vunpack.c.h.s8.bf16 %v1707_v2 }
 0x256   :  { %3506 = vmatmul.mubr.bf16.vlgmr.msra.gmra.mrb[16].mxu1 %v5317_v6  ;;  %3187 = vmatpush1.bf16.msra.mxu0 %v2249_v5  ;;  %v2322_v5 = vunpack.c.h.s8.bf16 %v1706_v59 }
 0x257   :  { %3218 = vmatprep.mubr.bf16.mxu0 %v5319_v10  ;;  %3515 = vmatpush1.bf16.msra.mxu1 %v2251_v7  ;;  %v2324_v7 = vunpack.c.h.s8.bf16 %v1708_v60 }
 0x258   :  { %3546 = vmatprep.mubr.bf16.mxu1 %v5319_v10  ;;  %3188 = vmatprep.subr.bf16.mxu0 %v2258_v8  ;;  %v1714_v8 = vld [vmem:[#allocation10 + $0x348] sm:$0xff] }
 0x259   :  { %3516 = vmatprep.subr.bf16.mxu1 %v2260_v11  ;;  %v2321_v11 = vunpack.c.h.s8.bf16 %v1705_v0 }
 0x25a   :  { %3189 = vmatpush1.bf16.msra.mxu0 %v2257_v13  ;;  %v2330_v13 = vunpack.c.l.s8.bf16 %v1714_v8 }
 0x25b   :  { %3517 = vmatpush1.bf16.msra.mxu1 %v2259_v14  ;;  %3190 = vmatprep.subr.bf16.mxu0 %v2266_v43  ;;  %v1713_v14 = vld [vmem:[#allocation10 + $0x340] sm:$0xff]  ;;  %v2332_v43 = vunpack.c.l.s8.bf16 %v1716_v9 }
 0x25c   :  { %3518 = vmatprep.subr.bf16.mxu1 %v2268_v17  ;;  %v2329_v17 = vunpack.c.l.s8.bf16 %v1713_v14  ;;  %v2337_v26 = vunpack.c.h.s8.bf16 %v1713_v14 }
 0x25e   :  { %3191 = vmatpush1.bf16.msra.mxu0 %v2265_v20  ;;  %v2338_v20 = vunpack.c.h.s8.bf16 %v1714_v8  ;;  %v1738_v8 = vld [vmem:[#allocation10 + $0x408] sm:$0xff] }
 0x25f   :  { %3519 = vmatpush1.bf16.msra.mxu1 %v2267_v21  ;;  %3192 = vmatprep.subr.bf16.mxu0 %v2274_v55  ;;  %v2340_v21 = vunpack.c.h.s8.bf16 %v1716_v9  ;;  %v1722_v55 = vld [vmem:[#allocation10 + $0x388] sm:$0xff]  ;;  %v2378_v14 = vunpack.c.l.s8.bf16 %v1738_v8 }
 0x260   :  { %3520 = vmatprep.subr.bf16.mxu1 %v2276_v22  ;;  %v1724_v22 = vld [vmem:[#allocation10 + $0x398] sm:$0xff] }
 0x261   :  { %v2348_v32 = vunpack.c.l.s8.bf16 %v1724_v22  ;;  %v2356_v45 = vunpack.c.h.s8.bf16 %v1724_v22  ;;  %v2386_v22 = vunpack.c.h.s8.bf16 %v1738_v8  ;;  %v1763_v8 = vld [vmem:[#allocation10 + $0x4d0] sm:$0xff] }
 0x262   :  { %3193 = vmatpush1.bf16.msra.mxu0 %v2273_v29  ;;  %v2339_v29 = vunpack.c.h.s8.bf16 %v1715_v15 }
 0x263   :  { %3521 = vmatpush1.bf16.msra.mxu1 %v2275_v30  ;;  %3194 = vmatprep.subr.bf16.mxu0 %v2282_v28  ;;  %v2346_v30 = vunpack.c.l.s8.bf16 %v1722_v55  ;;  %v1721_v28 = vld [vmem:[#allocation10 + $0x380] sm:$0xff] }
 0x264   :  { %3522 = vmatprep.subr.bf16.mxu1 %v2284_v33  ;;  %v1723_v33 = vld [vmem:[#allocation10 + $0x390] sm:$0xff] }
 0x265   :  { %v2355_v31 = vunpack.c.h.s8.bf16 %v1723_v33 }
 0x266   :  { %3195 = vmatpush1.bf16.msra.mxu0 %v2281_v39  ;;  %v2345_v39 = vunpack.c.l.s8.bf16 %v1721_v28 }
 0x267   :  { %3523 = vmatpush1.bf16.msra.mxu1 %v2283_v40  ;;  %3196 = vmatprep.subr.bf16.mxu0 %v2290_v42  ;;  %v1392_v40 = vrot.slane %v5280_v25, %v5326_v27  ;;  %v2347_v42 = vunpack.c.l.s8.bf16 %v1723_v33 }
 0x268   :  { %3524 = vmatprep.subr.bf16.mxu1 %v2292_v44  ;;  %v2354_v44 = vunpack.c.h.s8.bf16 %v1722_v55 }
 0x269   :  { %v1463_v50 = vmul.f32 %v1392_v40, %v5265_v54  ;;  %v1504_v54 = vrot.slane %v5284_v34, %v5329_v35  ;;  %v1745_v40 = vld [vmem:[#allocation10 + $0x440] sm:$0xff] }
 0x26a   :  { %3197 = vmatpush1.bf16.msra.mxu0 %v2289_v47  ;;  %v1404_v47 = vrot.slane %v5280_v25, %v5329_v35  ;;  %v1731_v25 = vld [vmem:[#allocation10 + $0x3d0] sm:$0xff] }
 0x26b   :  { %3525 = vmatpush1.bf16.msra.mxu1 %v2291_v48  ;;  %3198 = vmatprep.subr.bf16.mxu0 %v2298_v49  ;;  %v1732_v48 = vld [vmem:[#allocation10 + $0x3d8] sm:$0xff]  ;;  %v2353_v49 = vunpack.c.h.s8.bf16 %v1721_v28 }
 0x26c   :  { %3526 = vmatprep.subr.bf16.mxu1 %v2300_v51  ;;  %v1492_v51 = vrot.slane %v5284_v34, %v5326_v27  ;;  %v2364_v59 = vunpack.c.l.s8.bf16 %v1732_v48  ;;  %v1466_v60 = vmul.f32 %v1404_v47, %v5297_v36  ;;  %v2372_v36 = vunpack.c.h.s8.bf16 %v1732_v48  ;;  %v1740_v34 = vld [vmem:[#allocation10 + $0x418] sm:$0xff] }
 0x26d   :  { %v2380_v15 = vunpack.c.l.s8.bf16 %v1740_v34  ;;  %v1748_v28 = vld [vmem:[#allocation10 + $0x458] sm:$0xff] }
 0x26e   :  { %3199 = vmatpush1.bf16.msra.mxu0 %v2297_v53  ;;  %v2362_v53 = vunpack.c.l.s8.bf16 %v1730_v46  ;;  %v1563_v2 = vadd.f32 %v1492_v51, %v1463_v50  ;;  %v1566_v9 = vadd.f32 %v1504_v54, %v1466_v60  ;;  %v2404_v48 = vunpack.c.h.s8.bf16 %v1748_v28  ;;  %v1756_v50 = vld [vmem:[#allocation10 + $0x498] sm:$0xff] }
 0x26f   :  { %3527 = vmatpush1.bf16.msra.mxu1 %v2299_v56  ;;  %3200 = vmatprep.subr.bf16.mxu0 %v2306_v52  ;;  %v1729_v56 = vld [vmem:[#allocation10 + $0x3c0] sm:$0xff]  ;;  %v2401_v51 = vunpack.c.h.s8.bf16 %v1745_v40 }
 0x270   :  { %3528 = vmatprep.subr.bf16.mxu1 %v2308_v58 }
 0x272   :  { %3201 = vmatpush1.bf16.msra.mxu0 %v2305_v61 }
 0x273   :  { %3529 = vmatpush1.bf16.msra.mxu1 %v2307_v62  ;;  %3202 = vmatprep.subr.bf16.mxu0 %v2314_v57 }
 0x274   :  { %3530 = vmatprep.subr.bf16.mxu1 %v2316_v1  ;;  %v2361_v1 = vunpack.c.l.s8.bf16 %v1729_v56 }
 0x276   :  { %3203 = vmatpush1.bf16.msra.mxu0 %v2313_v3 }
 0x277   :  { %3531 = vmatpush1.bf16.msra.mxu1 %v2315_v4  ;;  %3204 = vmatprep.subr.bf16.mxu0 %v2322_v5  ;;  %v2363_v5 = vunpack.c.l.s8.bf16 %v1731_v25 }
 0x278   :  { %3532 = vmatprep.subr.bf16.mxu1 %v2324_v7  ;;  %v2370_v7 = vunpack.c.h.s8.bf16 %v1730_v46 }
 0x27a   :  { %3205 = vmatpush1.bf16.msra.mxu0 %v2321_v11  ;;  %v2369_v11 = vunpack.c.h.s8.bf16 %v1729_v56  ;;  %v1753_v56 = vld [vmem:[#allocation10 + $0x480] sm:$0xff] }
 0x27b   :  { %3533 = vmatpush1.bf16.msra.mxu1 %v2323_v12  ;;  %3206 = vmatprep.subr.bf16.mxu0 %v2330_v13  ;;  %v1579_v12 = vmax.f32 %v1563_v2, 0.0  ;;  %v2371_v13 = vunpack.c.h.s8.bf16 %v1731_v25  ;;  %v1755_v25 = vld [vmem:[#allocation10 + $0x490] sm:$0xff]  ;;  %v2409_v60 = vunpack.c.l.s8.bf16 %v1753_v56  ;;  %v1764_v2 = vld [vmem:[#allocation10 + $0x4d8] sm:$0xff] }
 0x27c   :  { %3534 = vmatprep.subr.bf16.mxu1 %v2332_v43  ;;  %v1737_v43 = vld [vmem:[#allocation10 + $0x400] sm:$0xff]  ;;  %v2411_v54 = vunpack.c.l.s8.bf16 %v1755_v25 }
 0x27e   :  { %3207 = vmatpush1.bf16.msra.mxu0 %v2329_v17  ;;  %v1739_v17 = vld [vmem:[#allocation10 + $0x410] sm:$0xff] }
 0x27f   :  { %3535 = vmatpush1.bf16.msra.mxu1 %v2331_v19  ;;  %3208 = vmatprep.subr.bf16.mxu0 %v2338_v20  ;;  %v1582_v19 = vmax.f32 %v1566_v9, 0.0  ;;  %v2377_v20 = vunpack.c.l.s8.bf16 %v1737_v43  ;;  %v2379_v55 = vunpack.c.l.s8.bf16 %v1739_v17  ;;  %v2387_v33 = vunpack.c.h.s8.bf16 %v1739_v17 }
 0x280   :  { %3536 = vmatprep.subr.bf16.mxu1 %v2340_v21  ;;  %v5349_v21 = vpack.c.bf16 %v1579_v12, %v1579_v12  ;;  %v2436_v12 = vunpack.c.h.s8.bf16 %v1764_v2 }
 0x282   :  { %3209 = vmatpush1.bf16.msra.mxu0 %v2337_v26  ;;  %v1746_v26 = vld [vmem:[#allocation10 + $0x448] sm:$0xff] }
 0x283   :  { %3537 = vmatpush1.bf16.msra.mxu1 %v2339_v29  ;;  %3210 = vmatprep.subr.bf16.mxu0 %v2346_v30  ;;  %v5351_v29 = vpack.c.bf16 %v1582_v19, %v1582_v19  ;;  %v2388_v30 = vunpack.c.h.s8.bf16 %v1740_v34  ;;  %v2402_v47 = vunpack.c.h.s8.bf16 %v1746_v26  ;;  %v2427_v34 = vunpack.c.l.s8.bf16 %v1763_v8  ;;  %v1769_v19 = vld [vmem:[#allocation10 + $0x500] sm:$0xff] }
 0x284   :  { %3538 = vmatprep.subr.bf16.mxu1 %v2348_v32  ;;  %v2385_v32 = vunpack.c.h.s8.bf16 %v1737_v43 }
 0x286   :  { %3211 = vmatpush1.bf16.msra.mxu0 %v2345_v39  ;;  %v2394_v39 = vunpack.c.l.s8.bf16 %v1746_v26 }
 0x287   :  { %3539 = vmatpush1.bf16.msra.mxu1 %v2347_v42  ;;  %3212 = vmatprep.subr.bf16.mxu0 %v2354_v44  ;;  %v2396_v42 = vunpack.c.l.s8.bf16 %v1748_v28  ;;  %v1747_v44 = vld [vmem:[#allocation10 + $0x450] sm:$0xff] }
 0x288   :  { %v5338_v52 = vpop.f32.mrb[8].mxu0  ;;  %v5340_v58 = vpop.f32.mrb[8].mxu1  ;;  %3540 = vmatprep.subr.bf16.mxu1 %v2356_v45  ;;  %v2393_v45 = vunpack.c.l.s8.bf16 %v1745_v40  ;;  %v2395_v46 = vunpack.c.l.s8.bf16 %v1747_v44 }
 0x289   :  { %v5345_v61 = vpop.f32.mrb[9].mxu0  ;;  %v5347_v62 = vpop.f32.mrb[9].mxu1 }
 0x28a   :  { %v1128_v57 = vpop.f32.mrb[10].mxu0  ;;  %v1210_v0 = vpop.f32.mrb[10].mxu1  ;;  %3213 = vmatpush1.bf16.msra.mxu0 %v2353_v49  ;;  %v1754_v49 = vld [vmem:[#allocation10 + $0x488] sm:$0xff] }
 0x28b   :  { %3541 = vmatpush1.bf16.msra.mxu1 %v2355_v31  ;;  %v1129_v3 = vpop.f32.mrb[11].mxu0  ;;  %v1211_v4 = vpop.f32.mrb[11].mxu1  ;;  %3214 = vmatprep.subr.bf16.mxu0 %v2362_v53  ;;  %v2403_v31 = vunpack.c.h.s8.bf16 %v1747_v44  ;;  %v2410_v53 = vunpack.c.l.s8.bf16 %v1754_v49  ;;  %v2418_v57 = vunpack.c.h.s8.bf16 %v1754_v49  ;;  %v2420_v0 = vunpack.c.h.s8.bf16 %v1756_v50  ;;  %v1777_v44 = vld [vmem:[#allocation10 + $0x540] sm:$0xff] }
 0x28c   :  { %3542 = vmatprep.subr.bf16.mxu1 %v2364_v59  ;;  %v2412_v59 = vunpack.c.l.s8.bf16 %v1756_v50  ;;  %v2417_v3 = vunpack.c.h.s8.bf16 %v1753_v56  ;;  %v2419_v4 = vunpack.c.h.s8.bf16 %v1755_v25  ;;  %v5358_v56 = vsub.s32 4, %v5275_v16 }
 0x28e   :  { %3215 = vmatpush1.bf16.msra.mxu0 %v2361_v1  ;;  %v1762_v1 = vld [vmem:[#allocation10 + $0x4c8] sm:$0xff] }
 0x28f   :  { %3543 = vmatpush1.bf16.msra.mxu1 %v2363_v5  ;;  %3216 = vmatprep.subr.bf16.mxu0 %v2370_v7  ;;  %v2426_v5 = vunpack.c.l.s8.bf16 %v1762_v1  ;;  %v1761_v7 = vld [vmem:[#allocation10 + $0x4c0] sm:$0xff] }
 0x290   :  { %3544 = vmatprep.subr.bf16.mxu1 %v2372_v36  ;;  %v2428_v36 = vunpack.c.l.s8.bf16 %v1764_v2  ;;  %v2425_v9 = vunpack.c.l.s8.bf16 %v1761_v7  ;;  %v2433_v43 = vunpack.c.h.s8.bf16 %v1761_v7  ;;  %v5363_v2 = vld [vmem:[#allocation7] sm:$0xff] }
 0x292   :  { %3217 = vmatpush1.bf16.msra.mxu0 %v2369_v11  ;;  %v2434_v11 = vunpack.c.h.s8.bf16 %v1762_v1 }
 0x293   :  { %3545 = vmatpush1.bf16.msra.mxu1 %v2371_v13  ;;  %3227 = vmatprep.subr.bf16.mxu0 %v2378_v14  ;;  %v1770_v13 = vld [vmem:[#allocation10 + $0x508] sm:$0xff]  ;;  %v1772_v14 = vld [vmem:[#allocation10 + $0x518] sm:$0xff] }
 0x294   :  { %3555 = vmatprep.subr.bf16.mxu1 %v2380_v15  ;;  %v2435_v15 = vunpack.c.h.s8.bf16 %v1763_v8  ;;  %v2442_v17 = vunpack.c.l.s8.bf16 %v1770_v13  ;;  %v2452_v28 = vunpack.c.h.s8.bf16 %v1772_v14 }
 0x295   :  { %3219 = vmatmul.mubr.bf16.vlgmr.msra.gmra.mrb[16].mxu0 %v5349_v21 }
 0x296   :  { %3547 = vmatmul.mubr.bf16.vlgmr.msra.gmra.mrb[16].mxu1 %v5349_v21  ;;  %3228 = vmatpush1.bf16.msra.mxu0 %v2377_v20  ;;  %v2444_v20 = vunpack.c.l.s8.bf16 %v1772_v14 }
 0x297   :  { %3259 = vmatprep.mubr.bf16.mxu0 %v5351_v29  ;;  %3556 = vmatpush1.bf16.msra.mxu1 %v2379_v55  ;;  %v1771_v55 = vld [vmem:[#allocation10 + $0x510] sm:$0xff] }
 0x298   :  { %3587 = vmatprep.mubr.bf16.mxu1 %v5351_v29  ;;  %3229 = vmatprep.subr.bf16.mxu0 %v2386_v22  ;;  %v2441_v22 = vunpack.c.l.s8.bf16 %v1769_v19  ;;  %v2443_v26 = vunpack.c.l.s8.bf16 %v1771_v55  ;;  %v2451_v40 = vunpack.c.h.s8.bf16 %v1771_v55 }
 0x299   :  { %3557 = vmatprep.subr.bf16.mxu1 %v2388_v30  ;;  %v2450_v30 = vunpack.c.h.s8.bf16 %v1770_v13 }
 0x29a   :  { %3230 = vmatpush1.bf16.msra.mxu0 %v2385_v32  ;;  %v1778_v32 = vld [vmem:[#allocation10 + $0x548] sm:$0xff] }
 0x29b   :  { %3558 = vmatpush1.bf16.msra.mxu1 %v2387_v33  ;;  %3231 = vmatprep.subr.bf16.mxu0 %v2394_v39  ;;  %v1780_v33 = vld [vmem:[#allocation10 + $0x558] sm:$0xff]  ;;  %v2449_v39 = vunpack.c.h.s8.bf16 %v1769_v19  ;;  %v2466_v49 = vunpack.c.h.s8.bf16 %v1778_v32  ;;  %v1795_v19 = vld [vmem:[#allocation10 + $0x5d0] sm:$0xff] }
 0x29c   :  { %3559 = vmatprep.subr.bf16.mxu1 %v2396_v42  ;;  %v2458_v42 = vunpack.c.l.s8.bf16 %v1778_v32  ;;  %v2468_v50 = vunpack.c.h.s8.bf16 %v1780_v33  ;;  %v1802_v32 = vld [vmem:[#allocation10 + $0x608] sm:$0xff] }
 0x29e   :  { %3232 = vmatpush1.bf16.msra.mxu0 %v2393_v45  ;;  %v2460_v45 = vunpack.c.l.s8.bf16 %v1780_v33 }
 0x29f   :  { %3560 = vmatpush1.bf16.msra.mxu1 %v2395_v46  ;;  %3233 = vmatprep.subr.bf16.mxu0 %v2402_v47  ;;  %v1779_v46 = vld [vmem:[#allocation10 + $0x550] sm:$0xff]  ;;  %v2457_v47 = vunpack.c.l.s8.bf16 %v1777_v44 }
 0x2a0   :  { %3561 = vmatprep.subr.bf16.mxu1 %v2404_v48  ;;  %v2459_v48 = vunpack.c.l.s8.bf16 %v1779_v46 }
 0x2a2   :  { %3234 = vmatpush1.bf16.msra.mxu0 %v2401_v51  ;;  %v1786_v51 = vld [vmem:[#allocation10 + $0x588] sm:$0xff] }
 0x2a3   :  { %3562 = vmatpush1.bf16.msra.mxu1 %v2403_v31  ;;  %3235 = vmatprep.subr.bf16.mxu0 %v2410_v53  ;;  %v1788_v31 = vld [vmem:[#allocation10 + $0x598] sm:$0xff]  ;;  %v2465_v53 = vunpack.c.h.s8.bf16 %v1777_v44  ;;  %v2474_v25 = vunpack.c.l.s8.bf16 %v1786_v51  ;;  %v2506_v44 = vunpack.c.l.s8.bf16 %v1802_v32 }
 0x2a4   :  { %3563 = vmatprep.subr.bf16.mxu1 %v2412_v59  ;;  %v2467_v59 = vunpack.c.h.s8.bf16 %v1779_v46  ;;  %v2484_v7 = vunpack.c.h.s8.bf16 %v1788_v31 }
 0x2a6   :  { %3236 = vmatpush1.bf16.msra.mxu0 %v2409_v60  ;;  %v1785_v60 = vld [vmem:[#allocation10 + $0x580] sm:$0xff] }
 0x2a7   :  { %3564 = vmatpush1.bf16.msra.mxu1 %v2411_v54  ;;  %3237 = vmatprep.subr.bf16.mxu0 %v2418_v57  ;;  %v2476_v54 = vunpack.c.l.s8.bf16 %v1788_v31  ;;  %v1787_v57 = vld [vmem:[#allocation10 + $0x590] sm:$0xff]  ;;  %v2473_v1 = vunpack.c.l.s8.bf16 %v1785_v60  ;;  %v2514_v31 = vunpack.c.h.s8.bf16 %v1802_v32 }
 0x2a8   :  { %3565 = vmatprep.subr.bf16.mxu1 %v2420_v0  ;;  %v5361_v0 = vsub.s32 7, %v5275_v16  ;;  %v2483_v14 = vunpack.c.h.s8.bf16 %v1787_v57 }
 0x2aa   :  { %3238 = vmatpush1.bf16.msra.mxu0 %v2417_v3  ;;  %v1400_v3 = vrot.slane %v5363_v2, %v5358_v56  ;;  %v1412_v8 = vrot.slane %v5363_v2, %v5361_v0 }
 0x2ab   :  { %3566 = vmatpush1.bf16.msra.mxu1 %v2419_v4  ;;  %3239 = vmatprep.subr.bf16.mxu0 %v2426_v5  ;;  %v2475_v4 = vunpack.c.l.s8.bf16 %v1787_v57  ;;  %v2482_v5 = vunpack.c.h.s8.bf16 %v1786_v51 }
 0x2ac   :  { %3567 = vmatprep.subr.bf16.mxu1 %v2428_v36  ;;  %v1794_v36 = vld [vmem:[#allocation10 + $0x5c8] sm:$0xff] }
 0x2ae   :  { %3240 = vmatpush1.bf16.msra.mxu0 %v2425_v9  ;;  %v1796_v9 = vld [vmem:[#allocation10 + $0x5d8] sm:$0xff] }
 0x2af   :  { %3568 = vmatpush1.bf16.msra.mxu1 %v2427_v34  ;;  %3241 = vmatprep.subr.bf16.mxu0 %v2434_v11  ;;  %v2481_v34 = vunpack.c.h.s8.bf16 %v1785_v60  ;;  %v1465_v11 = vmul.f32 %v1400_v3, %v5293_v37  ;;  %v1812_v60 = vld [vmem:[#allocation10 + $0x658] sm:$0xff]  ;;  %v1809_v3 = vld [vmem:[#allocation10 + $0x640] sm:$0xff] }
 0x2b0   :  { %3569 = vmatprep.subr.bf16.mxu1 %v2436_v12  ;;  %v5370_v12 = vld [vmem:[#allocation8] sm:$0xff] }
 0x2b1   :  { %v1500_v13 = vrot.slane %v5370_v12, %v5358_v56  ;;  %v1512_v55 = vrot.slane %v5370_v12, %v5361_v0 }
 0x2b2   :  { %3242 = vmatpush1.bf16.msra.mxu0 %v2433_v43  ;;  %v2490_v43 = vunpack.c.l.s8.bf16 %v1794_v36 }
 0x2b3   :  { %3570 = vmatpush1.bf16.msra.mxu1 %v2435_v15  ;;  %3243 = vmatprep.subr.bf16.mxu0 %v2442_v17  ;;  %v1793_v15 = vld [vmem:[#allocation10 + $0x5c0] sm:$0xff]  ;;  %v2492_v17 = vunpack.c.l.s8.bf16 %v1796_v9 }
 0x2b4   :  { %3571 = vmatprep.subr.bf16.mxu1 %v2444_v20  ;;  %v1468_v20 = vmul.f32 %v1412_v8, %v5299_v41  ;;  %v2489_v37 = vunpack.c.l.s8.bf16 %v1793_v15  ;;  %v2499_v41 = vunpack.c.h.s8.bf16 %v1795_v19 }
 0x2b6   :  { %3244 = vmatpush1.bf16.msra.mxu0 %v2441_v22  ;;  %v1565_v22 = vadd.f32 %v1500_v13, %v1465_v11  ;;  %v1568_v33 = vadd.f32 %v1512_v55, %v1468_v20  ;;  %v1820_v11 = vld [vmem:[#allocation10 + $0x698] sm:$0xff]  ;;  %v2529_v13 = vunpack.c.h.s8.bf16 %v1809_v3 }
 0x2b7   :  { %3572 = vmatpush1.bf16.msra.mxu1 %v2443_v26  ;;  %3245 = vmatprep.subr.bf16.mxu0 %v2450_v30  ;;  %v2491_v26 = vunpack.c.l.s8.bf16 %v1795_v19  ;;  %v2498_v30 = vunpack.c.h.s8.bf16 %v1794_v36  ;;  %v1819_v19 = vld [vmem:[#allocation10 + $0x690] sm:$0xff] }
 0x2b8   :  { %3573 = vmatprep.subr.bf16.mxu1 %v2452_v28  ;;  %v2500_v28 = vunpack.c.h.s8.bf16 %v1796_v9  ;;  %v2532_v9 = vunpack.c.h.s8.bf16 %v1812_v60  ;;  %v2539_v55 = vunpack.c.l.s8.bf16 %v1819_v19  ;;  %v2547_v32 = vunpack.c.h.s8.bf16 %v1819_v19  ;;  %v1841_v19 = vld [vmem:[#allocation10 + $0x740] sm:$0xff] }
 0x2ba   :  { %3246 = vmatpush1.bf16.msra.mxu0 %v2449_v39  ;;  %v1804_v39 = vld [vmem:[#allocation10 + $0x618] sm:$0xff] }
 0x2bb   :  { %3574 = vmatpush1.bf16.msra.mxu1 %v2451_v40  ;;  %3247 = vmatprep.subr.bf16.mxu0 %v2458_v42  ;;  %v2497_v40 = vunpack.c.h.s8.bf16 %v1793_v15  ;;  %v1581_v42 = vmax.f32 %v1565_v22, 0.0  ;;  %v2508_v46 = vunpack.c.l.s8.bf16 %v1804_v39  ;;  %v1817_v15 = vld [vmem:[#allocation10 + $0x680] sm:$0xff]  ;;  %v2548_v22 = vunpack.c.h.s8.bf16 %v1820_v11 }
 0x2bc   :  { %3575 = vmatprep.subr.bf16.mxu1 %v2460_v45  ;;  %v1801_v45 = vld [vmem:[#allocation10 + $0x600] sm:$0xff]  ;;  %v2537_v20 = vunpack.c.l.s8.bf16 %v1817_v15 }
 0x2be   :  { %3248 = vmatpush1.bf16.msra.mxu0 %v2457_v47  ;;  %v1803_v47 = vld [vmem:[#allocation10 + $0x610] sm:$0xff] }
 0x2bf   :  { %3576 = vmatpush1.bf16.msra.mxu1 %v2459_v48  ;;  %3249 = vmatprep.subr.bf16.mxu0 %v2466_v49  ;;  %v1584_v48 = vmax.f32 %v1568_v33, 0.0  ;;  %v2505_v49 = vunpack.c.l.s8.bf16 %v1801_v45  ;;  %v2507_v51 = vunpack.c.l.s8.bf16 %v1803_v47  ;;  %v2515_v57 = vunpack.c.h.s8.bf16 %v1803_v47 }
 0x2c0   :  { %3577 = vmatprep.subr.bf16.mxu1 %v2468_v50  ;;  %v5377_v50 = vpack.c.bf16 %v1581_v42, %v1581_v42 }
 0x2c2   :  { %3250 = vmatpush1.bf16.msra.mxu0 %v2465_v53  ;;  %v1810_v53 = vld [vmem:[#allocation10 + $0x648] sm:$0xff] }
 0x2c3   :  { %3578 = vmatpush1.bf16.msra.mxu1 %v2467_v59  ;;  %3251 = vmatprep.subr.bf16.mxu0 %v2474_v25  ;;  %v5379_v59 = vpack.c.bf16 %v1584_v48, %v1584_v48  ;;  %v2516_v25 = vunpack.c.h.s8.bf16 %v1804_v39  ;;  %v2530_v8 = vunpack.c.h.s8.bf16 %v1810_v53  ;;  %v1825_v39 = vld [vmem:[#allocation10 + $0x6c0] sm:$0xff] }
 0x2c4   :  { %3579 = vmatprep.subr.bf16.mxu1 %v2476_v54  ;;  %v2513_v54 = vunpack.c.h.s8.bf16 %v1801_v45 }
 0x2c6   :  { %3252 = vmatpush1.bf16.msra.mxu0 %v2473_v1  ;;  %v2522_v1 = vunpack.c.l.s8.bf16 %v1810_v53 }
 0x2c7   :  { %3580 = vmatpush1.bf16.msra.mxu1 %v2475_v4  ;;  %3253 = vmatprep.subr.bf16.mxu0 %v2482_v5  ;;  %v2524_v4 = vunpack.c.l.s8.bf16 %v1812_v60  ;;  %v1811_v5 = vld [vmem:[#allocation10 + $0x650] sm:$0xff] }
 0x2c8   :  { %3581 = vmatprep.subr.bf16.mxu1 %v2484_v7  ;;  %v2521_v7 = vunpack.c.l.s8.bf16 %v1809_v3  ;;  %v2523_v36 = vunpack.c.l.s8.bf16 %v1811_v5 }
 0x2ca   :  { %3254 = vmatpush1.bf16.msra.mxu0 %v2481_v34  ;;  %v1818_v34 = vld [vmem:[#allocation10 + $0x688] sm:$0xff] }
 0x2cb   :  { %3582 = vmatpush1.bf16.msra.mxu1 %v2483_v14  ;;  %3255 = vmatprep.subr.bf16.mxu0 %v2490_v43  ;;  %v2531_v14 = vunpack.c.h.s8.bf16 %v1811_v5  ;;  %v2538_v43 = vunpack.c.l.s8.bf16 %v1818_v34  ;;  %v1833_v5 = vld [vmem:[#allocation10 + $0x700] sm:$0xff] }
 0x2cc   :  { %3583 = vmatprep.subr.bf16.mxu1 %v2492_v17  ;;  %v2540_v17 = vunpack.c.l.s8.bf16 %v1820_v11 }
 0x2ce   :  { %3256 = vmatpush1.bf16.msra.mxu0 %v2489_v37  ;;  %v2546_v37 = vunpack.c.h.s8.bf16 %v1818_v34 }
 0x2cf   :  { %3584 = vmatpush1.bf16.msra.mxu1 %v2491_v26  ;;  %3257 = vmatprep.subr.bf16.mxu0 %v2498_v30  ;;  %v1826_v26 = vld [vmem:[#allocation10 + $0x6c8] sm:$0xff]  ;;  %v1828_v30 = vld [vmem:[#allocation10 + $0x6d8] sm:$0xff] }
 0x2d0   :  { %3585 = vmatprep.subr.bf16.mxu1 %v2500_v28  ;;  %v2545_v28 = vunpack.c.h.s8.bf16 %v1817_v15  ;;  %v2554_v33 = vunpack.c.l.s8.bf16 %v1826_v26  ;;  %v2564_v60 = vunpack.c.h.s8.bf16 %v1828_v30 }
 0x2d2   :  { %3258 = vmatpush1.bf16.msra.mxu0 %v2497_v40 }
 0x2d3   :  { %3586 = vmatpush1.bf16.msra.mxu1 %v2499_v41  ;;  %3268 = vmatprep.subr.bf16.mxu0 %v2506_v44  ;;  %v2556_v41 = vunpack.c.l.s8.bf16 %v1828_v30  ;;  %v1827_v44 = vld [vmem:[#allocation10 + $0x6d0] sm:$0xff] }
 0x2d4   :  { %3596 = vmatprep.subr.bf16.mxu1 %v2508_v46  ;;  %v2555_v53 = vunpack.c.l.s8.bf16 %v1827_v44  ;;  %v2563_v3 = vunpack.c.h.s8.bf16 %v1827_v44 }
 0x2d5   :  { %3260 = vmatmul.mubr.bf16.vlgmr.msra.gmra.mrb[16].mxu0 %v5377_v50 }
 0x2d6   :  { %3588 = vmatmul.mubr.bf16.vlgmr.msra.gmra.mrb[16].mxu1 %v5377_v50  ;;  %3269 = vmatpush1.bf16.msra.mxu0 %v2505_v49  ;;  %v2553_v49 = vunpack.c.l.s8.bf16 %v1825_v39 }
 0x2d7   :  { %3300 = vmatprep.mubr.bf16.mxu0 %v5379_v59  ;;  %3597 = vmatpush1.bf16.msra.mxu1 %v2507_v51 }
 0x2d8   :  { %3628 = vmatprep.mubr.bf16.mxu1 %v5379_v59  ;;  %3270 = vmatprep.subr.bf16.mxu0 %v2514_v31 }
 0x2d9   :  { %3598 = vmatprep.subr.bf16.mxu1 %v2516_v25  ;;  %v2562_v25 = vunpack.c.h.s8.bf16 %v1826_v26 }
 0x2da   :  { %3271 = vmatpush1.bf16.msra.mxu0 %v2513_v54  ;;  %v1834_v54 = vld [vmem:[#allocation10 + $0x708] sm:$0xff] }
 0x2db   :  { %3599 = vmatpush1.bf16.msra.mxu1 %v2515_v57  ;;  %3272 = vmatprep.subr.bf16.mxu0 %v2522_v1  ;;  %v1836_v57 = vld [vmem:[#allocation10 + $0x718] sm:$0xff]  ;;  %v2561_v1 = vunpack.c.h.s8.bf16 %v1825_v39  ;;  %v2578_v34 = vunpack.c.h.s8.bf16 %v1834_v54  ;;  %v5394_v39 = vsub.s32 6, %v5275_v16 }
 0x2dc   :  { %3600 = vmatprep.subr.bf16.mxu1 %v2524_v4  ;;  %v2570_v4 = vunpack.c.l.s8.bf16 %v1834_v54  ;;  %v2580_v11 = vunpack.c.h.s8.bf16 %v1836_v57  ;;  %v1858_v54 = vld [vmem:[#allocation10 + $0x7c8] sm:$0xff] }
 0x2de   :  { %3273 = vmatpush1.bf16.msra.mxu0 %v2521_v7  ;;  %v2572_v7 = vunpack.c.l.s8.bf16 %v1836_v57 }
 0x2df   :  { %3601 = vmatpush1.bf16.msra.mxu1 %v2523_v36  ;;  %3274 = vmatprep.subr.bf16.mxu0 %v2530_v8  ;;  %v1835_v36 = vld [vmem:[#allocation10 + $0x710] sm:$0xff]  ;;  %v2569_v8 = vunpack.c.l.s8.bf16 %v1833_v5 }
 0x2e0   :  { %3602 = vmatprep.subr.bf16.mxu1 %v2532_v9  ;;  %v2571_v9 = vunpack.c.l.s8.bf16 %v1835_v36  ;;  %v2579_v15 = vunpack.c.h.s8.bf16 %v1835_v36  ;;  %v2618_v36 = vunpack.c.l.s8.bf16 %v1858_v54 }
 0x2e2   :  { %3275 = vmatpush1.bf16.msra.mxu0 %v2529_v13  ;;  %v1842_v13 = vld [vmem:[#allocation10 + $0x748] sm:$0xff] }
 0x2e3   :  { %3603 = vmatpush1.bf16.msra.mxu1 %v2531_v14  ;;  %3276 = vmatprep.subr.bf16.mxu0 %v2538_v43  ;;  %v1844_v14 = vld [vmem:[#allocation10 + $0x758] sm:$0xff]  ;;  %v2577_v43 = vunpack.c.h.s8.bf16 %v1833_v5  ;;  %v2594_v26 = vunpack.c.h.s8.bf16 %v1842_v13 }
 0x2e4   :  { %3604 = vmatprep.subr.bf16.mxu1 %v2540_v17  ;;  %v2586_v17 = vunpack.c.l.s8.bf16 %v1842_v13  ;;  %v2596_v30 = vunpack.c.h.s8.bf16 %v1844_v14 }
 0x2e6   :  { %3277 = vmatpush1.bf16.msra.mxu0 %v2537_v20  ;;  %v2588_v20 = vunpack.c.l.s8.bf16 %v1844_v14 }
 0x2e7   :  { %3605 = vmatpush1.bf16.msra.mxu1 %v2539_v55  ;;  %3278 = vmatprep.subr.bf16.mxu0 %v2546_v37  ;;  %v1843_v55 = vld [vmem:[#allocation10 + $0x750] sm:$0xff]  ;;  %v2585_v37 = vunpack.c.l.s8.bf16 %v1841_v19 }
 0x2e8   :  { %v5385_v40 = vpop.f32.mrb[12].mxu0  ;;  %v5387_v42 = vpop.f32.mrb[12].mxu1  ;;  %3606 = vmatprep.subr.bf16.mxu1 %v2548_v22  ;;  %v2587_v22 = vunpack.c.l.s8.bf16 %v1843_v55 }
 0x2e9   :  { %v5389_v45 = vpop.f32.mrb[13].mxu0  ;;  %v5391_v46 = vpop.f32.mrb[13].mxu1 }
 0x2ea   :  { %v1292_v47 = vpop.f32.mrb[14].mxu0  ;;  %v1374_v48 = vpop.f32.mrb[14].mxu1  ;;  %3279 = vmatpush1.bf16.msra.mxu0 %v2545_v28  ;;  %v1850_v28 = vld [vmem:[#allocation10 + $0x788] sm:$0xff] }
 0x2eb   :  { %3607 = vmatpush1.bf16.msra.mxu1 %v2547_v32  ;;  %v1293_v51 = vpop.f32.mrb[15].mxu0  ;;  %v1375_v31 = vpop.f32.mrb[15].mxu1  ;;  %3280 = vmatprep.subr.bf16.mxu0 %v2554_v33  ;;  %v1852_v32 = vld [vmem:[#allocation10 + $0x798] sm:$0xff]  ;;  %v2593_v33 = vunpack.c.h.s8.bf16 %v1841_v19  ;;  %v2602_v44 = vunpack.c.l.s8.bf16 %v1850_v28  ;;  %v1849_v47 = vld [vmem:[#allocation10 + $0x780] sm:$0xff]  ;;  %v2610_v16 = vunpack.c.h.s8.bf16 %v1850_v28  ;;  %v1867_v28 = vld [vmem:[#allocation10 + $0x810] sm:$0xff] }
 0x2ec   :  { %3608 = vmatprep.subr.bf16.mxu1 %v2556_v41  ;;  %v2595_v41 = vunpack.c.h.s8.bf16 %v1843_v55  ;;  %v2604_v48 = vunpack.c.l.s8.bf16 %v1852_v32  ;;  %v5396_v51 = vld [vmem:[#allocation7 + $0x8] sm:$0xff]  ;;  %v2601_v31 = vunpack.c.l.s8.bf16 %v1849_v47 }
 0x2ed   :  { %v1420_v57 = vrot.slane %v5396_v51, %v5278_v24 }
 0x2ee   :  { %3281 = vmatpush1.bf16.msra.mxu0 %v2553_v49  ;;  %v1851_v49 = vld [vmem:[#allocation10 + $0x790] sm:$0xff] }
 0x2ef   :  { %3609 = vmatpush1.bf16.msra.mxu1 %v2555_v53  ;;  %3282 = vmatprep.subr.bf16.mxu0 %v2562_v25  ;;  %v1408_v53 = vrot.slane %v5363_v2, %v5394_v39  ;;  %v2603_v25 = vunpack.c.l.s8.bf16 %v1851_v49  ;;  %v1508_v2 = vrot.slane %v5370_v12, %v5394_v39  ;;  %v2626_v12 = vunpack.c.h.s8.bf16 %v1858_v54  ;;  %v1873_v54 = vld [vmem:[#allocation10 + $0x840] sm:$0xff] }
 0x2f0   :  { %3610 = vmatprep.subr.bf16.mxu1 %v2564_v60  ;;  %v2612_v60 = vunpack.c.h.s8.bf16 %v1852_v32 }
 0x2f1   :  { %v1467_v5 = vmul.f32 %v1408_v53, %v5295_v38  ;;  %v1876_v53 = vld [vmem:[#allocation10 + $0x858] sm:$0xff] }
 0x2f2   :  { %3283 = vmatpush1.bf16.msra.mxu0 %v2561_v1  ;;  %v1860_v1 = vld [vmem:[#allocation10 + $0x7d8] sm:$0xff] }
 0x2f3   :  { %3611 = vmatpush1.bf16.msra.mxu1 %v2563_v3  ;;  %3284 = vmatprep.subr.bf16.mxu0 %v2570_v4  ;;  %v5402_v3 = vld [vmem:[#allocation8 + $0x8] sm:$0xff]  ;;  %v2609_v4 = vunpack.c.h.s8.bf16 %v1849_v47 }
 0x2f4   :  { %3612 = vmatprep.subr.bf16.mxu1 %v2572_v7  ;;  %v2611_v7 = vunpack.c.h.s8.bf16 %v1851_v49  ;;  %v1520_v13 = vrot.slane %v5402_v3, %v5278_v24 }
 0x2f6   :  { %3285 = vmatpush1.bf16.msra.mxu0 %v2569_v8  ;;  %v1857_v8 = vld [vmem:[#allocation10 + $0x7c0] sm:$0xff] }
 0x2f7   :  { %3613 = vmatpush1.bf16.msra.mxu1 %v2571_v9  ;;  %3286 = vmatprep.subr.bf16.mxu0 %v2578_v34  ;;  %v2620_v9 = vunpack.c.l.s8.bf16 %v1860_v1  ;;  %v1859_v34 = vld [vmem:[#allocation10 + $0x7d0] sm:$0xff]  ;;  %v2617_v14 = vunpack.c.l.s8.bf16 %v1857_v8  ;;  %v2625_v55 = vunpack.c.h.s8.bf16 %v1857_v8  ;;  %v1884_v8 = vld [vmem:[#allocation10 + $0x898] sm:$0xff] }
 0x2f8   :  { %3614 = vmatprep.subr.bf16.mxu1 %v2580_v11  ;;  %v1470_v11 = vmul.f32 %v1420_v57, %v5345_v61  ;;  %v2619_v38 = vunpack.c.l.s8.bf16 %v1859_v34  ;;  %v2627_v61 = vunpack.c.h.s8.bf16 %v1859_v34  ;;  %v2652_v57 = vunpack.c.l.s8.bf16 %v1876_v53 }
 0x2fa   :  { %3287 = vmatpush1.bf16.msra.mxu0 %v2577_v43  ;;  %v1567_v43 = vadd.f32 %v1508_v2, %v1467_v5  ;;  %v1570_v19 = vadd.f32 %v1520_v13, %v1470_v11  ;;  %v1881_v13 = vld [vmem:[#allocation10 + $0x880] sm:$0xff] }
 0x2fb   :  { %3615 = vmatpush1.bf16.msra.mxu1 %v2579_v15  ;;  %3288 = vmatprep.subr.bf16.mxu0 %v2586_v17  ;;  %v2628_v15 = vunpack.c.h.s8.bf16 %v1860_v1  ;;  %v1866_v17 = vld [vmem:[#allocation10 + $0x808] sm:$0xff]  ;;  %v1875_v1 = vld [vmem:[#allocation10 + $0x850] sm:$0xff] }
 0x2fc   :  { %3616 = vmatprep.subr.bf16.mxu1 %v2588_v20  ;;  %v1868_v20 = vld [vmem:[#allocation10 + $0x818] sm:$0xff]  ;;  %v1586_v32 = vmax.f32 %v1570_v19, 0.0  ;;  %v2642_v47 = vunpack.c.h.s8.bf16 %v1866_v17  ;;  %v2651_v5 = vunpack.c.l.s8.bf16 %v1875_v1  ;;  %v2659_v34 = vunpack.c.h.s8.bf16 %v1875_v1  ;;  %v1890_v19 = vld [vmem:[#allocation10 + $0x8c8] sm:$0xff] }
 0x2fe   :  { %3289 = vmatpush1.bf16.msra.mxu0 %v2585_v37  ;;  %v1583_v37 = vmax.f32 %v1567_v43, 0.0  ;;  %v5412_v49 = vpack.c.bf16 %v1586_v32, %v1586_v32  ;;  %v1883_v43 = vld [vmem:[#allocation10 + $0x890] sm:$0xff] }
 0x2ff   :  { %3617 = vmatpush1.bf16.msra.mxu1 %v2587_v22  ;;  %3290 = vmatprep.subr.bf16.mxu0 %v2594_v26  ;;  %v2634_v22 = vunpack.c.l.s8.bf16 %v1866_v17  ;;  %v1865_v26 = vld [vmem:[#allocation10 + $0x800] sm:$0xff]  ;;  %v2676_v17 = vunpack.c.h.s8.bf16 %v1884_v8 }
 0x300   :  { %3618 = vmatprep.subr.bf16.mxu1 %v2596_v30  ;;  %v2636_v30 = vunpack.c.l.s8.bf16 %v1868_v20 }
 0x302   :  { %3291 = vmatpush1.bf16.msra.mxu0 %v2593_v33  ;;  %v2633_v33 = vunpack.c.l.s8.bf16 %v1865_v26 }
 0x303   :  { %3619 = vmatpush1.bf16.msra.mxu1 %v2595_v41  ;;  %3292 = vmatprep.subr.bf16.mxu0 %v2602_v44  ;;  %v5410_v41 = vpack.c.bf16 %v1583_v37, %v1583_v37  ;;  %v2635_v44 = vunpack.c.l.s8.bf16 %v1867_v28  ;;  %v2675_v37 = vunpack.c.h.s8.bf16 %v1883_v43 }
 0x304   :  { %3620 = vmatprep.subr.bf16.mxu1 %v2604_v48  ;;  %v1874_v48 = vld [vmem:[#allocation10 + $0x848] sm:$0xff] }
 0x305   :  { %v2658_v2 = vunpack.c.h.s8.bf16 %v1874_v48 }
 0x306   :  { %3293 = vmatpush1.bf16.msra.mxu0 %v2601_v31  ;;  %v2644_v31 = vunpack.c.h.s8.bf16 %v1868_v20  ;;  %v1892_v20 = vld [vmem:[#allocation10 + $0x8d8] sm:$0xff] }
 0x307   :  { %3621 = vmatpush1.bf16.msra.mxu1 %v2603_v25  ;;  %3294 = vmatprep.subr.bf16.mxu0 %v2610_v16  ;;  %v2641_v25 = vunpack.c.h.s8.bf16 %v1865_v26  ;;  %v2643_v16 = vunpack.c.h.s8.bf16 %v1867_v28  ;;  %v2684_v26 = vunpack.c.l.s8.bf16 %v1892_v20 }
 0x308   :  { %3622 = vmatprep.subr.bf16.mxu1 %v2612_v60  ;;  %v2650_v60 = vunpack.c.l.s8.bf16 %v1874_v48  ;;  %v1900_v48 = vld [vmem:[#allocation10 + $0x918] sm:$0xff] }
 0x30a   :  { %3295 = vmatpush1.bf16.msra.mxu0 %v2609_v4  ;;  %v2649_v4 = vunpack.c.l.s8.bf16 %v1873_v54 }
 0x30b   :  { %3623 = vmatpush1.bf16.msra.mxu1 %v2611_v7  ;;  %3296 = vmatprep.subr.bf16.mxu0 %v2618_v36  ;;  %v2660_v7 = vunpack.c.h.s8.bf16 %v1876_v53  ;;  %v1882_v36 = vld [vmem:[#allocation10 + $0x888] sm:$0xff] }
 0x30c   :  { %3624 = vmatprep.subr.bf16.mxu1 %v2620_v9  ;;  %v2657_v9 = vunpack.c.h.s8.bf16 %v1873_v54  ;;  %v2666_v11 = vunpack.c.l.s8.bf16 %v1882_v36  ;;  %v1899_v54 = vld [vmem:[#allocation10 + $0x910] sm:$0xff] }
 0x30d   :  { %v2699_v1 = vunpack.c.l.s8.bf16 %v1899_v54 }
 0x30e   :  { %3297 = vmatpush1.bf16.msra.mxu0 %v2617_v14  ;;  %v2668_v14 = vunpack.c.l.s8.bf16 %v1884_v8  ;;  %v2707_v8 = vunpack.c.h.s8.bf16 %v1899_v54  ;;  %v1921_v54 = vld [vmem:[#allocation10 + $0x9c0] sm:$0xff] }
 0x30f   :  { %3625 = vmatpush1.bf16.msra.mxu1 %v2619_v38  ;;  %3298 = vmatprep.subr.bf16.mxu0 %v2626_v12  ;;  %v2665_v38 = vunpack.c.l.s8.bf16 %v1881_v13  ;;  %v2667_v12 = vunpack.c.l.s8.bf16 %v1883_v43 }
 0x310   :  { %3626 = vmatprep.subr.bf16.mxu1 %v2628_v15  ;;  %v2674_v15 = vunpack.c.h.s8.bf16 %v1882_v36 }
 0x312   :  { %3299 = vmatpush1.bf16.msra.mxu0 %v2625_v55  ;;  %v2673_v55 = vunpack.c.h.s8.bf16 %v1881_v13  ;;  %v1907_v13 = vld [vmem:[#allocation10 + $0x950] sm:$0xff] }
 0x313   :  { %3627 = vmatpush1.bf16.msra.mxu1 %v2627_v61  ;;  %3309 = vmatprep.subr.bf16.mxu0 %v2634_v22  ;;  %v2682_v61 = vunpack.c.l.s8.bf16 %v1890_v19  ;;  %v1889_v22 = vld [vmem:[#allocation10 + $0x8c0] sm:$0xff]  ;;  %v2715_v43 = vunpack.c.l.s8.bf16 %v1907_v13 }
 0x314   :  { %3637 = vmatprep.subr.bf16.mxu1 %v2636_v30  ;;  %v1891_v30 = vld [vmem:[#allocation10 + $0x8d0] sm:$0xff]  ;;  %v2681_v28 = vunpack.c.l.s8.bf16 %v1889_v22 }
 0x315   :  { %3301 = vmatmul.mubr.bf16.vlgmr.msra.gmra.mrb[16].mxu0 %v5410_v41  ;;  %v2683_v32 = vunpack.c.l.s8.bf16 %v1891_v30  ;;  %v2691_v53 = vunpack.c.h.s8.bf16 %v1891_v30  ;;  %v1416_v30 = vrot.slane %v5396_v51, %v5302_v18 }
 0x316   :  { %3629 = vmatmul.mubr.bf16.vlgmr.msra.gmra.mrb[16].mxu1 %v5410_v41  ;;  %3310 = vmatpush1.bf16.msra.mxu0 %v2633_v33  ;;  %v2690_v33 = vunpack.c.h.s8.bf16 %v1890_v19 }
 0x317   :  { %3341 = vmatprep.mubr.bf16.mxu0 %v5412_v49  ;;  %3638 = vmatpush1.bf16.msra.mxu1 %v2635_v44  ;;  %v2692_v44 = vunpack.c.h.s8.bf16 %v1892_v20  ;;  %v2723_v20 = vunpack.c.h.s8.bf16 %v1907_v13  ;;  %v2753_v13 = vunpack.c.h.s8.bf16 %v1921_v54 }
 0x318   :  { %3669 = vmatprep.mubr.bf16.mxu1 %v5412_v49  ;;  %3311 = vmatprep.subr.bf16.mxu0 %v2642_v47  ;;  %v1898_v47 = vld [vmem:[#allocation10 + $0x908] sm:$0xff] }
 0x319   :  { %3639 = vmatprep.subr.bf16.mxu1 %v2644_v31  ;;  %v2689_v31 = vunpack.c.h.s8.bf16 %v1889_v22  ;;  %v1915_v22 = vld [vmem:[#allocation10 + $0x990] sm:$0xff] }
 0x31a   :  { %3312 = vmatpush1.bf16.msra.mxu0 %v2641_v25  ;;  %v2698_v25 = vunpack.c.l.s8.bf16 %v1898_v47 }
 0x31b   :  { %3640 = vmatpush1.bf16.msra.mxu1 %v2643_v16  ;;  %3313 = vmatprep.subr.bf16.mxu0 %v2650_v60  ;;  %v1897_v16 = vld [vmem:[#allocation10 + $0x900] sm:$0xff]  ;;  %v2700_v60 = vunpack.c.l.s8.bf16 %v1900_v48 }
 0x31c   :  { %3641 = vmatprep.subr.bf16.mxu1 %v2652_v57  ;;  %v2697_v57 = vunpack.c.l.s8.bf16 %v1897_v16  ;;  %v2705_v36 = vunpack.c.h.s8.bf16 %v1897_v16  ;;  %v2739_v16 = vunpack.c.h.s8.bf16 %v1915_v22 }
 0x31e   :  { %3314 = vmatpush1.bf16.msra.mxu0 %v2649_v4  ;;  %v2706_v4 = vunpack.c.h.s8.bf16 %v1898_v47  ;;  %v1428_v47 = vrot.slane %v5396_v51, %v5305_v23 }
 0x31f   :  { %3642 = vmatpush1.bf16.msra.mxu1 %v2651_v5  ;;  %3315 = vmatprep.subr.bf16.mxu0 %v2658_v2  ;;  %v2708_v5 = vunpack.c.h.s8.bf16 %v1900_v48  ;;  %v1906_v2 = vld [vmem:[#allocation10 + $0x948] sm:$0xff]  ;;  %v1924_v48 = vld [vmem:[#allocation10 + $0x9d8] sm:$0xff] }
 0x320   :  { %3643 = vmatprep.subr.bf16.mxu1 %v2660_v7  ;;  %v1908_v7 = vld [vmem:[#allocation10 + $0x958] sm:$0xff] }
 0x322   :  { %3316 = vmatpush1.bf16.msra.mxu0 %v2657_v9  ;;  %v2714_v9 = vunpack.c.l.s8.bf16 %v1906_v2 }
 0x323   :  { %3644 = vmatpush1.bf16.msra.mxu1 %v2659_v34  ;;  %3317 = vmatprep.subr.bf16.mxu0 %v2666_v11  ;;  %v1905_v34 = vld [vmem:[#allocation10 + $0x940] sm:$0xff]  ;;  %v2716_v11 = vunpack.c.l.s8.bf16 %v1908_v7 }
 0x324   :  { %3645 = vmatprep.subr.bf16.mxu1 %v2668_v14  ;;  %v2713_v14 = vunpack.c.l.s8.bf16 %v1905_v34  ;;  %v2721_v19 = vunpack.c.h.s8.bf16 %v1905_v34 }
 0x326   :  { %3318 = vmatpush1.bf16.msra.mxu0 %v2665_v38  ;;  %v2722_v38 = vunpack.c.h.s8.bf16 %v1906_v2  ;;  %v2745_v2 = vunpack.c.l.s8.bf16 %v1921_v54  ;;  %v1948_v54 = vld [vmem:[#allocation10 + $0xa98] sm:$0xff] }
 0x327   :  { %3646 = vmatpush1.bf16.msra.mxu1 %v2667_v12  ;;  %3319 = vmatprep.subr.bf16.mxu0 %v2674_v15  ;;  %v2724_v12 = vunpack.c.h.s8.bf16 %v1908_v7  ;;  %v1914_v15 = vld [vmem:[#allocation10 + $0x988] sm:$0xff] }
 0x328   :  { %3647 = vmatprep.subr.bf16.mxu1 %v2676_v17  ;;  %v1916_v17 = vld [vmem:[#allocation10 + $0x998] sm:$0xff] }
 0x32a   :  { %3320 = vmatpush1.bf16.msra.mxu0 %v2673_v55  ;;  %v2730_v55 = vunpack.c.l.s8.bf16 %v1914_v15 }
 0x32b   :  { %3648 = vmatpush1.bf16.msra.mxu1 %v2675_v37  ;;  %3321 = vmatprep.subr.bf16.mxu0 %v2682_v61  ;;  %v1913_v37 = vld [vmem:[#allocation10 + $0x980] sm:$0xff]  ;;  %v2732_v61 = vunpack.c.l.s8.bf16 %v1916_v17 }
 0x32c   :  { %3649 = vmatprep.subr.bf16.mxu1 %v2684_v26  ;;  %v2729_v26 = vunpack.c.l.s8.bf16 %v1913_v37 }
 0x32e   :  { %3322 = vmatpush1.bf16.msra.mxu0 %v2681_v28  ;;  %v2731_v28 = vunpack.c.l.s8.bf16 %v1915_v22 }
 0x32f   :  { %3650 = vmatpush1.bf16.msra.mxu1 %v2683_v32  ;;  %3323 = vmatprep.subr.bf16.mxu0 %v2690_v33  ;;  %v2738_v32 = vunpack.c.h.s8.bf16 %v1914_v15  ;;  %v2740_v33 = vunpack.c.h.s8.bf16 %v1916_v17  ;;  %v1931_v15 = vld [vmem:[#allocation10 + $0xa10] sm:$0xff] }
 0x330   :  { %3651 = vmatprep.subr.bf16.mxu1 %v2692_v44  ;;  %v1922_v44 = vld [vmem:[#allocation10 + $0x9c8] sm:$0xff] }
 0x332   :  { %3324 = vmatpush1.bf16.msra.mxu0 %v2689_v31  ;;  %v2737_v31 = vunpack.c.h.s8.bf16 %v1913_v37 }
 0x333   :  { %3652 = vmatpush1.bf16.msra.mxu1 %v2691_v53  ;;  %3325 = vmatprep.subr.bf16.mxu0 %v2698_v25  ;;  %v1469_v53 = vmul.f32 %v1416_v30, %v5338_v52  ;;  %v1516_v25 = vrot.slane %v5402_v3, %v5302_v18  ;;  %v1940_v30 = vld [vmem:[#allocation10 + $0xa58] sm:$0xff] }
 0x334   :  { %3653 = vmatprep.subr.bf16.mxu1 %v2700_v60  ;;  %v2746_v60 = vunpack.c.l.s8.bf16 %v1922_v44 }
 0x335   :  { %v1569_v7 = vadd.f32 %v1516_v25, %v1469_v53 }
 0x336   :  { %3326 = vmatpush1.bf16.msra.mxu0 %v2697_v57  ;;  %v2748_v57 = vunpack.c.l.s8.bf16 %v1924_v48 }
 0x337   :  { %3654 = vmatpush1.bf16.msra.mxu1 %v2699_v1  ;;  %3327 = vmatprep.subr.bf16.mxu0 %v2706_v4  ;;  %v1923_v1 = vld [vmem:[#allocation10 + $0x9d0] sm:$0xff]  ;;  %v1472_v4 = vmul.f32 %v1428_v47, %v5347_v62  ;;  %v2780_v47 = vunpack.c.l.s8.bf16 %v1940_v30 }
 0x338   :  { %3655 = vmatprep.subr.bf16.mxu1 %v2708_v5  ;;  %v1528_v5 = vrot.slane %v5402_v3, %v5305_v23  ;;  %v2747_v52 = vunpack.c.l.s8.bf16 %v1923_v1  ;;  %v2755_v62 = vunpack.c.h.s8.bf16 %v1923_v1 }
 0x33a   :  { %3328 = vmatpush1.bf16.msra.mxu0 %v2705_v36  ;;  %v2754_v36 = vunpack.c.h.s8.bf16 %v1922_v44  ;;  %v1572_v34 = vadd.f32 %v1528_v5, %v1472_v4  ;;  %v1937_v44 = vld [vmem:[#allocation10 + $0xa40] sm:$0xff] }
 0x33b   :  { %3656 = vmatpush1.bf16.msra.mxu1 %v2707_v8  ;;  %3329 = vmatprep.subr.bf16.mxu0 %v2714_v9  ;;  %v2756_v8 = vunpack.c.h.s8.bf16 %v1924_v48  ;;  %v1930_v9 = vld [vmem:[#allocation10 + $0xa08] sm:$0xff]  ;;  %v1939_v48 = vld [vmem:[#allocation10 + $0xa50] sm:$0xff]  ;;  %v1945_v5 = vld [vmem:[#allocation10 + $0xa80] sm:$0xff] }
 0x33c   :  { %3657 = vmatprep.subr.bf16.mxu1 %v2716_v11  ;;  %v1932_v11 = vld [vmem:[#allocation10 + $0xa18] sm:$0xff]  ;;  %v1588_v17 = vmax.f32 %v1572_v34, 0.0  ;;  %v2770_v37 = vunpack.c.h.s8.bf16 %v1930_v9  ;;  %v2779_v53 = vunpack.c.l.s8.bf16 %v1939_v48  ;;  %v2787_v1 = vunpack.c.h.s8.bf16 %v1939_v48  ;;  %v1954_v34 = vld [vmem:[#allocation10 + $0xac8] sm:$0xff] }
 0x33e   :  { %3330 = vmatpush1.bf16.msra.mxu0 %v2713_v14  ;;  %v1585_v14 = vmax.f32 %v1569_v7, 0.0  ;;  %v5430_v22 = vpack.c.bf16 %v1588_v17, %v1588_v17  ;;  %v1947_v7 = vld [vmem:[#allocation10 + $0xa90] sm:$0xff] }
 0x33f   :  { %3658 = vmatpush1.bf16.msra.mxu1 %v2715_v43  ;;  %3331 = vmatprep.subr.bf16.mxu0 %v2722_v38  ;;  %v2762_v43 = vunpack.c.l.s8.bf16 %v1930_v9  ;;  %v1929_v38 = vld [vmem:[#allocation10 + $0xa00] sm:$0xff]  ;;  %v2804_v9 = vunpack.c.h.s8.bf16 %v1948_v54 }
 0x340   :  { %3659 = vmatprep.subr.bf16.mxu1 %v2724_v12  ;;  %v2764_v12 = vunpack.c.l.s8.bf16 %v1932_v11 }
 0x342   :  { %3332 = vmatpush1.bf16.msra.mxu0 %v2721_v19  ;;  %v2761_v19 = vunpack.c.l.s8.bf16 %v1929_v38 }
 0x343   :  { %3660 = vmatpush1.bf16.msra.mxu1 %v2723_v20  ;;  %3333 = vmatprep.subr.bf16.mxu0 %v2730_v55  ;;  %v5428_v20 = vpack.c.bf16 %v1585_v14, %v1585_v14  ;;  %v2763_v55 = vunpack.c.l.s8.bf16 %v1931_v15  ;;  %v2803_v14 = vunpack.c.h.s8.bf16 %v1947_v7 }
 0x344   :  { %3661 = vmatprep.subr.bf16.mxu1 %v2732_v61  ;;  %v1938_v61 = vld [vmem:[#allocation10 + $0xa48] sm:$0xff] }
 0x345   :  { %v2786_v25 = vunpack.c.h.s8.bf16 %v1938_v61 }
 0x346   :  { %3334 = vmatpush1.bf16.msra.mxu0 %v2729_v26  ;;  %v2772_v26 = vunpack.c.h.s8.bf16 %v1932_v11  ;;  %v1956_v11 = vld [vmem:[#allocation10 + $0xad8] sm:$0xff] }
 0x347   :  { %3662 = vmatpush1.bf16.msra.mxu1 %v2731_v28  ;;  %3335 = vmatprep.subr.bf16.mxu0 %v2738_v32  ;;  %v2769_v28 = vunpack.c.h.s8.bf16 %v1929_v38  ;;  %v2771_v32 = vunpack.c.h.s8.bf16 %v1931_v15  ;;  %v2812_v38 = vunpack.c.l.s8.bf16 %v1956_v11 }
 0x348   :  { %3663 = vmatprep.subr.bf16.mxu1 %v2740_v33  ;;  %v2778_v33 = vunpack.c.l.s8.bf16 %v1938_v61  ;;  %v1964_v61 = vld [vmem:[#allocation10 + $0xb18] sm:$0xff] }
 0x34a   :  { %3336 = vmatpush1.bf16.msra.mxu0 %v2737_v31  ;;  %v2777_v31 = vunpack.c.l.s8.bf16 %v1937_v44 }
 0x34b   :  { %3664 = vmatpush1.bf16.msra.mxu1 %v2739_v16  ;;  %3337 = vmatprep.subr.bf16.mxu0 %v2746_v60  ;;  %v2788_v16 = vunpack.c.h.s8.bf16 %v1940_v30  ;;  %v1946_v60 = vld [vmem:[#allocation10 + $0xa88] sm:$0xff] }
 0x34c   :  { %3665 = vmatprep.subr.bf16.mxu1 %v2748_v57  ;;  %v2785_v57 = vunpack.c.h.s8.bf16 %v1937_v44  ;;  %v2794_v4 = vunpack.c.l.s8.bf16 %v1946_v60  ;;  %v1963_v44 = vld [vmem:[#allocation10 + $0xb10] sm:$0xff] }
 0x34d   :  { %v2827_v48 = vunpack.c.l.s8.bf16 %v1963_v44 }
 0x34e   :  { %3338 = vmatpush1.bf16.msra.mxu0 %v2745_v2  ;;  %v2796_v2 = vunpack.c.l.s8.bf16 %v1948_v54  ;;  %v2835_v54 = vunpack.c.h.s8.bf16 %v1963_v44  ;;  %v1985_v44 = vld [vmem:[#allocation10 + $0xbc0] sm:$0xff] }
 0x34f   :  { %3666 = vmatpush1.bf16.msra.mxu1 %v2747_v52  ;;  %3339 = vmatprep.subr.bf16.mxu0 %v2754_v36  ;;  %v2793_v52 = vunpack.c.l.s8.bf16 %v1945_v5  ;;  %v2795_v36 = vunpack.c.l.s8.bf16 %v1947_v7 }
 0x350   :  { %3667 = vmatprep.subr.bf16.mxu1 %v2756_v8  ;;  %v2802_v8 = vunpack.c.h.s8.bf16 %v1946_v60 }
 0x352   :  { %3340 = vmatpush1.bf16.msra.mxu0 %v2753_v13  ;;  %v2801_v13 = vunpack.c.h.s8.bf16 %v1945_v5  ;;  %v1971_v5 = vld [vmem:[#allocation10 + $0xb50] sm:$0xff] }
 0x353   :  { %3668 = vmatpush1.bf16.msra.mxu1 %v2755_v62  ;;  %3350 = vmatprep.subr.bf16.mxu0 %v2762_v43  ;;  %v2810_v62 = vunpack.c.l.s8.bf16 %v1954_v34  ;;  %v1953_v43 = vld [vmem:[#allocation10 + $0xac0] sm:$0xff]  ;;  %v2843_v7 = vunpack.c.l.s8.bf16 %v1971_v5 }
 0x354   :  { %3678 = vmatprep.subr.bf16.mxu1 %v2764_v12  ;;  %v1955_v12 = vld [vmem:[#allocation10 + $0xad0] sm:$0xff]  ;;  %v2809_v15 = vunpack.c.l.s8.bf16 %v1953_v43 }
 0x355   :  { %3342 = vmatmul.mubr.bf16.vlgmr.msra.gmra.mrb[16].mxu0 %v5428_v20  ;;  %v2811_v17 = vunpack.c.l.s8.bf16 %v1955_v12  ;;  %v2819_v30 = vunpack.c.h.s8.bf16 %v1955_v12  ;;  %v1424_v12 = vrot.slane %v5396_v51, %v5326_v27 }
 0x356   :  { %3670 = vmatmul.mubr.bf16.vlgmr.msra.gmra.mrb[16].mxu1 %v5428_v20  ;;  %3351 = vmatpush1.bf16.msra.mxu0 %v2761_v19  ;;  %v2818_v19 = vunpack.c.h.s8.bf16 %v1954_v34 }
 0x357   :  { %3382 = vmatprep.mubr.bf16.mxu0 %v5430_v22  ;;  %3679 = vmatpush1.bf16.msra.mxu1 %v2763_v55  ;;  %v2820_v55 = vunpack.c.h.s8.bf16 %v1956_v11  ;;  %v2851_v11 = vunpack.c.h.s8.bf16 %v1971_v5 }
 0x358   :  { %3710 = vmatprep.mubr.bf16.mxu1 %v5430_v22  ;;  %3352 = vmatprep.subr.bf16.mxu0 %v2770_v37  ;;  %v1962_v37 = vld [vmem:[#allocation10 + $0xb08] sm:$0xff] }
 0x359   :  { %3680 = vmatprep.subr.bf16.mxu1 %v2772_v26  ;;  %v2817_v26 = vunpack.c.h.s8.bf16 %v1953_v43  ;;  %v1979_v43 = vld [vmem:[#allocation10 + $0xb90] sm:$0xff] }
 0x35a   :  { %3353 = vmatpush1.bf16.msra.mxu0 %v2769_v28  ;;  %v2826_v28 = vunpack.c.l.s8.bf16 %v1962_v37 }
 0x35b   :  { %3681 = vmatpush1.bf16.msra.mxu1 %v2771_v32  ;;  %3354 = vmatprep.subr.bf16.mxu0 %v2778_v33  ;;  %v1961_v32 = vld [vmem:[#allocation10 + $0xb00] sm:$0xff]  ;;  %v2828_v33 = vunpack.c.l.s8.bf16 %v1964_v61 }
 0x35c   :  { %3682 = vmatprep.subr.bf16.mxu1 %v2780_v47  ;;  %v2825_v47 = vunpack.c.l.s8.bf16 %v1961_v32  ;;  %v2833_v60 = vunpack.c.h.s8.bf16 %v1961_v32  ;;  %v2867_v32 = vunpack.c.h.s8.bf16 %v1979_v43 }
 0x35e   :  { %3355 = vmatpush1.bf16.msra.mxu0 %v2777_v31  ;;  %v2834_v31 = vunpack.c.h.s8.bf16 %v1962_v37  ;;  %v1436_v37 = vrot.slane %v5396_v51, %v5329_v35  ;;  %v1536_v51 = vrot.slane %v5402_v3, %v5329_v35 }
 0x35f   :  { %3683 = vmatpush1.bf16.msra.mxu1 %v2779_v53  ;;  %3356 = vmatprep.subr.bf16.mxu0 %v2786_v25  ;;  %v2836_v53 = vunpack.c.h.s8.bf16 %v1964_v61  ;;  %v1970_v25 = vld [vmem:[#allocation10 + $0xb48] sm:$0xff]  ;;  %v1988_v61 = vld [vmem:[#allocation10 + $0xbd8] sm:$0xff] }
 0x360   :  { %3684 = vmatprep.subr.bf16.mxu1 %v2788_v16  ;;  %v1972_v16 = vld [vmem:[#allocation10 + $0xb58] sm:$0xff] }
 0x362   :  { %3357 = vmatpush1.bf16.msra.mxu0 %v2785_v57  ;;  %v2842_v57 = vunpack.c.l.s8.bf16 %v1970_v25 }
 0x363   :  { %3685 = vmatpush1.bf16.msra.mxu1 %v2787_v1  ;;  %3358 = vmatprep.subr.bf16.mxu0 %v2794_v4  ;;  %v1969_v1 = vld [vmem:[#allocation10 + $0xb40] sm:$0xff]  ;;  %v2844_v4 = vunpack.c.l.s8.bf16 %v1972_v16 }
 0x364   :  { %3686 = vmatprep.subr.bf16.mxu1 %v2796_v2  ;;  %v2841_v2 = vunpack.c.l.s8.bf16 %v1969_v1  ;;  %v2849_v34 = vunpack.c.h.s8.bf16 %v1969_v1  ;;  %v1996_v1 = vld [vmem:[#allocation10 + $0xc18] sm:$0xff] }
 0x366   :  { %3359 = vmatpush1.bf16.msra.mxu0 %v2793_v52  ;;  %v2850_v52 = vunpack.c.h.s8.bf16 %v1970_v25 }
 0x367   :  { %3687 = vmatpush1.bf16.msra.mxu1 %v2795_v36  ;;  %3360 = vmatprep.subr.bf16.mxu0 %v2802_v8  ;;  %v2852_v36 = vunpack.c.h.s8.bf16 %v1972_v16  ;;  %v1978_v8 = vld [vmem:[#allocation10 + $0xb88] sm:$0xff] }
 0x368   :  { %3688 = vmatprep.subr.bf16.mxu1 %v2804_v9  ;;  %v1980_v9 = vld [vmem:[#allocation10 + $0xb98] sm:$0xff] }
 0x36a   :  { %3361 = vmatpush1.bf16.msra.mxu0 %v2801_v13  ;;  %v2858_v13 = vunpack.c.l.s8.bf16 %v1978_v8 }
 0x36b   :  { %3689 = vmatpush1.bf16.msra.mxu1 %v2803_v14  ;;  %3362 = vmatprep.subr.bf16.mxu0 %v2810_v62  ;;  %v1977_v14 = vld [vmem:[#allocation10 + $0xb80] sm:$0xff]  ;;  %v2860_v62 = vunpack.c.l.s8.bf16 %v1980_v9 }
 0x36c   :  { %3690 = vmatprep.subr.bf16.mxu1 %v2812_v38  ;;  %v2857_v38 = vunpack.c.l.s8.bf16 %v1977_v14 }
 0x36e   :  { %3363 = vmatpush1.bf16.msra.mxu0 %v2809_v15  ;;  %v2859_v15 = vunpack.c.l.s8.bf16 %v1979_v43  ;;  %v2004_v43 = vld [vmem:[#allocation10 + $0xc58] sm:$0xff] }
 0x36f   :  { %3691 = vmatpush1.bf16.msra.mxu1 %v2811_v17  ;;  %3364 = vmatprep.subr.bf16.mxu0 %v2818_v19  ;;  %v2866_v17 = vunpack.c.h.s8.bf16 %v1978_v8  ;;  %v2868_v19 = vunpack.c.h.s8.bf16 %v1980_v9 }
 0x370   :  { %3692 = vmatprep.subr.bf16.mxu1 %v2820_v55  ;;  %v1986_v55 = vld [vmem:[#allocation10 + $0xbc8] sm:$0xff] }
 0x371   :  { %v2882_v16 = vunpack.c.h.s8.bf16 %v1986_v55 }
 0x372   :  { %3365 = vmatpush1.bf16.msra.mxu0 %v2817_v26  ;;  %v2865_v26 = vunpack.c.h.s8.bf16 %v1977_v14 }
 0x373   :  { %3693 = vmatpush1.bf16.msra.mxu1 %v2819_v30  ;;  %3366 = vmatprep.subr.bf16.mxu0 %v2826_v28  ;;  %v1471_v30 = vmul.f32 %v1424_v12, %v5340_v58  ;;  %v1524_v28 = vrot.slane %v5402_v3, %v5326_v27  ;;  %v1993_v3 = vld [vmem:[#allocation10 + $0xc00] sm:$0xff] }
 0x374   :  { %3694 = vmatprep.subr.bf16.mxu1 %v2828_v33  ;;  %v2874_v33 = vunpack.c.l.s8.bf16 %v1986_v55  ;;  %v2889_v8 = vunpack.c.l.s8.bf16 %v1993_v3  ;;  %v2003_v55 = vld [vmem:[#allocation10 + $0xc50] sm:$0xff] }
 0x375   :  { %v1571_v25 = vadd.f32 %v1524_v28, %v1471_v30  ;;  %v2916_v30 = vunpack.c.h.s8.bf16 %v2004_v43  ;;  %v2010_v28 = vld [vmem:[#allocation10 + $0xc88] sm:$0xff] }
 0x376   :  { %3367 = vmatpush1.bf16.msra.mxu0 %v2825_v47  ;;  %v2876_v47 = vunpack.c.l.s8.bf16 %v1988_v61 }
 0x377   :  { %3695 = vmatpush1.bf16.msra.mxu1 %v2827_v48  ;;  %3368 = vmatprep.subr.bf16.mxu0 %v2834_v31  ;;  %v1987_v48 = vld [vmem:[#allocation10 + $0xbd0] sm:$0xff]  ;;  %v1474_v31 = vmul.f32 %v1436_v37, %v5389_v45  ;;  %v1587_v5 = vmax.f32 %v1571_v25, 0.0 }
 0x378   :  { %3696 = vmatprep.subr.bf16.mxu1 %v2836_v53  ;;  %v2873_v53 = vunpack.c.l.s8.bf16 %v1985_v44  ;;  %v2875_v58 = vunpack.c.l.s8.bf16 %v1987_v48  ;;  %v2883_v45 = vunpack.c.h.s8.bf16 %v1987_v48  ;;  %v2009_v48 = vld [vmem:[#allocation10 + $0xc80] sm:$0xff] }
 0x379   :  { %v5446_v9 = vpack.c.bf16 %v1587_v5, %v1587_v5  ;;  %v2017_v5 = vld [vmem:[#allocation10 + $0xcc0] sm:$0xff] }
 0x37a   :  { %3369 = vmatpush1.bf16.msra.mxu0 %v2833_v60  ;;  %v2884_v60 = vunpack.c.h.s8.bf16 %v1988_v61  ;;  %v2907_v61 = vunpack.c.l.s8.bf16 %v2003_v55 }
 0x37b   :  { %3697 = vmatpush1.bf16.msra.mxu1 %v2835_v54  ;;  %3370 = vmatprep.subr.bf16.mxu0 %v2842_v57  ;;  %v1994_v54 = vld [vmem:[#allocation10 + $0xc08] sm:$0xff]  ;;  %v1574_v57 = vadd.f32 %v1536_v51, %v1474_v31  ;;  %v2011_v51 = vld [vmem:[#allocation10 + $0xc90] sm:$0xff] }
 0x37c   :  { %3698 = vmatprep.subr.bf16.mxu1 %v2844_v4  ;;  %v2881_v4 = vunpack.c.h.s8.bf16 %v1985_v44  ;;  %v2915_v44 = vunpack.c.h.s8.bf16 %v2003_v55  ;;  %v2923_v25 = vunpack.c.l.s8.bf16 %v2011_v51 }
 0x37e   :  { %3371 = vmatpush1.bf16.msra.mxu0 %v2841_v2  ;;  %v2890_v2 = vunpack.c.l.s8.bf16 %v1994_v54 }
 0x37f   :  { %3699 = vmatpush1.bf16.msra.mxu1 %v2843_v7  ;;  %3372 = vmatprep.subr.bf16.mxu0 %v2850_v52  ;;  %v2892_v7 = vunpack.c.l.s8.bf16 %v1996_v1  ;;  %v1995_v52 = vld [vmem:[#allocation10 + $0xc10] sm:$0xff] }
 0x380   :  { %3700 = vmatprep.subr.bf16.mxu1 %v2852_v36  ;;  %v1590_v36 = vmax.f32 %v1574_v57, 0.0  ;;  %v2899_v12 = vunpack.c.h.s8.bf16 %v1995_v52  ;;  %v2929_v57 = vunpack.c.h.s8.bf16 %v2009_v48 }
 0x382   :  { %3373 = vmatpush1.bf16.msra.mxu0 %v2849_v34  ;;  %v2891_v34 = vunpack.c.l.s8.bf16 %v1995_v52  ;;  %v5448_v14 = vpack.c.bf16 %v1590_v36, %v1590_v36 }
 0x383   :  { %3701 = vmatpush1.bf16.msra.mxu1 %v2851_v11  ;;  %3374 = vmatprep.subr.bf16.mxu0 %v2858_v13  ;;  %v2898_v11 = vunpack.c.h.s8.bf16 %v1994_v54  ;;  %v2002_v13 = vld [vmem:[#allocation10 + $0xc48] sm:$0xff]  ;;  %v2020_v54 = vld [vmem:[#allocation10 + $0xcd8] sm:$0xff] }
 0x384   :  { %3702 = vmatprep.subr.bf16.mxu1 %v2860_v62  ;;  %v2900_v62 = vunpack.c.h.s8.bf16 %v1996_v1  ;;  %v2931_v1 = vunpack.c.h.s8.bf16 %v2011_v51  ;;  %v2948_v36 = vunpack.c.h.s8.bf16 %v2020_v54 }
 0x386   :  { %3375 = vmatpush1.bf16.msra.mxu0 %v2857_v38  ;;  %v2897_v38 = vunpack.c.h.s8.bf16 %v1993_v3  ;;  %v2937_v3 = vunpack.c.l.s8.bf16 %v2017_v5 }
 0x387   :  { %3703 = vmatpush1.bf16.msra.mxu1 %v2859_v15  ;;  %3376 = vmatprep.subr.bf16.mxu0 %v2866_v17  ;;  %v2906_v15 = vunpack.c.l.s8.bf16 %v2002_v13  ;;  %v2001_v17 = vld [vmem:[#allocation10 + $0xc40] sm:$0xff] }
 0x388   :  { %3704 = vmatprep.subr.bf16.mxu1 %v2868_v19  ;;  %v2908_v19 = vunpack.c.l.s8.bf16 %v2004_v43  ;;  %v2905_v37 = vunpack.c.l.s8.bf16 %v2001_v17  ;;  %v2025_v43 = vld [vmem:[#allocation10 + $0xd00] sm:$0xff] }
 0x38a   :  { %3377 = vmatpush1.bf16.msra.mxu0 %v2865_v26  ;;  %v2914_v26 = vunpack.c.h.s8.bf16 %v2002_v13 }
 0x38b   :  { %3705 = vmatpush1.bf16.msra.mxu1 %v2867_v32  ;;  %3378 = vmatprep.subr.bf16.mxu0 %v2874_v33  ;;  %v2012_v32 = vld [vmem:[#allocation10 + $0xc98] sm:$0xff]  ;;  %v2913_v33 = vunpack.c.h.s8.bf16 %v2001_v17 }
 0x38c   :  { %3706 = vmatprep.subr.bf16.mxu1 %v2876_v47  ;;  %v2922_v47 = vunpack.c.l.s8.bf16 %v2010_v28  ;;  %v2924_v31 = vunpack.c.l.s8.bf16 %v2012_v32 }
 0x38e   :  { %3379 = vmatpush1.bf16.msra.mxu0 %v2873_v53  ;;  %v2921_v53 = vunpack.c.l.s8.bf16 %v2009_v48 }
 0x38f   :  { %3707 = vmatpush1.bf16.msra.mxu1 %v2875_v58  ;;  %3380 = vmatprep.subr.bf16.mxu0 %v2882_v16  ;;  %v2930_v58 = vunpack.c.h.s8.bf16 %v2010_v28  ;;  %v2932_v16 = vunpack.c.h.s8.bf16 %v2012_v32  ;;  %v2033_v32 = vld [vmem:[#allocation10 + $0xd40] sm:$0xff] }
 0x390   :  { %3708 = vmatprep.subr.bf16.mxu1 %v2884_v60  ;;  %v2018_v60 = vld [vmem:[#allocation10 + $0xcc8] sm:$0xff] }
 0x391   :  { %v2946_v52 = vunpack.c.h.s8.bf16 %v2018_v60 }
 0x392   :  { %3381 = vmatpush1.bf16.msra.mxu0 %v2881_v4  ;;  %v2938_v4 = vunpack.c.l.s8.bf16 %v2018_v60 }
 0x393   :  { %3709 = vmatpush1.bf16.msra.mxu1 %v2883_v45  ;;  %3391 = vmatprep.subr.bf16.mxu0 %v2890_v2  ;;  %v2940_v45 = vunpack.c.l.s8.bf16 %v2020_v54  ;;  %v2019_v2 = vld [vmem:[#allocation10 + $0xcd0] sm:$0xff]  ;;  %v2041_v54 = vld [vmem:[#allocation10 + $0xd80] sm:$0xff] }
 0x394   :  { %3719 = vmatprep.subr.bf16.mxu1 %v2892_v7  ;;  %v2939_v7 = vunpack.c.l.s8.bf16 %v2019_v2  ;;  %v2947_v13 = vunpack.c.h.s8.bf16 %v2019_v2 }
 0x395   :  { %3383 = vmatmul.mubr.bf16.vlgmr.msra.gmra.mrb[16].mxu0 %v5446_v9 }
 0x396   :  { %3711 = vmatmul.mubr.bf16.vlgmr.msra.gmra.mrb[16].mxu1 %v5446_v9  ;;  %3392 = vmatpush1.bf16.msra.mxu0 %v2889_v8  ;;  %v2026_v8 = vld [vmem:[#allocation10 + $0xd08] sm:$0xff] }
 0x397   :  { %3423 = vmatprep.mubr.bf16.mxu0 %v5448_v14  ;;  %3720 = vmatpush1.bf16.msra.mxu1 %v2891_v34  ;;  %v2028_v34 = vld [vmem:[#allocation10 + $0xd18] sm:$0xff] }
 0x398   :  { %3751 = vmatprep.mubr.bf16.mxu1 %v5448_v14  ;;  %3393 = vmatprep.subr.bf16.mxu0 %v2898_v11  ;;  %v2945_v11 = vunpack.c.h.s8.bf16 %v2017_v5  ;;  %v2964_v55 = vunpack.c.h.s8.bf16 %v2028_v34  ;;  %v5454_v5 = vld [vmem:[#allocation7 + $0x8] sm:$0xff] }
 0x399   :  { %3721 = vmatprep.subr.bf16.mxu1 %v2900_v62  ;;  %v2954_v62 = vunpack.c.l.s8.bf16 %v2026_v8 }
 0x39a   :  { %3394 = vmatpush1.bf16.msra.mxu0 %v2897_v38  ;;  %v2956_v38 = vunpack.c.l.s8.bf16 %v2028_v34  ;;  %v2993_v34 = vunpack.c.h.s8.bf16 %v2041_v54 }
 0x39b   :  { %3722 = vmatpush1.bf16.msra.mxu1 %v2899_v12  ;;  %3395 = vmatprep.subr.bf16.mxu0 %v2906_v15  ;;  %v2027_v12 = vld [vmem:[#allocation10 + $0xd10] sm:$0xff]  ;;  %v2953_v15 = vunpack.c.l.s8.bf16 %v2025_v43 }
 0x39c   :  { %3723 = vmatprep.subr.bf16.mxu1 %v2908_v19  ;;  %v2955_v17 = vunpack.c.l.s8.bf16 %v2027_v12  ;;  %v2962_v19 = vunpack.c.h.s8.bf16 %v2026_v8  ;;  %v2052_v8 = vld [vmem:[#allocation10 + $0xdd8] sm:$0xff] }
 0x39e   :  { %3396 = vmatpush1.bf16.msra.mxu0 %v2905_v37  ;;  %v2034_v37 = vld [vmem:[#allocation10 + $0xd48] sm:$0xff] }
 0x39f   :  { %3724 = vmatpush1.bf16.msra.mxu1 %v2907_v61  ;;  %3397 = vmatprep.subr.bf16.mxu0 %v2914_v26  ;;  %v2036_v61 = vld [vmem:[#allocation10 + $0xd58] sm:$0xff]  ;;  %v2961_v26 = vunpack.c.h.s8.bf16 %v2025_v43  ;;  %v2970_v28 = vunpack.c.l.s8.bf16 %v2034_v37 }
 0x3a0   :  { %3725 = vmatprep.subr.bf16.mxu1 %v2916_v30  ;;  %v2963_v30 = vunpack.c.h.s8.bf16 %v2027_v12  ;;  %v2980_v51 = vunpack.c.h.s8.bf16 %v2036_v61  ;;  %v2049_v12 = vld [vmem:[#allocation10 + $0xdc0] sm:$0xff] }
 0x3a2   :  { %3398 = vmatpush1.bf16.msra.mxu0 %v2913_v33  ;;  %v2972_v33 = vunpack.c.l.s8.bf16 %v2036_v61 }
 0x3a3   :  { %3726 = vmatpush1.bf16.msra.mxu1 %v2915_v44  ;;  %3399 = vmatprep.subr.bf16.mxu0 %v2922_v47  ;;  %v2035_v44 = vld [vmem:[#allocation10 + $0xd50] sm:$0xff]  ;;  %v2969_v47 = vunpack.c.l.s8.bf16 %v2033_v32 }
 0x3a4   :  { %3727 = vmatprep.subr.bf16.mxu1 %v2924_v31  ;;  %v2971_v48 = vunpack.c.l.s8.bf16 %v2035_v44  ;;  %v2978_v31 = vunpack.c.h.s8.bf16 %v2034_v37 }
 0x3a6   :  { %3400 = vmatpush1.bf16.msra.mxu0 %v2921_v53  ;;  %v2042_v53 = vld [vmem:[#allocation10 + $0xd88] sm:$0xff] }
 0x3a7   :  { %3728 = vmatpush1.bf16.msra.mxu1 %v2923_v25  ;;  %3401 = vmatprep.subr.bf16.mxu0 %v2930_v58  ;;  %v2044_v25 = vld [vmem:[#allocation10 + $0xd98] sm:$0xff]  ;;  %v2977_v58 = vunpack.c.h.s8.bf16 %v2033_v32  ;;  %v2986_v60 = vunpack.c.l.s8.bf16 %v2042_v53 }
 0x3a8   :  { %3729 = vmatprep.subr.bf16.mxu1 %v2932_v16  ;;  %v2979_v16 = vunpack.c.h.s8.bf16 %v2035_v44  ;;  %v3009_v44 = vunpack.c.h.s8.bf16 %v2049_v12 }
 0x3aa   :  { %3402 = vmatpush1.bf16.msra.mxu0 %v2929_v57  ;;  %v2988_v57 = vunpack.c.l.s8.bf16 %v2044_v25 }
 0x3ab   :  { %3730 = vmatpush1.bf16.msra.mxu1 %v2931_v1  ;;  %3403 = vmatprep.subr.bf16.mxu0 %v2938_v4  ;;  %v2043_v1 = vld [vmem:[#allocation10 + $0xd90] sm:$0xff]  ;;  %v2985_v4 = vunpack.c.l.s8.bf16 %v2041_v54 }
 0x3ac   :  { %3731 = vmatprep.subr.bf16.mxu1 %v2940_v45  ;;  %v1432_v45 = vrot.slane %v5454_v5, %v5358_v56  ;;  %v2987_v2 = vunpack.c.l.s8.bf16 %v2043_v1  ;;  %v2995_v43 = vunpack.c.h.s8.bf16 %v2043_v1 }
 0x3ae   :  { %3404 = vmatpush1.bf16.msra.mxu0 %v2937_v3  ;;  %v2994_v3 = vunpack.c.h.s8.bf16 %v2042_v53  ;;  %v2059_v53 = vld [vmem:[#allocation10 + $0xe10] sm:$0xff] }
 0x3af   :  { %3732 = vmatpush1.bf16.msra.mxu1 %v2939_v7  ;;  %3405 = vmatprep.subr.bf16.mxu0 %v2946_v52  ;;  %v2996_v7 = vunpack.c.h.s8.bf16 %v2044_v25  ;;  %v2050_v52 = vld [vmem:[#allocation10 + $0xdc8] sm:$0xff] }
 0x3b0   :  { %3733 = vmatprep.subr.bf16.mxu1 %v2948_v36  ;;  %v1444_v36 = vrot.slane %v5454_v5, %v5361_v0 }
 0x3b2   :  { %3406 = vmatpush1.bf16.msra.mxu0 %v2945_v11  ;;  %v1473_v11 = vmul.f32 %v1432_v45, %v5385_v40  ;;  %v3001_v40 = vunpack.c.l.s8.bf16 %v2049_v12  ;;  %v2068_v45 = vld [vmem:[#allocation10 + $0xe58] sm:$0xff] }
 0x3b3   :  { %3734 = vmatpush1.bf16.msra.mxu1 %v2947_v13  ;;  %3407 = vmatprep.subr.bf16.mxu0 %v2954_v62  ;;  %v5461_v13 = vld [vmem:[#allocation8 + $0x8] sm:$0xff] }
 0x3b4   :  { %3735 = vmatprep.subr.bf16.mxu1 %v2956_v38  ;;  %v1532_v62 = vrot.slane %v5461_v13, %v5358_v56  ;;  %v3002_v38 = vunpack.c.l.s8.bf16 %v2050_v52  ;;  %v2076_v12 = vld [vmem:[#allocation10 + $0xe98] sm:$0xff] }
 0x3b6   :  { %3408 = vmatpush1.bf16.msra.mxu0 %v2953_v15  ;;  %v3004_v15 = vunpack.c.l.s8.bf16 %v2052_v8  ;;  %v1573_v37 = vadd.f32 %v1532_v62, %v1473_v11 }
 0x3b7   :  { %3736 = vmatpush1.bf16.msra.mxu1 %v2955_v17  ;;  %3409 = vmatprep.subr.bf16.mxu0 %v2962_v19  ;;  %v2051_v17 = vld [vmem:[#allocation10 + $0xdd0] sm:$0xff]  ;;  %v1476_v19 = vmul.f32 %v1444_v36, %v5391_v46  ;;  %v3036_v36 = vunpack.c.l.s8.bf16 %v2068_v45 }
 0x3b8   :  { %3737 = vmatprep.subr.bf16.mxu1 %v2964_v55  ;;  %v1544_v55 = vrot.slane %v5461_v13, %v5361_v0  ;;  %v3003_v61 = vunpack.c.l.s8.bf16 %v2051_v17  ;;  %v3011_v46 = vunpack.c.h.s8.bf16 %v2051_v17 }
 0x3ba   :  { %3410 = vmatpush1.bf16.msra.mxu0 %v2961_v26  ;;  %v3010_v26 = vunpack.c.h.s8.bf16 %v2050_v52  ;;  %v1576_v32 = vadd.f32 %v1544_v55, %v1476_v19  ;;  %v2065_v52 = vld [vmem:[#allocation10 + $0xe40] sm:$0xff] }
 0x3bb   :  { %3738 = vmatpush1.bf16.msra.mxu1 %v2963_v30  ;;  %3411 = vmatprep.subr.bf16.mxu0 %v2970_v28  ;;  %v3012_v30 = vunpack.c.h.s8.bf16 %v2052_v8  ;;  %v2058_v28 = vld [vmem:[#allocation10 + $0xe08] sm:$0xff]  ;;  %v2067_v8 = vld [vmem:[#allocation10 + $0xe50] sm:$0xff]  ;;  %v2073_v55 = vld [vmem:[#allocation10 + $0xe80] sm:$0xff] }
 0x3bc   :  { %3739 = vmatprep.subr.bf16.mxu1 %v2972_v33  ;;  %v2060_v33 = vld [vmem:[#allocation10 + $0xe18] sm:$0xff]  ;;  %v1592_v25 = vmax.f32 %v1576_v32, 0.0  ;;  %v3026_v54 = vunpack.c.h.s8.bf16 %v2058_v28  ;;  %v3035_v11 = vunpack.c.l.s8.bf16 %v2067_v8  ;;  %v3043_v17 = vunpack.c.h.s8.bf16 %v2067_v8  ;;  %v2082_v32 = vld [vmem:[#allocation10 + $0xec8] sm:$0xff] }
 0x3be   :  { %3412 = vmatpush1.bf16.msra.mxu0 %v2969_v47  ;;  %v1589_v47 = vmax.f32 %v1573_v37, 0.0  ;;  %v5470_v1 = vpack.c.bf16 %v1592_v25, %v1592_v25  ;;  %v2075_v37 = vld [vmem:[#allocation10 + $0xe90] sm:$0xff] }
 0x3bf   :  { %3740 = vmatpush1.bf16.msra.mxu1 %v2971_v48  ;;  %3413 = vmatprep.subr.bf16.mxu0 %v2978_v31  ;;  %v3018_v48 = vunpack.c.l.s8.bf16 %v2058_v28  ;;  %v2057_v31 = vld [vmem:[#allocation10 + $0xe00] sm:$0xff]  ;;  %v3060_v28 = vunpack.c.h.s8.bf16 %v2076_v12 }
 0x3c0   :  { %3741 = vmatprep.subr.bf16.mxu1 %v2980_v51  ;;  %v3020_v51 = vunpack.c.l.s8.bf16 %v2060_v33 }
 0x3c2   :  { %3414 = vmatpush1.bf16.msra.mxu0 %v2977_v58  ;;  %v3017_v58 = vunpack.c.l.s8.bf16 %v2057_v31 }
 0x3c3   :  { %3742 = vmatpush1.bf16.msra.mxu1 %v2979_v16  ;;  %3415 = vmatprep.subr.bf16.mxu0 %v2986_v60  ;;  %v5468_v16 = vpack.c.bf16 %v1589_v47, %v1589_v47  ;;  %v3019_v60 = vunpack.c.l.s8.bf16 %v2059_v53  ;;  %v3059_v47 = vunpack.c.h.s8.bf16 %v2075_v37 }
 0x3c4   :  { %3743 = vmatprep.subr.bf16.mxu1 %v2988_v57  ;;  %v2066_v57 = vld [vmem:[#allocation10 + $0xe48] sm:$0xff] }
 0x3c5   :  { %v3042_v62 = vunpack.c.h.s8.bf16 %v2066_v57 }
 0x3c6   :  { %3416 = vmatpush1.bf16.msra.mxu0 %v2985_v4  ;;  %v3028_v4 = vunpack.c.h.s8.bf16 %v2060_v33  ;;  %v2084_v33 = vld [vmem:[#allocation10 + $0xed8] sm:$0xff] }
 0x3c7   :  { %3744 = vmatpush1.bf16.msra.mxu1 %v2987_v2  ;;  %3417 = vmatprep.subr.bf16.mxu0 %v2994_v3  ;;  %v3025_v2 = vunpack.c.h.s8.bf16 %v2057_v31  ;;  %v3027_v3 = vunpack.c.h.s8.bf16 %v2059_v53  ;;  %v3068_v31 = vunpack.c.l.s8.bf16 %v2084_v33 }
 0x3c8   :  { %3745 = vmatprep.subr.bf16.mxu1 %v2996_v7  ;;  %v3034_v7 = vunpack.c.l.s8.bf16 %v2066_v57  ;;  %v2092_v57 = vld [vmem:[#allocation10 + $0xf18] sm:$0xff] }
 0x3ca   :  { %3418 = vmatpush1.bf16.msra.mxu0 %v2993_v34  ;;  %v3033_v34 = vunpack.c.l.s8.bf16 %v2065_v52 }
 0x3cb   :  { %3746 = vmatpush1.bf16.msra.mxu1 %v2995_v43  ;;  %3419 = vmatprep.subr.bf16.mxu0 %v3002_v38  ;;  %v3044_v43 = vunpack.c.h.s8.bf16 %v2068_v45  ;;  %v2074_v38 = vld [vmem:[#allocation10 + $0xe88] sm:$0xff] }
 0x3cc   :  { %3747 = vmatprep.subr.bf16.mxu1 %v3004_v15  ;;  %v3041_v15 = vunpack.c.h.s8.bf16 %v2065_v52  ;;  %v3050_v19 = vunpack.c.l.s8.bf16 %v2074_v38  ;;  %v2091_v52 = vld [vmem:[#allocation10 + $0xf10] sm:$0xff] }
 0x3cd   :  { %v3083_v8 = vunpack.c.l.s8.bf16 %v2091_v52 }
 0x3ce   :  { %3420 = vmatpush1.bf16.msra.mxu0 %v3001_v40  ;;  %v3052_v40 = vunpack.c.l.s8.bf16 %v2076_v12  ;;  %v3091_v12 = vunpack.c.h.s8.bf16 %v2091_v52  ;;  %v2115_v52 = vld [vmem:[#allocation10 + $0xfd0] sm:$0xff] }
 0x3cf   :  { %3748 = vmatpush1.bf16.msra.mxu1 %v3003_v61  ;;  %3421 = vmatprep.subr.bf16.mxu0 %v3010_v26  ;;  %v3049_v61 = vunpack.c.l.s8.bf16 %v2073_v55  ;;  %v3051_v26 = vunpack.c.l.s8.bf16 %v2075_v37 }
 0x3d0   :  { %3749 = vmatprep.subr.bf16.mxu1 %v3012_v30  ;;  %v3058_v30 = vunpack.c.h.s8.bf16 %v2074_v38 }
 0x3d2   :  { %3422 = vmatpush1.bf16.msra.mxu0 %v3009_v44  ;;  %v3057_v44 = vunpack.c.h.s8.bf16 %v2073_v55  ;;  %v2099_v55 = vld [vmem:[#allocation10 + $0xf50] sm:$0xff] }
 0x3d3   :  { %3750 = vmatpush1.bf16.msra.mxu1 %v3011_v46  ;;  %3432 = vmatprep.subr.bf16.mxu0 %v3018_v48  ;;  %v3066_v46 = vunpack.c.l.s8.bf16 %v2082_v32  ;;  %v2081_v48 = vld [vmem:[#allocation10 + $0xec0] sm:$0xff]  ;;  %v3099_v37 = vunpack.c.l.s8.bf16 %v2099_v55 }
 0x3d4   :  { %3760 = vmatprep.subr.bf16.mxu1 %v3020_v51  ;;  %v2083_v51 = vld [vmem:[#allocation10 + $0xed0] sm:$0xff]  ;;  %v3065_v53 = vunpack.c.l.s8.bf16 %v2081_v48 }
 0x3d5   :  { %3424 = vmatmul.mubr.bf16.vlgmr.msra.gmra.mrb[16].mxu0 %v5468_v16  ;;  %v3067_v25 = vunpack.c.l.s8.bf16 %v2083_v51  ;;  %v3075_v45 = vunpack.c.h.s8.bf16 %v2083_v51  ;;  %v1440_v51 = vrot.slane %v5454_v5, %v5394_v39  ;;  %v2113_v5 = vld [vmem:[#allocation10 + $0xfc0] sm:$0xff] }
 0x3d6   :  { %3752 = vmatmul.mubr.bf16.vlgmr.msra.gmra.mrb[16].mxu1 %v5468_v16  ;;  %3433 = vmatpush1.bf16.msra.mxu0 %v3017_v58  ;;  %v3074_v58 = vunpack.c.h.s8.bf16 %v2082_v32 }
 0x3d7   :  { %3464 = vmatprep.mubr.bf16.mxu0 %v5470_v1  ;;  %3761 = vmatpush1.bf16.msra.mxu1 %v3019_v60  ;;  %v3076_v60 = vunpack.c.h.s8.bf16 %v2084_v33  ;;  %v3107_v33 = vunpack.c.h.s8.bf16 %v2099_v55  ;;  %v1615_v55 = vld [vmem:[#allocation10 + $0x30] sm:$0xff] }
 0x3d8   :  { %3792 = vmatprep.mubr.bf16.mxu1 %v5470_v1  ;;  %3434 = vmatprep.subr.bf16.mxu0 %v3026_v54  ;;  %v2090_v54 = vld [vmem:[#allocation10 + $0xf08] sm:$0xff] }
 0x3d9   :  { %3762 = vmatprep.subr.bf16.mxu1 %v3028_v4  ;;  %v3073_v4 = vunpack.c.h.s8.bf16 %v2081_v48  ;;  %v2107_v48 = vld [vmem:[#allocation10 + $0xf90] sm:$0xff] }
 0x3da   :  { %3435 = vmatpush1.bf16.msra.mxu0 %v3025_v2  ;;  %v3082_v2 = vunpack.c.l.s8.bf16 %v2090_v54 }
 0x3db   :  { %3763 = vmatpush1.bf16.msra.mxu1 %v3027_v3  ;;  %3436 = vmatprep.subr.bf16.mxu0 %v3034_v7  ;;  %v2089_v3 = vld [vmem:[#allocation10 + $0xf00] sm:$0xff]  ;;  %v3084_v7 = vunpack.c.l.s8.bf16 %v2092_v57 }
 0x3dc   :  { %3764 = vmatprep.subr.bf16.mxu1 %v3036_v36  ;;  %v3081_v36 = vunpack.c.l.s8.bf16 %v2089_v3  ;;  %v3089_v38 = vunpack.c.h.s8.bf16 %v2089_v3 }
 0x3de   :  { %3437 = vmatpush1.bf16.msra.mxu0 %v3033_v34  ;;  %v3090_v34 = vunpack.c.h.s8.bf16 %v2090_v54  ;;  %v2116_v54 = vld [vmem:[#allocation10 + $0xfd8] sm:$0xff] }
 0x3df   :  { %3765 = vmatpush1.bf16.msra.mxu1 %v3035_v11  ;;  %3438 = vmatprep.subr.bf16.mxu0 %v3042_v62  ;;  %v3092_v11 = vunpack.c.h.s8.bf16 %v2092_v57  ;;  %v2098_v62 = vld [vmem:[#allocation10 + $0xf48] sm:$0xff] }
 0x3e0   :  { %3766 = vmatprep.subr.bf16.mxu1 %v3044_v43  ;;  %v2100_v43 = vld [vmem:[#allocation10 + $0xf58] sm:$0xff] }
 0x3e2   :  { %3439 = vmatpush1.bf16.msra.mxu0 %v3041_v15  ;;  %v3098_v15 = vunpack.c.l.s8.bf16 %v2098_v62 }
 0x3e3   :  { %3767 = vmatpush1.bf16.msra.mxu1 %v3043_v17  ;;  %3440 = vmatprep.subr.bf16.mxu0 %v3050_v19  ;;  %v2097_v17 = vld [vmem:[#allocation10 + $0xf40] sm:$0xff]  ;;  %v3100_v19 = vunpack.c.l.s8.bf16 %v2100_v43 }
 0x3e4   :  { %3768 = vmatprep.subr.bf16.mxu1 %v3052_v40  ;;  %v3097_v40 = vunpack.c.l.s8.bf16 %v2097_v17  ;;  %v3105_v32 = vunpack.c.h.s8.bf16 %v2097_v17  ;;  %v1613_v17 = vld [vmem:[#allocation10 + $0x20] sm:$0xff] }
 0x3e6   :  { %3441 = vmatpush1.bf16.msra.mxu0 %v3049_v61  ;;  %v3106_v61 = vunpack.c.h.s8.bf16 %v2098_v62  ;;  %v1614_v62 = vld [vmem:[#allocation10 + $0x28] sm:$0xff] }
 0x3e7   :  { %3769 = vmatpush1.bf16.msra.mxu1 %v3051_v26  ;;  %3442 = vmatprep.subr.bf16.mxu0 %v3058_v30  ;;  %v3108_v26 = vunpack.c.h.s8.bf16 %v2100_v43  ;;  %v2106_v30 = vld [vmem:[#allocation10 + $0xf88] sm:$0xff]  ;;  %v1616_v43 = vld [vmem:[#allocation10 + $0x38] sm:$0xff] }
 0x3e8   :  { %3770 = vmatprep.subr.bf16.mxu1 %v3060_v28  ;;  %v2108_v28 = vld [vmem:[#allocation10 + $0xf98] sm:$0xff] }
 0x3ea   :  { %3443 = vmatpush1.bf16.msra.mxu0 %v3057_v44  ;;  %v3114_v44 = vunpack.c.l.s8.bf16 %v2106_v30 }
 0x3eb   :  { %3771 = vmatpush1.bf16.msra.mxu1 %v3059_v47  ;;  %3444 = vmatprep.subr.bf16.mxu0 %v3066_v46  ;;  %v2105_v47 = vld [vmem:[#allocation10 + $0xf80] sm:$0xff]  ;;  %v3116_v46 = vunpack.c.l.s8.bf16 %v2108_v28 }
 0x3ec   :  { %3772 = vmatprep.subr.bf16.mxu1 %v3068_v31  ;;  %v3113_v31 = vunpack.c.l.s8.bf16 %v2105_v47  ;;  %v3121_v57 = vunpack.c.h.s8.bf16 %v2105_v47 }
 0x3ee   :  { %3445 = vmatpush1.bf16.msra.mxu0 %v3065_v53  ;;  %v3115_v53 = vunpack.c.l.s8.bf16 %v2107_v48 }
 0x3ef   :  { %3773 = vmatpush1.bf16.msra.mxu1 %v3067_v25  ;;  %3446 = vmatprep.subr.bf16.mxu0 %v3074_v58  ;;  %v3122_v25 = vunpack.c.h.s8.bf16 %v2106_v30  ;;  %v3124_v58 = vunpack.c.h.s8.bf16 %v2108_v28  ;;  %v1622_v30 = vld [vmem:[#allocation10 + $0x68] sm:$0xff]  ;;  %v2136_v28 = vunpack.c.h.s8.bf16 %v1616_v43 }
 0x3f0   :  { %3774 = vmatprep.subr.bf16.mxu1 %v3076_v60  ;;  %v2114_v60 = vld [vmem:[#allocation10 + $0xfc8] sm:$0xff]  ;;  %v2142_v47 = vunpack.c.l.s8.bf16 %v1622_v30 }
 0x3f1   :  { %v3130_v3 = vunpack.c.l.s8.bf16 %v2114_v60 }
 0x3f2   :  { %3447 = vmatpush1.bf16.msra.mxu0 %v3073_v4  ;;  %v1475_v4 = vmul.f32 %v1440_v51, %v5387_v42  ;;  %v3140_v42 = vunpack.c.h.s8.bf16 %v2116_v54 }
 0x3f3   :  { %3775 = vmatpush1.bf16.msra.mxu1 %v3075_v45  ;;  %3448 = vmatprep.subr.bf16.mxu0 %v3082_v2  ;;  %v1540_v45 = vrot.slane %v5461_v13, %v5394_v39  ;;  %v3123_v2 = vunpack.c.h.s8.bf16 %v2107_v48  ;;  %v3137_v13 = vunpack.c.h.s8.bf16 %v2113_v5 }
 0x3f4   :  { %3776 = vmatprep.subr.bf16.mxu1 %v3084_v7  ;;  %v3132_v7 = vunpack.c.l.s8.bf16 %v2116_v54  ;;  %v1632_v54 = vld [vmem:[#allocation10 + $0xb8] sm:$0xff] }
 0x3f6   :  { %3449 = vmatpush1.bf16.msra.mxu0 %v3081_v36  ;;  %v3129_v36 = vunpack.c.l.s8.bf16 %v2113_v5 }
 0x3f7   :  { %3777 = vmatpush1.bf16.msra.mxu1 %v3083_v8  ;;  %3450 = vmatprep.subr.bf16.mxu0 %v3090_v34  ;;  %v1575_v8 = vadd.f32 %v1540_v45, %v1475_v4  ;;  %v3131_v34 = vunpack.c.l.s8.bf16 %v2115_v52  ;;  %v1629_v45 = vld [vmem:[#allocation10 + $0xa0] sm:$0xff] }
 0x3f8   :  { %3778 = vmatprep.subr.bf16.mxu1 %v3092_v11  ;;  %v3138_v11 = vunpack.c.h.s8.bf16 %v2114_v60  ;;  %v1630_v60 = vld [vmem:[#allocation10 + $0xa8] sm:$0xff]  ;;  %v2157_v5 = vunpack.c.l.s8.bf16 %v1629_v45 }
 0x3fa   :  { %3451 = vmatpush1.bf16.msra.mxu0 %v3089_v38  ;;  %v1591_v38 = vmax.f32 %v1575_v8, 0.0  ;;  %v1638_v8 = vld [vmem:[#allocation10 + $0xe8] sm:$0xff] }
 0x3fb   :  { %3779 = vmatpush1.bf16.msra.mxu1 %v3091_v12  ;;  %3452 = vmatprep.subr.bf16.mxu0 %v3098_v15  ;;  %v3139_v12 = vunpack.c.h.s8.bf16 %v2115_v52  ;;  %v2126_v15 = vunpack.c.l.s8.bf16 %v1614_v62  ;;  %v2166_v52 = vunpack.c.h.s8.bf16 %v1630_v60 }
 0x3fc   :  { %3780 = vmatprep.subr.bf16.mxu1 %v3100_v19  ;;  %v2128_v19 = vunpack.c.l.s8.bf16 %v1616_v43  ;;  %v1637_v43 = vld [vmem:[#allocation10 + $0xe0] sm:$0xff] }
 0x3fe   :  { %3453 = vmatpush1.bf16.msra.mxu0 %v3097_v40  ;;  %v2125_v40 = vunpack.c.l.s8.bf16 %v1613_v17 }
 0x3ff   :  { %3781 = vmatpush1.bf16.msra.mxu1 %v3099_v37  ;;  %3454 = vmatprep.subr.bf16.mxu0 %v3106_v61  ;;  %v5481_v37 = vpack.c.bf16 %v1591_v38, %v1591_v38  ;;  %v2127_v61 = vunpack.c.l.s8.bf16 %v1615_v55  ;;  %v1639_v38 = vld [vmem:[#allocation10 + $0xf0] sm:$0xff] }
 0x400   :  { %3782 = vmatprep.subr.bf16.mxu1 %v3108_v26  ;;  %v2134_v26 = vunpack.c.h.s8.bf16 %v1614_v62  ;;  %v2174_v62 = vunpack.c.l.s8.bf16 %v1638_v8 }
 0x402   :  { %3455 = vmatpush1.bf16.msra.mxu0 %v3105_v32  ;;  %v1624_v32 = vld [vmem:[#allocation10 + $0x78] sm:$0xff] }
 0x403   :  { %3783 = vmatpush1.bf16.msra.mxu1 %v3107_v33  ;;  %3456 = vmatprep.subr.bf16.mxu0 %v3114_v44  ;;  %v2133_v33 = vunpack.c.h.s8.bf16 %v1613_v17  ;;  %v2135_v44 = vunpack.c.h.s8.bf16 %v1615_v55  ;;  %v2144_v48 = vunpack.c.l.s8.bf16 %v1624_v32  ;;  %v2182_v17 = vunpack.c.h.s8.bf16 %v1638_v8  ;;  %v1646_v55 = vld [vmem:[#allocation10 + $0x128] sm:$0xff]  ;;  %v1661_v8 = vld [vmem:[#allocation10 + $0x1a0] sm:$0xff] }
 0x404   :  { %3784 = vmatprep.subr.bf16.mxu1 %v3116_v46  ;;  %v1621_v46 = vld [vmem:[#allocation10 + $0x60] sm:$0xff] }
 0x405   :  { %v2141_v51 = vunpack.c.l.s8.bf16 %v1621_v46 }
 0x406   :  { %3457 = vmatpush1.bf16.msra.mxu0 %v3113_v31  ;;  %v1623_v31 = vld [vmem:[#allocation10 + $0x70] sm:$0xff] }
 0x407   :  { %3785 = vmatpush1.bf16.msra.mxu1 %v3115_v53  ;;  %3458 = vmatprep.subr.bf16.mxu0 %v3122_v25  ;;  %v2143_v53 = vunpack.c.l.s8.bf16 %v1623_v31  ;;  %v2150_v25 = vunpack.c.h.s8.bf16 %v1622_v30  ;;  %v2151_v4 = vunpack.c.h.s8.bf16 %v1623_v31  ;;  %v2190_v30 = vunpack.c.l.s8.bf16 %v1646_v55  ;;  %v1654_v31 = vld [vmem:[#allocation10 + $0x168] sm:$0xff] }
 0x408   :  { %3786 = vmatprep.subr.bf16.mxu1 %v3124_v58  ;;  %v2152_v58 = vunpack.c.h.s8.bf16 %v1624_v32 }
 0x40a   :  { %3459 = vmatpush1.bf16.msra.mxu0 %v3121_v57  ;;  %v2149_v57 = vunpack.c.h.s8.bf16 %v1621_v46  ;;  %v2198_v46 = vunpack.c.h.s8.bf16 %v1646_v55  ;;  %v1669_v55 = vld [vmem:[#allocation10 + $0x1e0] sm:$0xff] }
 0x40b   :  { %3787 = vmatpush1.bf16.msra.mxu1 %v3123_v2  ;;  %3460 = vmatprep.subr.bf16.mxu0 %v3130_v3  ;;  %v2160_v2 = vunpack.c.l.s8.bf16 %v1632_v54  ;;  %v1631_v3 = vld [vmem:[#allocation10 + $0xb0] sm:$0xff] }
 0x40c   :  { %3788 = vmatprep.subr.bf16.mxu1 %v3132_v7  ;;  %v2159_v7 = vunpack.c.l.s8.bf16 %v1631_v3 }
 0x40e   :  { %3461 = vmatpush1.bf16.msra.mxu0 %v3129_v36  ;;  %v2168_v36 = vunpack.c.h.s8.bf16 %v1632_v54 }
 0x40f   :  { %3789 = vmatpush1.bf16.msra.mxu1 %v3131_v34  ;;  %3462 = vmatprep.subr.bf16.mxu0 %v3138_v11  ;;  %v1640_v34 = vld [vmem:[#allocation10 + $0xf8] sm:$0xff]  ;;  %v2165_v11 = vunpack.c.h.s8.bf16 %v1629_v45  ;;  %v2214_v45 = vunpack.c.h.s8.bf16 %v1654_v31 }
 0x410   :  { %3790 = vmatprep.subr.bf16.mxu1 %v3140_v42  ;;  %v2167_v42 = vunpack.c.h.s8.bf16 %v1631_v3  ;;  %v1662_v3 = vld [vmem:[#allocation10 + $0x1a8] sm:$0xff] }
 0x412   :  { %3463 = vmatpush1.bf16.msra.mxu0 %v3137_v13  ;;  %v2176_v13 = vunpack.c.l.s8.bf16 %v1640_v34 }
 0x413   :  { %3791 = vmatpush1.bf16.msra.mxu1 %v3139_v12  ;;  %3801 = vmatprep.subr.bf16.mxu0 %v2126_v15  ;;  %v2173_v12 = vunpack.c.l.s8.bf16 %v1637_v43  ;;  %v2175_v15 = vunpack.c.l.s8.bf16 %v1639_v38 }
 0x414   :  { %4129 = vmatprep.subr.bf16.mxu1 %v2128_v19  ;;  %v2184_v19 = vunpack.c.h.s8.bf16 %v1640_v34 }
 0x415   :  { %3465 = vmatmul.mubr.bf16.vlgmr.msra.gmra.mrb[16].mxu0 %v5481_v37 }
 0x416   :  { %3793 = vmatmul.mubr.bf16.vlgmr.msra.gmra.mrb[16].mxu1 %v5481_v37  ;;  %3802 = vmatpush1.bf16.msra.mxu0 %v2125_v40  ;;  %v1648_v40 = vld [vmem:[#allocation10 + $0x138] sm:$0xff] }
 0x417   :  { %3833 = vmatprep.mubr.bf16.mxu0 %v5289_v63  ;;  %4130 = vmatpush1.bf16.msra.mxu1 %v2127_v61  ;;  %v2181_v61 = vunpack.c.h.s8.bf16 %v1637_v43  ;;  %v2192_v32 = vunpack.c.l.s8.bf16 %v1648_v40  ;;  %v2230_v43 = vunpack.c.h.s8.bf16 %v1662_v3 }
 0x418   :  { %4161 = vmatprep.mubr.bf16.mxu1 %v5289_v63  ;;  %3803 = vmatprep.subr.bf16.mxu0 %v2134_v26  ;;  %v2158_v63 = vunpack.c.l.s8.bf16 %v1630_v60  ;;  %v2183_v26 = vunpack.c.h.s8.bf16 %v1639_v38  ;;  %v1653_v60 = vld [vmem:[#allocation10 + $0x160] sm:$0xff]  ;;  %v1670_v38 = vld [vmem:[#allocation10 + $0x1e8] sm:$0xff] }
 0x419   :  { %4131 = vmatprep.subr.bf16.mxu1 %v2136_v28  ;;  %v1645_v28 = vld [vmem:[#allocation10 + $0x120] sm:$0xff] }
 0x41a   :  { %3804 = vmatpush1.bf16.msra.mxu0 %v2133_v33  ;;  %v1647_v33 = vld [vmem:[#allocation10 + $0x130] sm:$0xff] }
 0x41b   :  { %4132 = vmatpush1.bf16.msra.mxu1 %v2135_v44  ;;  %3805 = vmatprep.subr.bf16.mxu0 %v2142_v47  ;;  %v2189_v44 = vunpack.c.l.s8.bf16 %v1645_v28  ;;  %v2191_v47 = vunpack.c.l.s8.bf16 %v1647_v33 }
 0x41c   :  { %4133 = vmatprep.subr.bf16.mxu1 %v2144_v48  ;;  %v2200_v48 = vunpack.c.h.s8.bf16 %v1648_v40 }
 0x41e   :  { %3806 = vmatpush1.bf16.msra.mxu0 %v2141_v51  ;;  %v1656_v51 = vld [vmem:[#allocation10 + $0x178] sm:$0xff] }
 0x41f   :  { %4134 = vmatpush1.bf16.msra.mxu1 %v2143_v53  ;;  %3807 = vmatprep.subr.bf16.mxu0 %v2150_v25  ;;  %v2197_v53 = vunpack.c.h.s8.bf16 %v1645_v28  ;;  %v2199_v25 = vunpack.c.h.s8.bf16 %v1647_v33  ;;  %v2208_v54 = vunpack.c.l.s8.bf16 %v1656_v51  ;;  %v2246_v28 = vunpack.c.h.s8.bf16 %v1670_v38  ;;  %v1678_v33 = vld [vmem:[#allocation10 + $0x228] sm:$0xff] }
 0x420   :  { %4135 = vmatprep.subr.bf16.mxu1 %v2152_v58  ;;  %v2206_v58 = vunpack.c.l.s8.bf16 %v1654_v31  ;;  %v1677_v31 = vld [vmem:[#allocation10 + $0x220] sm:$0xff] }
 0x422   :  { %3808 = vmatpush1.bf16.msra.mxu0 %v2149_v57  ;;  %v1655_v57 = vld [vmem:[#allocation10 + $0x170] sm:$0xff] }
 0x423   :  { %4136 = vmatpush1.bf16.msra.mxu1 %v2151_v4  ;;  %3809 = vmatprep.subr.bf16.mxu0 %v2158_v63  ;;  %v2205_v4 = vunpack.c.l.s8.bf16 %v1653_v60  ;;  %v2207_v63 = vunpack.c.l.s8.bf16 %v1655_v57 }
 0x424   :  { %4137 = vmatprep.subr.bf16.mxu1 %v2160_v2  ;;  %v2216_v2 = vunpack.c.h.s8.bf16 %v1656_v51 }
 0x426   :  { %3810 = vmatpush1.bf16.msra.mxu0 %v2157_v5  ;;  %v1664_v5 = vld [vmem:[#allocation10 + $0x1b8] sm:$0xff] }
 0x427   :  { %4138 = vmatpush1.bf16.msra.mxu1 %v2159_v7  ;;  %3811 = vmatprep.subr.bf16.mxu0 %v2166_v52  ;;  %v2213_v7 = vunpack.c.h.s8.bf16 %v1653_v60  ;;  %v2215_v52 = vunpack.c.h.s8.bf16 %v1655_v57  ;;  %v2224_v34 = vunpack.c.l.s8.bf16 %v1664_v5  ;;  %v2262_v60 = vunpack.c.h.s8.bf16 %v1678_v33 }
 0x428   :  { %4139 = vmatprep.subr.bf16.mxu1 %v2168_v36  ;;  %v2222_v36 = vunpack.c.l.s8.bf16 %v1662_v3  ;;  %v1685_v3 = vld [vmem:[#allocation10 + $0x260] sm:$0xff] }
 0x42a   :  { %3812 = vmatpush1.bf16.msra.mxu0 %v2165_v11  ;;  %v1663_v11 = vld [vmem:[#allocation10 + $0x1b0] sm:$0xff] }
 0x42b   :  { %4140 = vmatpush1.bf16.msra.mxu1 %v2167_v42  ;;  %3813 = vmatprep.subr.bf16.mxu0 %v2174_v62  ;;  %v2221_v42 = vunpack.c.l.s8.bf16 %v1661_v8  ;;  %v2223_v62 = vunpack.c.l.s8.bf16 %v1663_v11 }
 0x42c   :  { %4141 = vmatprep.subr.bf16.mxu1 %v2176_v13  ;;  %v2232_v13 = vunpack.c.h.s8.bf16 %v1664_v5 }
 0x42e   :  { %3814 = vmatpush1.bf16.msra.mxu0 %v2173_v12  ;;  %v1672_v12 = vld [vmem:[#allocation10 + $0x1f8] sm:$0xff] }
 0x42f   :  { %4142 = vmatpush1.bf16.msra.mxu1 %v2175_v15  ;;  %3815 = vmatprep.subr.bf16.mxu0 %v2182_v17  ;;  %v2229_v15 = vunpack.c.h.s8.bf16 %v1661_v8  ;;  %v2231_v17 = vunpack.c.h.s8.bf16 %v1663_v11  ;;  %v2240_v40 = vunpack.c.l.s8.bf16 %v1672_v12  ;;  %v1696_v11 = vld [vmem:[#allocation10 + $0x2b8] sm:$0xff] }
 0x430   :  { %4143 = vmatprep.subr.bf16.mxu1 %v2184_v19  ;;  %v2238_v19 = vunpack.c.l.s8.bf16 %v1670_v38  ;;  %v1695_v38 = vld [vmem:[#allocation10 + $0x2b0] sm:$0xff] }
 0x432   :  { %3816 = vmatpush1.bf16.msra.mxu0 %v2181_v61  ;;  %v1671_v61 = vld [vmem:[#allocation10 + $0x1f0] sm:$0xff] }
 0x433   :  { %4144 = vmatpush1.bf16.msra.mxu1 %v2183_v26  ;;  %3817 = vmatprep.subr.bf16.mxu0 %v2190_v30  ;;  %v2237_v26 = vunpack.c.l.s8.bf16 %v1669_v55  ;;  %v2239_v30 = vunpack.c.l.s8.bf16 %v1671_v61 }
 0x434   :  { %4145 = vmatprep.subr.bf16.mxu1 %v2192_v32  ;;  %v2248_v32 = vunpack.c.h.s8.bf16 %v1672_v12 }
 0x436   :  { %3818 = vmatpush1.bf16.msra.mxu0 %v2189_v44  ;;  %v1680_v44 = vld [vmem:[#allocation10 + $0x238] sm:$0xff] }
 0x437   :  { %4146 = vmatpush1.bf16.msra.mxu1 %v2191_v47  ;;  %3819 = vmatprep.subr.bf16.mxu0 %v2198_v46  ;;  %v2245_v47 = vunpack.c.h.s8.bf16 %v1669_v55  ;;  %v2247_v46 = vunpack.c.h.s8.bf16 %v1671_v61  ;;  %v2256_v51 = vunpack.c.l.s8.bf16 %v1680_v44  ;;  %v2264_v57 = vunpack.c.h.s8.bf16 %v1680_v44  ;;  %v1702_v55 = vld [vmem:[#allocation10 + $0x2e8] sm:$0xff] }
 0x438   :  { %4147 = vmatprep.subr.bf16.mxu1 %v2200_v48  ;;  %v2254_v48 = vunpack.c.l.s8.bf16 %v1678_v33  ;;  %v1703_v33 = vld [vmem:[#allocation10 + $0x2f0] sm:$0xff] }
 0x43a   :  { %3820 = vmatpush1.bf16.msra.mxu0 %v2197_v53  ;;  %v1679_v53 = vld [vmem:[#allocation10 + $0x230] sm:$0xff] }
 0x43b   :  { %4148 = vmatpush1.bf16.msra.mxu1 %v2199_v25  ;;  %3821 = vmatprep.subr.bf16.mxu0 %v2206_v58  ;;  %v2253_v25 = vunpack.c.l.s8.bf16 %v1677_v31  ;;  %v2255_v58 = vunpack.c.l.s8.bf16 %v1679_v53 }
 0x43c   :  { %4149 = vmatprep.subr.bf16.mxu1 %v2208_v54  ;;  %v1686_v54 = vld [vmem:[#allocation10 + $0x268] sm:$0xff] }
 0x43e   :  { %3822 = vmatpush1.bf16.msra.mxu0 %v2205_v4  ;;  %v1688_v4 = vld [vmem:[#allocation10 + $0x278] sm:$0xff] }
 0x43f   :  { %4150 = vmatpush1.bf16.msra.mxu1 %v2207_v63  ;;  %3823 = vmatprep.subr.bf16.mxu0 %v2214_v45  ;;  %v2261_v63 = vunpack.c.h.s8.bf16 %v1677_v31  ;;  %v2263_v45 = vunpack.c.h.s8.bf16 %v1679_v53  ;;  %v2272_v5 = vunpack.c.l.s8.bf16 %v1688_v4  ;;  %v2280_v8 = vunpack.c.h.s8.bf16 %v1688_v4  ;;  %v1710_v31 = vld [vmem:[#allocation10 + $0x328] sm:$0xff] }
 0x440   :  { %4151 = vmatprep.subr.bf16.mxu1 %v2216_v2  ;;  %v2270_v2 = vunpack.c.l.s8.bf16 %v1686_v54 }
 0x442   :  { %3824 = vmatpush1.bf16.msra.mxu0 %v2213_v7  ;;  %v1687_v7 = vld [vmem:[#allocation10 + $0x270] sm:$0xff] }
 0x443   :  { %4152 = vmatpush1.bf16.msra.mxu1 %v2215_v52  ;;  %3825 = vmatprep.subr.bf16.mxu0 %v2222_v36  ;;  %v2269_v52 = vunpack.c.l.s8.bf16 %v1685_v3  ;;  %v2271_v36 = vunpack.c.l.s8.bf16 %v1687_v7 }
 0x444   :  { %4153 = vmatprep.subr.bf16.mxu1 %v2224_v34  ;;  %v1694_v34 = vld [vmem:[#allocation10 + $0x2a8] sm:$0xff] }
 0x446   :  { %3826 = vmatpush1.bf16.msra.mxu0 %v2221_v42  ;;  %v2277_v42 = vunpack.c.h.s8.bf16 %v1685_v3  ;;  %v1718_v3 = vld [vmem:[#allocation10 + $0x368] sm:$0xff] }
 0x447   :  { %4154 = vmatpush1.bf16.msra.mxu1 %v2223_v62  ;;  %3827 = vmatprep.subr.bf16.mxu0 %v2230_v43  ;;  %v2279_v62 = vunpack.c.h.s8.bf16 %v1687_v7  ;;  %v1693_v43 = vld [vmem:[#allocation10 + $0x2a0] sm:$0xff] }
 0x448   :  { %4155 = vmatprep.subr.bf16.mxu1 %v2232_v13  ;;  %v2288_v13 = vunpack.c.l.s8.bf16 %v1696_v11  ;;  %v2285_v12 = vunpack.c.l.s8.bf16 %v1693_v43  ;;  %v2293_v61 = vunpack.c.h.s8.bf16 %v1693_v43  ;;  %v1726_v43 = vld [vmem:[#allocation10 + $0x3a8] sm:$0xff] }
 0x44a   :  { %3828 = vmatpush1.bf16.msra.mxu0 %v2229_v15  ;;  %v2287_v15 = vunpack.c.l.s8.bf16 %v1695_v38 }
 0x44b   :  { %4156 = vmatpush1.bf16.msra.mxu1 %v2231_v17  ;;  %3829 = vmatprep.subr.bf16.mxu0 %v2238_v19  ;;  %v2294_v17 = vunpack.c.h.s8.bf16 %v1694_v34  ;;  %v2296_v19 = vunpack.c.h.s8.bf16 %v1696_v11 }
 0x44c   :  { %4157 = vmatprep.subr.bf16.mxu1 %v2240_v40  ;;  %v1704_v40 = vld [vmem:[#allocation10 + $0x2f8] sm:$0xff] }
 0x44e   :  { %3830 = vmatpush1.bf16.msra.mxu0 %v2237_v26  ;;  %v2295_v26 = vunpack.c.h.s8.bf16 %v1695_v38 }
 0x44f   :  { %4158 = vmatpush1.bf16.msra.mxu1 %v2239_v30  ;;  %3831 = vmatprep.subr.bf16.mxu0 %v2246_v28  ;;  %v2302_v30 = vunpack.c.l.s8.bf16 %v1702_v55  ;;  %v1701_v28 = vld [vmem:[#allocation10 + $0x2e0] sm:$0xff] }
 0x450   :  { %4159 = vmatprep.subr.bf16.mxu1 %v2248_v32  ;;  %v2304_v32 = vunpack.c.l.s8.bf16 %v1704_v40  ;;  %v2301_v44 = vunpack.c.l.s8.bf16 %v1701_v28  ;;  %v2309_v53 = vunpack.c.h.s8.bf16 %v1701_v28  ;;  %v1734_v28 = vld [vmem:[#allocation10 + $0x3e8] sm:$0xff] }
 0x452   :  { %3832 = vmatpush1.bf16.msra.mxu0 %v2245_v47  ;;  %v2303_v47 = vunpack.c.l.s8.bf16 %v1703_v33 }
 0x453   :  { %4160 = vmatpush1.bf16.msra.mxu1 %v2247_v46  ;;  %3842 = vmatprep.subr.bf16.mxu0 %v2254_v48  ;;  %v2310_v46 = vunpack.c.h.s8.bf16 %v1702_v55  ;;  %v2312_v48 = vunpack.c.h.s8.bf16 %v1704_v40  ;;  %v1727_v55 = vld [vmem:[#allocation10 + $0x3b0] sm:$0xff] }
 0x454   :  { %4170 = vmatprep.subr.bf16.mxu1 %v2256_v51  ;;  %v1712_v51 = vld [vmem:[#allocation10 + $0x338] sm:$0xff] }
 0x455   :  { %3834 = vmatmul.mubr.bf16.vlgmr.msra.gmra.mrb[20].mxu0 %v5317_v6 }
 0x456   :  { %4162 = vmatmul.mubr.bf16.vlgmr.msra.gmra.mrb[20].mxu1 %v5317_v6  ;;  %3843 = vmatpush1.bf16.msra.mxu0 %v2253_v25  ;;  %v2278_v6 = vunpack.c.h.s8.bf16 %v1686_v54  ;;  %v2311_v25 = vunpack.c.h.s8.bf16 %v1703_v33  ;;  %v2320_v54 = vunpack.c.l.s8.bf16 %v1712_v51 }
 0x457   :  { %3874 = vmatprep.mubr.bf16.mxu0 %v5319_v10  ;;  %4171 = vmatpush1.bf16.msra.mxu1 %v2255_v58  ;;  %v2318_v58 = vunpack.c.l.s8.bf16 %v1710_v31 }
 0x458   :  { %4202 = vmatprep.mubr.bf16.mxu1 %v5319_v10  ;;  %3844 = vmatprep.subr.bf16.mxu0 %v2262_v60  ;;  %v2286_v10 = vunpack.c.l.s8.bf16 %v1694_v34  ;;  %v1709_v60 = vld [vmem:[#allocation10 + $0x320] sm:$0xff]  ;;  %v1719_v34 = vld [vmem:[#allocation10 + $0x370] sm:$0xff] }
 0x459   :  { %4172 = vmatprep.subr.bf16.mxu1 %v2264_v57  ;;  %v1711_v57 = vld [vmem:[#allocation10 + $0x330] sm:$0xff]  ;;  %v2317_v4 = vunpack.c.l.s8.bf16 %v1709_v60  ;;  %v2325_v7 = vunpack.c.h.s8.bf16 %v1709_v60  ;;  %v1742_v60 = vld [vmem:[#allocation10 + $0x428] sm:$0xff] }
 0x45a   :  { %3845 = vmatpush1.bf16.msra.mxu0 %v2261_v63  ;;  %v2319_v63 = vunpack.c.l.s8.bf16 %v1711_v57 }
 0x45b   :  { %4173 = vmatpush1.bf16.msra.mxu1 %v2263_v45  ;;  %3846 = vmatprep.subr.bf16.mxu0 %v2270_v2  ;;  %v2326_v45 = vunpack.c.h.s8.bf16 %v1710_v31  ;;  %v2328_v2 = vunpack.c.h.s8.bf16 %v1712_v51  ;;  %v1735_v31 = vld [vmem:[#allocation10 + $0x3f0] sm:$0xff] }
 0x45c   :  { %4174 = vmatprep.subr.bf16.mxu1 %v2272_v5  ;;  %v1720_v5 = vld [vmem:[#allocation10 + $0x378] sm:$0xff] }
 0x45e   :  { %3847 = vmatpush1.bf16.msra.mxu0 %v2269_v52  ;;  %v2327_v52 = vunpack.c.h.s8.bf16 %v1711_v57 }
 0x45f   :  { %4175 = vmatpush1.bf16.msra.mxu1 %v2271_v36  ;;  %3848 = vmatprep.subr.bf16.mxu0 %v2278_v6  ;;  %v2334_v36 = vunpack.c.l.s8.bf16 %v1718_v3  ;;  %v1717_v6 = vld [vmem:[#allocation10 + $0x360] sm:$0xff] }
 0x460   :  { %4176 = vmatprep.subr.bf16.mxu1 %v2280_v8  ;;  %v2336_v8 = vunpack.c.l.s8.bf16 %v1720_v5  ;;  %v2333_v11 = vunpack.c.l.s8.bf16 %v1717_v6  ;;  %v2341_v38 = vunpack.c.h.s8.bf16 %v1717_v6 }
 0x462   :  { %3849 = vmatpush1.bf16.msra.mxu0 %v2277_v42  ;;  %v2335_v42 = vunpack.c.l.s8.bf16 %v1719_v34 }
 0x463   :  { %4177 = vmatpush1.bf16.msra.mxu1 %v2279_v62  ;;  %3850 = vmatprep.subr.bf16.mxu0 %v2286_v10  ;;  %v2342_v62 = vunpack.c.h.s8.bf16 %v1718_v3  ;;  %v2344_v10 = vunpack.c.h.s8.bf16 %v1720_v5  ;;  %v1743_v3 = vld [vmem:[#allocation10 + $0x430] sm:$0xff] }
 0x464   :  { %4178 = vmatprep.subr.bf16.mxu1 %v2288_v13  ;;  %v1728_v13 = vld [vmem:[#allocation10 + $0x3b8] sm:$0xff] }
 0x466   :  { %3851 = vmatpush1.bf16.msra.mxu0 %v2285_v12  ;;  %v2343_v12 = vunpack.c.h.s8.bf16 %v1719_v34 }
 0x467   :  { %4179 = vmatpush1.bf16.msra.mxu1 %v2287_v15  ;;  %3852 = vmatprep.subr.bf16.mxu0 %v2294_v17  ;;  %v2350_v15 = vunpack.c.l.s8.bf16 %v1726_v43  ;;  %v1725_v17 = vld [vmem:[#allocation10 + $0x3a0] sm:$0xff] }
 0x468   :  { %4180 = vmatprep.subr.bf16.mxu1 %v2296_v19  ;;  %v2352_v19 = vunpack.c.l.s8.bf16 %v1728_v13  ;;  %v2349_v40 = vunpack.c.l.s8.bf16 %v1725_v17  ;;  %v2357_v33 = vunpack.c.h.s8.bf16 %v1725_v17  ;;  %v1760_v17 = vld [vmem:[#allocation10 + $0x4b8] sm:$0xff] }
 0x46a   :  { %3853 = vmatpush1.bf16.msra.mxu0 %v2293_v61  ;;  %v2351_v61 = vunpack.c.l.s8.bf16 %v1727_v55 }
 0x46b   :  { %4181 = vmatpush1.bf16.msra.mxu1 %v2295_v26  ;;  %3854 = vmatprep.subr.bf16.mxu0 %v2302_v30  ;;  %v2358_v26 = vunpack.c.h.s8.bf16 %v1726_v43  ;;  %v2360_v30 = vunpack.c.h.s8.bf16 %v1728_v13  ;;  %v1751_v43 = vld [vmem:[#allocation10 + $0x470] sm:$0xff] }
 0x46c   :  { %4182 = vmatprep.subr.bf16.mxu1 %v2304_v32  ;;  %v1736_v32 = vld [vmem:[#allocation10 + $0x3f8] sm:$0xff] }
 0x46e   :  { %3855 = vmatpush1.bf16.msra.mxu0 %v2301_v44  ;;  %v2359_v44 = vunpack.c.h.s8.bf16 %v1727_v55  ;;  %v2407_v55 = vunpack.c.h.s8.bf16 %v1751_v43 }
 0x46f   :  { %4183 = vmatpush1.bf16.msra.mxu1 %v2303_v47  ;;  %3856 = vmatprep.subr.bf16.mxu0 %v2310_v46  ;;  %v2366_v47 = vunpack.c.l.s8.bf16 %v1734_v28  ;;  %v1733_v46 = vld [vmem:[#allocation10 + $0x3e0] sm:$0xff] }
 0x470   :  { %4184 = vmatprep.subr.bf16.mxu1 %v2312_v48  ;;  %v2368_v48 = vunpack.c.l.s8.bf16 %v1736_v32  ;;  %v2365_v51 = vunpack.c.l.s8.bf16 %v1733_v46  ;;  %v2373_v57 = vunpack.c.h.s8.bf16 %v1733_v46 }
 0x472   :  { %3857 = vmatpush1.bf16.msra.mxu0 %v2309_v53  ;;  %v2367_v53 = vunpack.c.l.s8.bf16 %v1735_v31 }
 0x473   :  { %4185 = vmatpush1.bf16.msra.mxu1 %v2311_v25  ;;  %3858 = vmatprep.subr.bf16.mxu0 %v2318_v58  ;;  %v2374_v25 = vunpack.c.h.s8.bf16 %v1734_v28  ;;  %v2376_v58 = vunpack.c.h.s8.bf16 %v1736_v32 }
 0x474   :  { %4186 = vmatprep.subr.bf16.mxu1 %v2320_v54  ;;  %v1744_v54 = vld [vmem:[#allocation10 + $0x438] sm:$0xff] }
 0x475   :  { %v2392_v6 = vunpack.c.h.s8.bf16 %v1744_v54 }
 0x476   :  { %3859 = vmatpush1.bf16.msra.mxu0 %v2317_v4  ;;  %v2375_v4 = vunpack.c.h.s8.bf16 %v1735_v31 }
 0x477   :  { %4187 = vmatpush1.bf16.msra.mxu1 %v2319_v63  ;;  %3860 = vmatprep.subr.bf16.mxu0 %v2326_v45  ;;  %v2382_v63 = vunpack.c.l.s8.bf16 %v1742_v60  ;;  %v1741_v45 = vld [vmem:[#allocation10 + $0x420] sm:$0xff] }
 0x478   :  { %4188 = vmatprep.subr.bf16.mxu1 %v2328_v2  ;;  %v2384_v2 = vunpack.c.l.s8.bf16 %v1744_v54  ;;  %v2381_v5 = vunpack.c.l.s8.bf16 %v1741_v45  ;;  %v2389_v34 = vunpack.c.h.s8.bf16 %v1741_v45 }
 0x47a   :  { %3861 = vmatpush1.bf16.msra.mxu0 %v2325_v7  ;;  %v2383_v7 = vunpack.c.l.s8.bf16 %v1743_v3 }
 0x47b   :  { %4189 = vmatpush1.bf16.msra.mxu1 %v2327_v52  ;;  %3862 = vmatprep.subr.bf16.mxu0 %v2334_v36  ;;  %v2390_v52 = vunpack.c.h.s8.bf16 %v1742_v60  ;;  %v1750_v36 = vld [vmem:[#allocation10 + $0x468] sm:$0xff] }
 0x47c   :  { %4190 = vmatprep.subr.bf16.mxu1 %v2336_v8  ;;  %v1752_v8 = vld [vmem:[#allocation10 + $0x478] sm:$0xff] }
 0x47e   :  { %3863 = vmatpush1.bf16.msra.mxu0 %v2333_v11  ;;  %v2391_v11 = vunpack.c.h.s8.bf16 %v1743_v3 }
 0x47f   :  { %4191 = vmatpush1.bf16.msra.mxu1 %v2335_v42  ;;  %3864 = vmatprep.subr.bf16.mxu0 %v2342_v62  ;;  %v2398_v42 = vunpack.c.l.s8.bf16 %v1750_v36  ;;  %v1749_v62 = vld [vmem:[#allocation10 + $0x460] sm:$0xff] }
 0x480   :  { %4192 = vmatprep.subr.bf16.mxu1 %v2344_v10  ;;  %v2400_v10 = vunpack.c.l.s8.bf16 %v1752_v8  ;;  %v2397_v13 = vunpack.c.l.s8.bf16 %v1749_v62 }
 0x482   :  { %3865 = vmatpush1.bf16.msra.mxu0 %v2341_v38  ;;  %v2399_v38 = vunpack.c.l.s8.bf16 %v1751_v43 }
 0x483   :  { %4193 = vmatpush1.bf16.msra.mxu1 %v2343_v12  ;;  %3866 = vmatprep.subr.bf16.mxu0 %v2350_v15  ;;  %v2408_v12 = vunpack.c.h.s8.bf16 %v1752_v8  ;;  %v1758_v15 = vld [vmem:[#allocation10 + $0x4a8] sm:$0xff] }
 0x484   :  { %4194 = vmatprep.subr.bf16.mxu1 %v2352_v19  ;;  %v2405_v19 = vunpack.c.h.s8.bf16 %v1749_v62  ;;  %v2422_v32 = vunpack.c.h.s8.bf16 %v1758_v15 }
 0x486   :  { %3867 = vmatpush1.bf16.msra.mxu0 %v2349_v40  ;;  %v1757_v40 = vld [vmem:[#allocation10 + $0x4a0] sm:$0xff] }
 0x487   :  { %4195 = vmatpush1.bf16.msra.mxu1 %v2351_v61  ;;  %3868 = vmatprep.subr.bf16.mxu0 %v2358_v26  ;;  %v2416_v61 = vunpack.c.l.s8.bf16 %v1760_v17  ;;  %v1759_v26 = vld [vmem:[#allocation10 + $0x4b0] sm:$0xff]  ;;  %v2421_v46 = vunpack.c.h.s8.bf16 %v1757_v40 }
 0x488   :  { %4196 = vmatprep.subr.bf16.mxu1 %v2360_v30  ;;  %v2413_v30 = vunpack.c.l.s8.bf16 %v1757_v40  ;;  %v2415_v28 = vunpack.c.l.s8.bf16 %v1759_v26 }
 0x48a   :  { %3869 = vmatpush1.bf16.msra.mxu0 %v2357_v33  ;;  %v2424_v33 = vunpack.c.h.s8.bf16 %v1760_v17 }
 0x48b   :  { %4197 = vmatpush1.bf16.msra.mxu1 %v2359_v44  ;;  %3870 = vmatprep.subr.bf16.mxu0 %v2366_v47  ;;  %v1766_v44 = vld [vmem:[#allocation10 + $0x4e8] sm:$0xff]  ;;  %v1768_v47 = vld [vmem:[#allocation10 + $0x4f8] sm:$0xff] }
 0x48c   :  { %4198 = vmatprep.subr.bf16.mxu1 %v2368_v48  ;;  %v2423_v48 = vunpack.c.h.s8.bf16 %v1759_v26  ;;  %v2430_v31 = vunpack.c.l.s8.bf16 %v1766_v44  ;;  %v2438_v54 = vunpack.c.h.s8.bf16 %v1766_v44 }
 0x48e   :  { %3871 = vmatpush1.bf16.msra.mxu0 %v2365_v51  ;;  %v1765_v51 = vld [vmem:[#allocation10 + $0x4e0] sm:$0xff] }
 0x48f   :  { %4199 = vmatpush1.bf16.msra.mxu1 %v2367_v53  ;;  %3872 = vmatprep.subr.bf16.mxu0 %v2374_v25  ;;  %v2432_v53 = vunpack.c.l.s8.bf16 %v1768_v47  ;;  %v1767_v25 = vld [vmem:[#allocation10 + $0x4f0] sm:$0xff]  ;;  %v2437_v45 = vunpack.c.h.s8.bf16 %v1765_v51 }
 0x490   :  { %4200 = vmatprep.subr.bf16.mxu1 %v2376_v58  ;;  %v2429_v58 = vunpack.c.l.s8.bf16 %v1765_v51  ;;  %v2431_v60 = vunpack.c.l.s8.bf16 %v1767_v25 }
 0x492   :  { %3873 = vmatpush1.bf16.msra.mxu0 %v2373_v57  ;;  %v2440_v57 = vunpack.c.h.s8.bf16 %v1768_v47 }
 0x493   :  { %4201 = vmatpush1.bf16.msra.mxu1 %v2375_v4  ;;  %3883 = vmatprep.subr.bf16.mxu0 %v2382_v63  ;;  %v1774_v4 = vld [vmem:[#allocation10 + $0x528] sm:$0xff]  ;;  %v1776_v63 = vld [vmem:[#allocation10 + $0x538] sm:$0xff] }
 0x494   :  { %4211 = vmatprep.subr.bf16.mxu1 %v2384_v2  ;;  %v2439_v2 = vunpack.c.h.s8.bf16 %v1767_v25  ;;  %v2446_v3 = vunpack.c.l.s8.bf16 %v1774_v4  ;;  %v2454_v8 = vunpack.c.h.s8.bf16 %v1774_v4 }
 0x495   :  { %3875 = vmatmul.mubr.bf16.vlgmr.msra.gmra.mrb[20].mxu0 %v5349_v21 }
 0x496   :  { %4203 = vmatmul.mubr.bf16.vlgmr.msra.gmra.mrb[20].mxu1 %v5349_v21  ;;  %3884 = vmatpush1.bf16.msra.mxu0 %v2381_v5  ;;  %v2406_v21 = vunpack.c.h.s8.bf16 %v1750_v36  ;;  %v1773_v5 = vld [vmem:[#allocation10 + $0x520] sm:$0xff] }
 0x497   :  { %3915 = vmatprep.mubr.bf16.mxu0 %v5351_v29  ;;  %4212 = vmatpush1.bf16.msra.mxu1 %v2383_v7  ;;  %v2448_v7 = vunpack.c.l.s8.bf16 %v1776_v63  ;;  %v2445_v36 = vunpack.c.l.s8.bf16 %v1773_v5  ;;  %v2453_v62 = vunpack.c.h.s8.bf16 %v1773_v5 }
 0x498   :  { %4243 = vmatprep.mubr.bf16.mxu1 %v5351_v29  ;;  %3885 = vmatprep.subr.bf16.mxu0 %v2390_v52  ;;  %v2414_v29 = vunpack.c.l.s8.bf16 %v1758_v15  ;;  %v1775_v52 = vld [vmem:[#allocation10 + $0x530] sm:$0xff] }
 0x499   :  { %4213 = vmatprep.subr.bf16.mxu1 %v2392_v6  ;;  %v2447_v6 = vunpack.c.l.s8.bf16 %v1775_v52 }
 0x49a   :  { %3886 = vmatpush1.bf16.msra.mxu0 %v2389_v34  ;;  %v2456_v34 = vunpack.c.h.s8.bf16 %v1776_v63 }
 0x49b   :  { %4214 = vmatpush1.bf16.msra.mxu1 %v2391_v11  ;;  %3887 = vmatprep.subr.bf16.mxu0 %v2398_v42  ;;  %v1782_v11 = vld [vmem:[#allocation10 + $0x568] sm:$0xff]  ;;  %v1784_v42 = vld [vmem:[#allocation10 + $0x578] sm:$0xff] }
 0x49c   :  { %4215 = vmatprep.subr.bf16.mxu1 %v2400_v10  ;;  %v2455_v10 = vunpack.c.h.s8.bf16 %v1775_v52  ;;  %v2462_v43 = vunpack.c.l.s8.bf16 %v1782_v11  ;;  %v2470_v17 = vunpack.c.h.s8.bf16 %v1782_v11 }
 0x49e   :  { %3888 = vmatpush1.bf16.msra.mxu0 %v2397_v13  ;;  %v1781_v13 = vld [vmem:[#allocation10 + $0x560] sm:$0xff] }
 0x49f   :  { %4216 = vmatpush1.bf16.msra.mxu1 %v2399_v38  ;;  %3889 = vmatprep.subr.bf16.mxu0 %v2406_v21  ;;  %v2464_v38 = vunpack.c.l.s8.bf16 %v1784_v42  ;;  %v1783_v21 = vld [vmem:[#allocation10 + $0x570] sm:$0xff]  ;;  %v2469_v40 = vunpack.c.h.s8.bf16 %v1781_v13 }
 0x4a0   :  { %4217 = vmatprep.subr.bf16.mxu1 %v2408_v12  ;;  %v2461_v12 = vunpack.c.l.s8.bf16 %v1781_v13  ;;  %v2463_v15 = vunpack.c.l.s8.bf16 %v1783_v21 }
 0x4a2   :  { %3890 = vmatpush1.bf16.msra.mxu0 %v2405_v19  ;;  %v2472_v19 = vunpack.c.h.s8.bf16 %v1784_v42 }
 0x4a3   :  { %4218 = vmatpush1.bf16.msra.mxu1 %v2407_v55  ;;  %3891 = vmatprep.subr.bf16.mxu0 %v2414_v29  ;;  %v1790_v55 = vld [vmem:[#allocation10 + $0x5a8] sm:$0xff]  ;;  %v1792_v29 = vld [vmem:[#allocation10 + $0x5b8] sm:$0xff] }
 0x4a4   :  { %4219 = vmatprep.subr.bf16.mxu1 %v2416_v61  ;;  %v2471_v61 = vunpack.c.h.s8.bf16 %v1783_v21  ;;  %v2478_v26 = vunpack.c.l.s8.bf16 %v1790_v55  ;;  %v2486_v47 = vunpack.c.h.s8.bf16 %v1790_v55 }
 0x4a6   :  { %3892 = vmatpush1.bf16.msra.mxu0 %v2413_v30  ;;  %v1789_v30 = vld [vmem:[#allocation10 + $0x5a0] sm:$0xff] }
 0x4a7   :  { %4220 = vmatpush1.bf16.msra.mxu1 %v2415_v28  ;;  %3893 = vmatprep.subr.bf16.mxu0 %v2422_v32  ;;  %v2480_v28 = vunpack.c.l.s8.bf16 %v1792_v29  ;;  %v1791_v32 = vld [vmem:[#allocation10 + $0x5b0] sm:$0xff]  ;;  %v2485_v51 = vunpack.c.h.s8.bf16 %v1789_v30 }
 0x4a8   :  { %4221 = vmatprep.subr.bf16.mxu1 %v2424_v33  ;;  %v2477_v33 = vunpack.c.l.s8.bf16 %v1789_v30  ;;  %v2479_v44 = vunpack.c.l.s8.bf16 %v1791_v32 }
 0x4aa   :  { %3894 = vmatpush1.bf16.msra.mxu0 %v2421_v46  ;;  %v2488_v46 = vunpack.c.h.s8.bf16 %v1792_v29 }
 0x4ab   :  { %4222 = vmatpush1.bf16.msra.mxu1 %v2423_v48  ;;  %3895 = vmatprep.subr.bf16.mxu0 %v2430_v31  ;;  %v1798_v48 = vld [vmem:[#allocation10 + $0x5e8] sm:$0xff]  ;;  %v1800_v31 = vld [vmem:[#allocation10 + $0x5f8] sm:$0xff] }
 0x4ac   :  { %4223 = vmatprep.subr.bf16.mxu1 %v2432_v53  ;;  %v2487_v53 = vunpack.c.h.s8.bf16 %v1791_v32  ;;  %v2494_v25 = vunpack.c.l.s8.bf16 %v1798_v48  ;;  %v2502_v63 = vunpack.c.h.s8.bf16 %v1798_v48  ;;  %v4507_v48 = vld [vmem:[#allocation13] sm:$0xff] }
 0x4ae   :  { %3896 = vmatpush1.bf16.msra.mxu0 %v2429_v58  ;;  %v1797_v58 = vld [vmem:[#allocation10 + $0x5e0] sm:$0xff] }
 0x4af   :  { %4224 = vmatpush1.bf16.msra.mxu1 %v2431_v60  ;;  %3897 = vmatprep.subr.bf16.mxu0 %v2438_v54  ;;  %v2496_v60 = vunpack.c.l.s8.bf16 %v1800_v31  ;;  %v1799_v54 = vld [vmem:[#allocation10 + $0x5f0] sm:$0xff]  ;;  %v2501_v5 = vunpack.c.h.s8.bf16 %v1797_v58 }
 0x4b0   :  { %4225 = vmatprep.subr.bf16.mxu1 %v2440_v57  ;;  %v2493_v57 = vunpack.c.l.s8.bf16 %v1797_v58  ;;  %v2495_v4 = vunpack.c.l.s8.bf16 %v1799_v54 }
 0x4b2   :  { %3898 = vmatpush1.bf16.msra.mxu0 %v2437_v45  ;;  %v2504_v45 = vunpack.c.h.s8.bf16 %v1800_v31 }
 0x4b3   :  { %4226 = vmatpush1.bf16.msra.mxu1 %v2439_v2  ;;  %3899 = vmatprep.subr.bf16.mxu0 %v2446_v3  ;;  %v1806_v2 = vld [vmem:[#allocation10 + $0x628] sm:$0xff]  ;;  %v1808_v3 = vld [vmem:[#allocation10 + $0x638] sm:$0xff] }
 0x4b4   :  { %4227 = vmatprep.subr.bf16.mxu1 %v2448_v7  ;;  %v2503_v7 = vunpack.c.h.s8.bf16 %v1799_v54  ;;  %v2510_v52 = vunpack.c.l.s8.bf16 %v1806_v2  ;;  %v2518_v42 = vunpack.c.h.s8.bf16 %v1806_v2  ;;  %v4512_v54 = vrot.slane %v4507_v48, %v5302_v18 }
 0x4b6   :  { %3900 = vmatpush1.bf16.msra.mxu0 %v2445_v36  ;;  %v1805_v36 = vld [vmem:[#allocation10 + $0x620] sm:$0xff] }
 0x4b7   :  { %4228 = vmatpush1.bf16.msra.mxu1 %v2447_v6  ;;  %3901 = vmatprep.subr.bf16.mxu0 %v2454_v8  ;;  %v2512_v6 = vunpack.c.l.s8.bf16 %v1808_v3  ;;  %v1807_v8 = vld [vmem:[#allocation10 + $0x630] sm:$0xff]  ;;  %v2517_v13 = vunpack.c.h.s8.bf16 %v1805_v36 }
 0x4b8   :  { %4229 = vmatprep.subr.bf16.mxu1 %v2456_v34  ;;  %v2509_v34 = vunpack.c.l.s8.bf16 %v1805_v36  ;;  %v2511_v11 = vunpack.c.l.s8.bf16 %v1807_v8 }
 0x4ba   :  { %3902 = vmatpush1.bf16.msra.mxu0 %v2453_v62  ;;  %v1814_v62 = vld [vmem:[#allocation10 + $0x668] sm:$0xff] }
 0x4bb   :  { %4230 = vmatpush1.bf16.msra.mxu1 %v2455_v10  ;;  %3903 = vmatprep.subr.bf16.mxu0 %v2462_v43  ;;  %v2520_v10 = vunpack.c.h.s8.bf16 %v1808_v3  ;;  %v1816_v43 = vld [vmem:[#allocation10 + $0x678] sm:$0xff]  ;;  %v2526_v21 = vunpack.c.l.s8.bf16 %v1814_v62 }
 0x4bc   :  { %4231 = vmatprep.subr.bf16.mxu1 %v2464_v38  ;;  %v2519_v38 = vunpack.c.h.s8.bf16 %v1807_v8  ;;  %v2536_v29 = vunpack.c.h.s8.bf16 %v1816_v43  ;;  %v4516_v8 = vrot.slane %v4507_v48, %v5278_v24 }
 0x4be   :  { %3904 = vmatpush1.bf16.msra.mxu0 %v2461_v12  ;;  %v1813_v12 = vld [vmem:[#allocation10 + $0x660] sm:$0xff] }
 0x4bf   :  { %4232 = vmatpush1.bf16.msra.mxu1 %v2463_v15  ;;  %3905 = vmatprep.subr.bf16.mxu0 %v2470_v17  ;;  %v2528_v15 = vunpack.c.l.s8.bf16 %v1816_v43  ;;  %v1815_v17 = vld [vmem:[#allocation10 + $0x670] sm:$0xff] }
 0x4c0   :  { %4233 = vmatprep.subr.bf16.mxu1 %v2472_v19  ;;  %v2525_v19 = vunpack.c.l.s8.bf16 %v1813_v12  ;;  %v2527_v55 = vunpack.c.l.s8.bf16 %v1815_v17  ;;  %v2535_v30 = vunpack.c.h.s8.bf16 %v1815_v17 }
 0x4c2   :  { %3906 = vmatpush1.bf16.msra.mxu0 %v2469_v40  ;;  %v1822_v40 = vld [vmem:[#allocation10 + $0x6a8] sm:$0xff] }
 0x4c3   :  { %4234 = vmatpush1.bf16.msra.mxu1 %v2471_v61  ;;  %3907 = vmatprep.subr.bf16.mxu0 %v2478_v26  ;;  %v1824_v61 = vld [vmem:[#allocation10 + $0x6b8] sm:$0xff]  ;;  %v2533_v26 = vunpack.c.h.s8.bf16 %v1813_v12  ;;  %v2550_v31 = vunpack.c.h.s8.bf16 %v1822_v40 }
 0x4c4   :  { %4235 = vmatprep.subr.bf16.mxu1 %v2480_v28  ;;  %v1821_v28 = vld [vmem:[#allocation10 + $0x6a0] sm:$0xff]  ;;  %v2544_v32 = vunpack.c.l.s8.bf16 %v1824_v61 }
 0x4c6   :  { %3908 = vmatpush1.bf16.msra.mxu0 %v2477_v33  ;;  %v1823_v33 = vld [vmem:[#allocation10 + $0x6b0] sm:$0xff] }
 0x4c7   :  { %4236 = vmatpush1.bf16.msra.mxu1 %v2479_v44  ;;  %3909 = vmatprep.subr.bf16.mxu0 %v2486_v47  ;;  %v2541_v44 = vunpack.c.l.s8.bf16 %v1821_v28  ;;  %v4457_v47 = vld [vmem:[#allocation11] sm:$0xff]  ;;  %v2551_v3 = vunpack.c.h.s8.bf16 %v1823_v33 }
 0x4c8   :  { %4237 = vmatprep.subr.bf16.mxu1 %v2488_v46  ;;  %v2543_v46 = vunpack.c.l.s8.bf16 %v1823_v33  ;;  %v4462_v58 = vrot.slane %v4457_v47, %v5302_v18  ;;  %v4474_v2 = vrot.slane %v4457_v47, %v5305_v23 }
 0x4ca   :  { %3910 = vmatpush1.bf16.msra.mxu0 %v2485_v51  ;;  %v4581_v51 = vld [vmem:[#allocation14] sm:$0xff] }
 0x4cb   :  { %4238 = vmatpush1.bf16.msra.mxu1 %v2487_v53  ;;  %3911 = vmatprep.subr.bf16.mxu0 %v2494_v25  ;;  %v2552_v53 = vunpack.c.h.s8.bf16 %v1824_v61  ;;  %v1830_v25 = vld [vmem:[#allocation10 + $0x6e8] sm:$0xff] }
 0x4cc   :  { %4239 = vmatprep.subr.bf16.mxu1 %v2496_v60  ;;  %v5500_v60 = vld [vmem:[#allocation10 + $0x6f8] sm:$0xff] }
 0x4ce   :  { %3912 = vmatpush1.bf16.msra.mxu0 %v2493_v57  ;;  %v4470_v57 = vrot.slane %v4457_v47, %v5326_v27 }
 0x4cf   :  { %4240 = vmatpush1.bf16.msra.mxu1 %v2495_v4  ;;  %3913 = vmatprep.subr.bf16.mxu0 %v2502_v63  ;;  %v4466_v4 = vrot.slane %v4457_v47, %v5278_v24  ;;  %v2549_v63 = vunpack.c.h.s8.bf16 %v1821_v28  ;;  %v1840_v47 = vld [vmem:[#allocation10 + $0x738] sm:$0xff] }
 0x4d0   :  { %4241 = vmatprep.subr.bf16.mxu1 %v2504_v45  ;;  %v5505_v45 = vunpack.c.l.bf16 %v4581_v51 }
 0x4d2   :  { %3914 = vmatpush1.bf16.msra.mxu0 %v2501_v5  ;;  %v2558_v5 = vunpack.c.l.s8.bf16 %v1830_v25  ;;  %v4589_v24 = vrot.slane %v5505_v45, %v5302_v18  ;;  %v4593_v61 = vrot.slane %v5505_v45, %v5326_v27 }
 0x4d3   :  { %4242 = vmatpush1.bf16.msra.mxu1 %v2503_v7  ;;  %3924 = vmatprep.subr.bf16.mxu0 %v2510_v52  ;;  %v1829_v7 = vld [vmem:[#allocation10 + $0x6e0] sm:$0xff]  ;;  %v5508_v52 = vld [vmem:[#allocation10 + $0x6f0] sm:$0xff] }
 0x4d4   :  { %4252 = vmatprep.subr.bf16.mxu1 %v2512_v6  ;;  %v4520_v6 = vrot.slane %v4507_v48, %v5326_v27  ;;  %v2557_v12 = vunpack.c.l.s8.bf16 %v1829_v7  ;;  %v2567_v51 = vunpack.c.h.s8.bf16 %v5508_v52 }
 0x4d5   :  { %3916 = vmatmul.mubr.bf16.vlgmr.msra.gmra.mrb[20].mxu0 %v5377_v50 }
 0x4d6   :  { %4244 = vmatmul.mubr.bf16.vlgmr.msra.gmra.mrb[20].mxu1 %v5377_v50  ;;  %3925 = vmatpush1.bf16.msra.mxu0 %v2509_v34  ;;  %v2534_v50 = vunpack.c.h.s8.bf16 %v1814_v62  ;;  %v2560_v34 = vunpack.c.l.s8.bf16 %v5500_v60 }
 0x4d7   :  { %3956 = vmatprep.mubr.bf16.mxu0 %v5379_v59  ;;  %4253 = vmatpush1.bf16.msra.mxu1 %v2511_v11 }
 0x4d8   :  { %4284 = vmatprep.mubr.bf16.mxu1 %v5379_v59  ;;  %3926 = vmatprep.subr.bf16.mxu0 %v2518_v42  ;;  %v2542_v59 = vunpack.c.l.s8.bf16 %v1822_v40 }
 0x4d9   :  { %4254 = vmatprep.subr.bf16.mxu1 %v2520_v10  ;;  %v4524_v10 = vrot.slane %v4507_v48, %v5305_v23 }
 0x4da   :  { %3927 = vmatpush1.bf16.msra.mxu0 %v2517_v13 }
 0x4db   :  { %4255 = vmatpush1.bf16.msra.mxu1 %v2519_v38  ;;  %3928 = vmatprep.subr.bf16.mxu0 %v2526_v21 }
 0x4dc   :  { %4256 = vmatprep.subr.bf16.mxu1 %v2528_v15  ;;  %v2559_v15 = vunpack.c.l.s8.bf16 %v5508_v52 }
 0x4de   :  { %3929 = vmatpush1.bf16.msra.mxu0 %v2525_v19 }
 0x4df   :  { %4257 = vmatpush1.bf16.msra.mxu1 %v2527_v55  ;;  %3930 = vmatprep.subr.bf16.mxu0 %v2534_v50 }
 0x4e0   :  { %4258 = vmatprep.subr.bf16.mxu1 %v2536_v29  ;;  %v2566_v29 = vunpack.c.h.s8.bf16 %v1830_v25  ;;  %v4629_v25 = vrot.slane %v4589_v24, %v5302_v18 }
 0x4e2   :  { %3931 = vmatpush1.bf16.msra.mxu0 %v2533_v26 }
 0x4e3   :  { %4259 = vmatpush1.bf16.msra.mxu1 %v2535_v30  ;;  %3932 = vmatprep.subr.bf16.mxu0 %v2542_v59  ;;  %v2568_v30 = vunpack.c.h.s8.bf16 %v5500_v60  ;;  %v1838_v59 = vld [vmem:[#allocation10 + $0x728] sm:$0xff] }
 0x4e4   :  { %4260 = vmatprep.subr.bf16.mxu1 %v2544_v32  ;;  %v4597_v32 = vrot.slane %v5505_v45, %v5358_v56  ;;  %v2574_v60 = vunpack.c.l.s8.bf16 %v1838_v59 }
 0x4e6   :  { %3933 = vmatpush1.bf16.msra.mxu0 %v2541_v44  ;;  %v4601_v44 = vrot.slane %v5505_v45, %v5394_v39  ;;  %v2576_v45 = vunpack.c.l.s8.bf16 %v1840_v47  ;;  %v4637_v52 = vrot.slane %v4597_v32, %v5302_v18  ;;  %v1856_v32 = vld [vmem:[#allocation10 + $0x7b8] sm:$0xff] }
 0x4e7   :  { %4261 = vmatpush1.bf16.msra.mxu1 %v2543_v46  ;;  %3934 = vmatprep.subr.bf16.mxu0 %v2550_v31  ;;  %v2565_v31 = vunpack.c.h.s8.bf16 %v1829_v7 }
 0x4e8   :  { %v3466_v36 = vpop.f32.mrb[16].mxu0  ;;  %4262 = vmatprep.subr.bf16.mxu1 %v2552_v53 }
 0x4e9   :  { %v4499_v11 = vmul.f32 %v4462_v58, %v3466_v36  ;;  %v3794_v42 = vpop.f32.mrb[16].mxu1  ;;  %v3468_v62 = vpop.f32.mrb[17].mxu0 }
 0x4ea   :  { %v4501_v43 = vmul.f32 %v4470_v57, %v3794_v42  ;;  %v4500_v13 = vmul.f32 %v4466_v4, %v3468_v62  ;;  %v3796_v38 = vpop.f32.mrb[17].mxu1  ;;  %v3470_v21 = vpop.f32.mrb[18].mxu0  ;;  %3935 = vmatpush1.bf16.msra.mxu0 %v2549_v63  ;;  %v4633_v63 = vrot.slane %v4593_v61, %v5302_v18 }
 0x4eb   :  { %v4549_v17 = vadd.f32 %v4512_v54, %v4499_v11  ;;  %v4502_v19 = vmul.f32 %v4474_v2, %v3796_v38  ;;  %v3798_v55 = vpop.f32.mrb[18].mxu1  ;;  %4263 = vmatpush1.bf16.msra.mxu1 %v2551_v3  ;;  %v3471_v50 = vpop.f32.mrb[19].mxu0  ;;  %3936 = vmatprep.subr.bf16.mxu0 %v2558_v5  ;;  %v1837_v54 = vld [vmem:[#allocation10 + $0x720] sm:$0xff]  ;;  %v1839_v2 = vld [vmem:[#allocation10 + $0x730] sm:$0xff]  ;;  %v2582_v11 = vunpack.c.h.s8.bf16 %v1838_v59  ;;  %v1848_v38 = vld [vmem:[#allocation10 + $0x778] sm:$0xff] }
 0x4ec   :  { %v4551_v40 = vadd.f32 %v4520_v6, %v4501_v43  ;;  %v4550_v23 = vadd.f32 %v4516_v8, %v4500_v13  ;;  %v3799_v26 = vpop.f32.mrb[19].mxu1  ;;  %4264 = vmatprep.subr.bf16.mxu1 %v2560_v34  ;;  %v2573_v6 = vunpack.c.l.s8.bf16 %v1837_v54  ;;  %v2575_v34 = vunpack.c.l.s8.bf16 %v1839_v2  ;;  %v1846_v13 = vld [vmem:[#allocation10 + $0x768] sm:$0xff] }
 0x4ed   :  { %v4557_v28 = vmax.f32 %v4549_v17, 0.0  ;;  %v4552_v33 = vadd.f32 %v4524_v10, %v4502_v19  ;;  %v4641_v10 = vrot.slane %v4601_v44, %v5302_v18  ;;  %v2584_v43 = vunpack.c.h.s8.bf16 %v1840_v47  ;;  %v1845_v19 = vld [vmem:[#allocation10 + $0x760] sm:$0xff] }
 0x4ee   :  { %v4559_v46 = vmax.f32 %v4551_v40, 0.0  ;;  %v4558_v48 = vmax.f32 %v4550_v23, 0.0  ;;  %3937 = vmatpush1.bf16.msra.mxu0 %v2557_v12  ;;  %v2583_v17 = vunpack.c.h.s8.bf16 %v1839_v2  ;;  %v2590_v24 = vunpack.c.l.s8.bf16 %v1846_v13 }
 0x4ef   :  { %v4565_v53 = vpack.c.bf16 %v4557_v28, %v4557_v28  ;;  %v4560_v58 = vmax.f32 %v4552_v33, 0.0  ;;  %4265 = vmatpush1.bf16.msra.mxu1 %v2559_v15  ;;  %3938 = vmatprep.subr.bf16.mxu0 %v2566_v29  ;;  %v2581_v15 = vunpack.c.h.s8.bf16 %v1837_v54  ;;  %v2592_v50 = vunpack.c.l.s8.bf16 %v1848_v38  ;;  %v1847_v29 = vld [vmem:[#allocation10 + $0x770] sm:$0xff]  ;;  %v1854_v28 = vld [vmem:[#allocation10 + $0x7a8] sm:$0xff]  ;;  %v1864_v54 = vld [vmem:[#allocation10 + $0x7f8] sm:$0xff] }
 0x4f0   :  { %v4567_v57 = vpack.c.bf16 %v4559_v46, %v4559_v46  ;;  %v4566_v4 = vpack.c.bf16 %v4558_v48, %v4558_v48  ;;  %4266 = vmatprep.subr.bf16.mxu1 %v2568_v30  ;;  %v2589_v23 = vunpack.c.l.s8.bf16 %v1845_v19  ;;  %v2591_v26 = vunpack.c.l.s8.bf16 %v1847_v29  ;;  %v1853_v46 = vld [vmem:[#allocation10 + $0x7a0] sm:$0xff] }
 0x4f1   :  { %v4573_v3 = vunpack.c.l.bf16 %v4565_v53  ;;  %v4568_v5 = vpack.c.bf16 %v4560_v58, %v4560_v58  ;;  %v2598_v30 = vunpack.c.h.s8.bf16 %v1846_v13  ;;  %v2600_v59 = vunpack.c.h.s8.bf16 %v1848_v38 }
 0x4f2   :  { %v4575_v7 = vunpack.c.l.bf16 %v4567_v57  ;;  %v4574_v36 = vunpack.c.l.bf16 %v4566_v4  ;;  %3939 = vmatpush1.bf16.msra.mxu0 %v2565_v31  ;;  %v2597_v33 = vunpack.c.h.s8.bf16 %v1845_v19  ;;  %v2599_v44 = vunpack.c.h.s8.bf16 %v1847_v29  ;;  %v1855_v31 = vld [vmem:[#allocation10 + $0x7b0] sm:$0xff] }
 0x4f3   :  { %v4658_v8 = vmul.f32 %v4629_v25, %v4573_v3  ;;  %4267 = vmatpush1.bf16.msra.mxu1 %v2567_v51  ;;  %3940 = vmatprep.subr.bf16.mxu0 %v2574_v60  ;;  %v4576_v62 = vunpack.c.l.bf16 %v4568_v5  ;;  %v2606_v47 = vunpack.c.l.s8.bf16 %v1854_v28  ;;  %v2608_v48 = vunpack.c.l.s8.bf16 %v1856_v32  ;;  %v1862_v60 = vld [vmem:[#allocation10 + $0x7e8] sm:$0xff]  ;;  %v1863_v3 = vld [vmem:[#allocation10 + $0x7f0] sm:$0xff] }
 0x4f4   :  { %v4659_v42 = vmul.f32 %v4633_v63, %v4574_v36  ;;  %4268 = vmatprep.subr.bf16.mxu1 %v2576_v45  ;;  %v4660_v21 = vmul.f32 %v4637_v52, %v4575_v7  ;;  %v2605_v51 = vunpack.c.l.s8.bf16 %v1853_v46  ;;  %v2607_v53 = vunpack.c.l.s8.bf16 %v1855_v31  ;;  %v1861_v45 = vld [vmem:[#allocation10 + $0x7e0] sm:$0xff] }
 0x4f5   :  { %v4661_v55 = vmul.f32 %v4641_v10, %v4576_v62  ;;  %v2614_v25 = vunpack.c.h.s8.bf16 %v1854_v28  ;;  %v2616_v58 = vunpack.c.h.s8.bf16 %v1856_v32  ;;  %v2613_v57 = vunpack.c.h.s8.bf16 %v1853_v46  ;;  %v1869_v62 = vld [vmem:[#allocation10 + $0x820] sm:$0xff]  ;;  %v1888_v28 = vld [vmem:[#allocation10 + $0x8b8] sm:$0xff]  ;;  %v1887_v46 = vld [vmem:[#allocation10 + $0x8b0] sm:$0xff] }
 0x4f6   :  { %v4666_v12 = vadd.f32 %v4659_v42, %v4658_v8  ;;  %3941 = vmatpush1.bf16.msra.mxu0 %v2573_v6  ;;  %v2615_v4 = vunpack.c.h.s8.bf16 %v1855_v31  ;;  %v2622_v63 = vunpack.c.l.s8.bf16 %v1862_v60  ;;  %v2624_v2 = vunpack.c.l.s8.bf16 %v1864_v54  ;;  %v1870_v6 = vld [vmem:[#allocation10 + $0x828] sm:$0xff]  ;;  %v1872_v8 = vld [vmem:[#allocation10 + $0x838] sm:$0xff] }
 0x4f7   :  { %4269 = vmatpush1.bf16.msra.mxu1 %v2575_v34  ;;  %3942 = vmatprep.subr.bf16.mxu0 %v2582_v11  ;;  %v2621_v5 = vunpack.c.l.s8.bf16 %v1861_v45  ;;  %v2623_v7 = vunpack.c.l.s8.bf16 %v1863_v3  ;;  %v2630_v52 = vunpack.c.h.s8.bf16 %v1862_v60  ;;  %v2632_v36 = vunpack.c.h.s8.bf16 %v1864_v54 }
 0x4f8   :  { %4270 = vmatprep.subr.bf16.mxu1 %v2584_v43  ;;  %v4667_v40 = vadd.f32 %v4666_v12, %v4660_v21  ;;  %v2629_v34 = vunpack.c.h.s8.bf16 %v1861_v45  ;;  %v2631_v11 = vunpack.c.h.s8.bf16 %v1863_v3  ;;  %v2638_v42 = vunpack.c.l.s8.bf16 %v1870_v6  ;;  %v1871_v43 = vld [vmem:[#allocation10 + $0x830] sm:$0xff]  ;;  %v1878_v12 = vld [vmem:[#allocation10 + $0x868] sm:$0xff] }
 0x4f9   :  { %v2640_v10 = vunpack.c.l.s8.bf16 %v1872_v8  ;;  %v2637_v13 = vunpack.c.l.s8.bf16 %v1869_v62  ;;  %v2639_v38 = vunpack.c.l.s8.bf16 %v1871_v43  ;;  %v2646_v21 = vunpack.c.h.s8.bf16 %v1870_v6  ;;  %v1895_v45 = vld [vmem:[#allocation10 + $0x8f0] sm:$0xff] }
 0x4fa   :  { %3943 = vmatpush1.bf16.msra.mxu0 %v2581_v15  ;;  %v5529_v61 = vadd.f32 %v4667_v40, %v4661_v55  ;;  %v2648_v15 = vunpack.c.h.s8.bf16 %v1872_v8  ;;  %v2647_v19 = vunpack.c.h.s8.bf16 %v1871_v43  ;;  %v2654_v55 = vunpack.c.l.s8.bf16 %v1878_v12  ;;  %v1879_v40 = vld [vmem:[#allocation10 + $0x870] sm:$0xff] }
 0x4fb   :  { %4271 = vmatpush1.bf16.msra.mxu1 %v2583_v17  ;;  %3944 = vmatprep.subr.bf16.mxu0 %v2590_v24  ;;  %v1880_v17 = vld [vmem:[#allocation10 + $0x878] sm:$0xff]  ;;  %v2645_v24 = vunpack.c.h.s8.bf16 %v1869_v62  ;;  %v2671_v31 = vunpack.c.l.s8.bf16 %v1887_v46  ;;  %v2679_v54 = vunpack.c.h.s8.bf16 %v1887_v46  ;;  %v2687_v3 = vunpack.c.l.s8.bf16 %v1895_v45  ;;  %v1903_v62 = vld [vmem:[#allocation10 + $0x930] sm:$0xff] }
 0x4fc   :  { %4272 = vmatprep.subr.bf16.mxu1 %v2592_v50  ;;  %v1877_v50 = vld [vmem:[#allocation10 + $0x860] sm:$0xff]  ;;  %v2656_v29 = vunpack.c.l.s8.bf16 %v1880_v17  ;;  %v2695_v8 = vunpack.c.h.s8.bf16 %v1895_v45  ;;  %v2703_v43 = vunpack.c.l.s8.bf16 %v1903_v62 }
 0x4fd   :  { %v2661_v32 = vunpack.c.h.s8.bf16 %v1877_v50 }
 0x4fe   :  { %3945 = vmatpush1.bf16.msra.mxu0 %v2589_v23  ;;  %v2653_v23 = vunpack.c.l.s8.bf16 %v1877_v50  ;;  %v1911_v50 = vld [vmem:[#allocation10 + $0x970] sm:$0xff] }
 0x4ff   :  { %4273 = vmatpush1.bf16.msra.mxu1 %v2591_v26  ;;  %3946 = vmatprep.subr.bf16.mxu0 %v2598_v30  ;;  %v2655_v26 = vunpack.c.l.s8.bf16 %v1879_v40  ;;  %v2664_v30 = vunpack.c.h.s8.bf16 %v1880_v17  ;;  %v2711_v17 = vunpack.c.h.s8.bf16 %v1903_v62 }
 0x500   :  { %4274 = vmatprep.subr.bf16.mxu1 %v2600_v59  ;;  %v1886_v59 = vld [vmem:[#allocation10 + $0x8a8] sm:$0xff] }
 0x502   :  { %3947 = vmatpush1.bf16.msra.mxu0 %v2597_v33  ;;  %v2663_v33 = vunpack.c.h.s8.bf16 %v1879_v40  ;;  %v2719_v40 = vunpack.c.l.s8.bf16 %v1911_v50 }
 0x503   :  { %4275 = vmatpush1.bf16.msra.mxu1 %v2599_v44  ;;  %3948 = vmatprep.subr.bf16.mxu0 %v2606_v47  ;;  %v1885_v44 = vld [vmem:[#allocation10 + $0x8a0] sm:$0xff]  ;;  %v2672_v47 = vunpack.c.l.s8.bf16 %v1888_v28 }
 0x504   :  { %4276 = vmatprep.subr.bf16.mxu1 %v2608_v48  ;;  %v2669_v48 = vunpack.c.l.s8.bf16 %v1885_v44  ;;  %v2677_v60 = vunpack.c.h.s8.bf16 %v1885_v44  ;;  %v1919_v44 = vld [vmem:[#allocation10 + $0x9b0] sm:$0xff] }
 0x505   :  { %v2735_v46 = vunpack.c.l.s8.bf16 %v1919_v44 }
 0x506   :  { %3949 = vmatpush1.bf16.msra.mxu0 %v2605_v51  ;;  %v2678_v51 = vunpack.c.h.s8.bf16 %v1886_v59 }
 0x507   :  { %4277 = vmatpush1.bf16.msra.mxu1 %v2607_v53  ;;  %3950 = vmatprep.subr.bf16.mxu0 %v2614_v25  ;;  %v2680_v53 = vunpack.c.h.s8.bf16 %v1888_v28  ;;  %v1894_v25 = vld [vmem:[#allocation10 + $0x8e8] sm:$0xff]  ;;  %v2727_v28 = vunpack.c.h.s8.bf16 %v1911_v50 }
 0x508   :  { %4278 = vmatprep.subr.bf16.mxu1 %v2616_v58  ;;  %v1896_v58 = vld [vmem:[#allocation10 + $0x8f8] sm:$0xff] }
 0x50a   :  { %3951 = vmatpush1.bf16.msra.mxu0 %v2613_v57  ;;  %v2686_v57 = vunpack.c.l.s8.bf16 %v1894_v25 }
 0x50b   :  { %4279 = vmatpush1.bf16.msra.mxu1 %v2615_v4  ;;  %3952 = vmatprep.subr.bf16.mxu0 %v2622_v63  ;;  %v1893_v4 = vld [vmem:[#allocation10 + $0x8e0] sm:$0xff]  ;;  %v2688_v63 = vunpack.c.l.s8.bf16 %v1896_v58 }
 0x50c   :  { %4280 = vmatprep.subr.bf16.mxu1 %v2624_v2  ;;  %v2685_v2 = vunpack.c.l.s8.bf16 %v1893_v4  ;;  %v2693_v6 = vunpack.c.h.s8.bf16 %v1893_v4  ;;  %v1927_v4 = vld [vmem:[#allocation10 + $0x9f0] sm:$0xff] }
 0x50d   :  { %v2751_v45 = vunpack.c.l.s8.bf16 %v1927_v4 }
 0x50e   :  { %3953 = vmatpush1.bf16.msra.mxu0 %v2621_v5  ;;  %v2694_v5 = vunpack.c.h.s8.bf16 %v1894_v25 }
 0x50f   :  { %4281 = vmatpush1.bf16.msra.mxu1 %v2623_v7  ;;  %3954 = vmatprep.subr.bf16.mxu0 %v2630_v52  ;;  %v2696_v7 = vunpack.c.h.s8.bf16 %v1896_v58  ;;  %v1902_v52 = vld [vmem:[#allocation10 + $0x928] sm:$0xff]  ;;  %v2743_v58 = vunpack.c.h.s8.bf16 %v1919_v44 }
 0x510   :  { %4282 = vmatprep.subr.bf16.mxu1 %v2632_v36  ;;  %v1904_v36 = vld [vmem:[#allocation10 + $0x938] sm:$0xff] }
 0x512   :  { %3955 = vmatpush1.bf16.msra.mxu0 %v2629_v34  ;;  %v2702_v34 = vunpack.c.l.s8.bf16 %v1902_v52 }
 0x513   :  { %4283 = vmatpush1.bf16.msra.mxu1 %v2631_v11  ;;  %3965 = vmatprep.subr.bf16.mxu0 %v2638_v42  ;;  %v1901_v11 = vld [vmem:[#allocation10 + $0x920] sm:$0xff]  ;;  %v2704_v42 = vunpack.c.l.s8.bf16 %v1904_v36 }
 0x514   :  { %4293 = vmatprep.subr.bf16.mxu1 %v2640_v10  ;;  %v2701_v10 = vunpack.c.l.s8.bf16 %v1901_v11 }
 0x515   :  { %3957 = vmatmul.mubr.bf16.vlgmr.msra.gmra.mrb[20].mxu0 %v5410_v41 }
 0x516   :  { %4285 = vmatmul.mubr.bf16.vlgmr.msra.gmra.mrb[20].mxu1 %v5410_v41  ;;  %3966 = vmatpush1.bf16.msra.mxu0 %v2637_v13  ;;  %v2662_v41 = vunpack.c.h.s8.bf16 %v1878_v12  ;;  %v2710_v13 = vunpack.c.h.s8.bf16 %v1902_v52  ;;  %v1912_v12 = vld [vmem:[#allocation10 + $0x978] sm:$0xff] }
 0x517   :  { %3997 = vmatprep.mubr.bf16.mxu0 %v5412_v49  ;;  %4294 = vmatpush1.bf16.msra.mxu1 %v2639_v38  ;;  %v2712_v38 = vunpack.c.h.s8.bf16 %v1904_v36  ;;  %v2759_v36 = vunpack.c.h.s8.bf16 %v1927_v4 }
 0x518   :  { %4325 = vmatprep.mubr.bf16.mxu1 %v5412_v49  ;;  %3967 = vmatprep.subr.bf16.mxu0 %v2646_v21  ;;  %v2670_v49 = vunpack.c.l.s8.bf16 %v1886_v59  ;;  %v1910_v21 = vld [vmem:[#allocation10 + $0x968] sm:$0xff] }
 0x519   :  { %4295 = vmatprep.subr.bf16.mxu1 %v2648_v15  ;;  %v2709_v15 = vunpack.c.h.s8.bf16 %v1901_v11  ;;  %v1935_v11 = vld [vmem:[#allocation10 + $0xa30] sm:$0xff] }
 0x51a   :  { %3968 = vmatpush1.bf16.msra.mxu0 %v2645_v24  ;;  %v2718_v24 = vunpack.c.l.s8.bf16 %v1910_v21  ;;  %v2767_v62 = vunpack.c.l.s8.bf16 %v1935_v11 }
 0x51b   :  { %4296 = vmatpush1.bf16.msra.mxu1 %v2647_v19  ;;  %3969 = vmatprep.subr.bf16.mxu0 %v2654_v55  ;;  %v1909_v19 = vld [vmem:[#allocation10 + $0x960] sm:$0xff]  ;;  %v2720_v55 = vunpack.c.l.s8.bf16 %v1912_v12 }
 0x51c   :  { %4297 = vmatprep.subr.bf16.mxu1 %v2656_v29  ;;  %v2717_v29 = vunpack.c.l.s8.bf16 %v1909_v19  ;;  %v2725_v59 = vunpack.c.h.s8.bf16 %v1909_v19  ;;  %v1943_v19 = vld [vmem:[#allocation10 + $0xa70] sm:$0xff] }
 0x51d   :  { %v2783_v50 = vunpack.c.l.s8.bf16 %v1943_v19 }
 0x51e   :  { %3970 = vmatpush1.bf16.msra.mxu0 %v2653_v23  ;;  %v2726_v23 = vunpack.c.h.s8.bf16 %v1910_v21 }
 0x51f   :  { %4298 = vmatpush1.bf16.msra.mxu1 %v2655_v26  ;;  %3971 = vmatprep.subr.bf16.mxu0 %v2662_v41  ;;  %v2728_v26 = vunpack.c.h.s8.bf16 %v1912_v12  ;;  %v1918_v41 = vld [vmem:[#allocation10 + $0x9a8] sm:$0xff]  ;;  %v2775_v12 = vunpack.c.h.s8.bf16 %v1935_v11 }
 0x520   :  { %4299 = vmatprep.subr.bf16.mxu1 %v2664_v30  ;;  %v1920_v30 = vld [vmem:[#allocation10 + $0x9b8] sm:$0xff] }
 0x522   :  { %3972 = vmatpush1.bf16.msra.mxu0 %v2661_v32  ;;  %v2734_v32 = vunpack.c.l.s8.bf16 %v1918_v41 }
 0x523   :  { %4300 = vmatpush1.bf16.msra.mxu1 %v2663_v33  ;;  %3973 = vmatprep.subr.bf16.mxu0 %v2670_v49  ;;  %v1917_v33 = vld [vmem:[#allocation10 + $0x9a0] sm:$0xff]  ;;  %v2736_v49 = vunpack.c.l.s8.bf16 %v1920_v30 }
 0x524   :  { %4301 = vmatprep.subr.bf16.mxu1 %v2672_v47  ;;  %v2733_v47 = vunpack.c.l.s8.bf16 %v1917_v33  ;;  %v2741_v25 = vunpack.c.h.s8.bf16 %v1917_v33 }
 0x526   :  { %3974 = vmatpush1.bf16.msra.mxu0 %v2669_v48  ;;  %v2742_v48 = vunpack.c.h.s8.bf16 %v1918_v41  ;;  %v2791_v41 = vunpack.c.h.s8.bf16 %v1943_v19 }
 0x527   :  { %4302 = vmatpush1.bf16.msra.mxu1 %v2671_v31  ;;  %3975 = vmatprep.subr.bf16.mxu0 %v2678_v51  ;;  %v2744_v31 = vunpack.c.h.s8.bf16 %v1920_v30  ;;  %v1926_v51 = vld [vmem:[#allocation10 + $0x9e8] sm:$0xff]  ;;  %v1949_v30 = vld [vmem:[#allocation10 + $0xaa0] sm:$0xff] }
 0x528   :  { %4303 = vmatprep.subr.bf16.mxu1 %v2680_v53  ;;  %v1928_v53 = vld [vmem:[#allocation10 + $0x9f8] sm:$0xff] }
 0x52a   :  { %3976 = vmatpush1.bf16.msra.mxu0 %v2677_v60  ;;  %v2750_v60 = vunpack.c.l.s8.bf16 %v1926_v51 }
 0x52b   :  { %4304 = vmatpush1.bf16.msra.mxu1 %v2679_v54  ;;  %3977 = vmatprep.subr.bf16.mxu0 %v2686_v57  ;;  %v1925_v54 = vld [vmem:[#allocation10 + $0x9e0] sm:$0xff]  ;;  %v2752_v57 = vunpack.c.l.s8.bf16 %v1928_v53 }
 0x52c   :  { %4305 = vmatprep.subr.bf16.mxu1 %v2688_v63  ;;  %v2749_v63 = vunpack.c.l.s8.bf16 %v1925_v54  ;;  %v2757_v52 = vunpack.c.h.s8.bf16 %v1925_v54 }
 0x52e   :  { %3978 = vmatpush1.bf16.msra.mxu0 %v2685_v2  ;;  %v2758_v2 = vunpack.c.h.s8.bf16 %v1926_v51 }
 0x52f   :  { %4306 = vmatpush1.bf16.msra.mxu1 %v2687_v3  ;;  %3979 = vmatprep.subr.bf16.mxu0 %v2694_v5  ;;  %v2760_v3 = vunpack.c.h.s8.bf16 %v1928_v53  ;;  %v1934_v5 = vld [vmem:[#allocation10 + $0xa28] sm:$0xff]  ;;  %v1957_v53 = vld [vmem:[#allocation10 + $0xae0] sm:$0xff] }
 0x530   :  { %4307 = vmatprep.subr.bf16.mxu1 %v2696_v7  ;;  %v1936_v7 = vld [vmem:[#allocation10 + $0xa38] sm:$0xff] }
 0x532   :  { %3980 = vmatpush1.bf16.msra.mxu0 %v2693_v6  ;;  %v2766_v6 = vunpack.c.l.s8.bf16 %v1934_v5 }
 0x533   :  { %4308 = vmatpush1.bf16.msra.mxu1 %v2695_v8  ;;  %3981 = vmatprep.subr.bf16.mxu0 %v2702_v34  ;;  %v1933_v8 = vld [vmem:[#allocation10 + $0xa20] sm:$0xff]  ;;  %v2768_v34 = vunpack.c.l.s8.bf16 %v1936_v7 }
 0x534   :  { %4309 = vmatprep.subr.bf16.mxu1 %v2704_v42  ;;  %v2765_v42 = vunpack.c.l.s8.bf16 %v1933_v8  ;;  %v2773_v21 = vunpack.c.h.s8.bf16 %v1933_v8 }
 0x536   :  { %3982 = vmatpush1.bf16.msra.mxu0 %v2701_v10  ;;  %v2774_v10 = vunpack.c.h.s8.bf16 %v1934_v5 }
 0x537   :  { %4310 = vmatpush1.bf16.msra.mxu1 %v2703_v43  ;;  %3983 = vmatprep.subr.bf16.mxu0 %v2710_v13  ;;  %v1942_v43 = vld [vmem:[#allocation10 + $0xa68] sm:$0xff]  ;;  %v2776_v13 = vunpack.c.h.s8.bf16 %v1936_v7  ;;  %v1965_v7 = vld [vmem:[#allocation10 + $0xb20] sm:$0xff] }
 0x538   :  { %4311 = vmatprep.subr.bf16.mxu1 %v2712_v38  ;;  %v1944_v38 = vld [vmem:[#allocation10 + $0xa78] sm:$0xff] }
 0x53a   :  { %3984 = vmatpush1.bf16.msra.mxu0 %v2709_v15  ;;  %v2782_v15 = vunpack.c.l.s8.bf16 %v1942_v43 }
 0x53b   :  { %4312 = vmatpush1.bf16.msra.mxu1 %v2711_v17  ;;  %3985 = vmatprep.subr.bf16.mxu0 %v2718_v24  ;;  %v1941_v17 = vld [vmem:[#allocation10 + $0xa60] sm:$0xff]  ;;  %v2784_v24 = vunpack.c.l.s8.bf16 %v1944_v38 }
 0x53c   :  { %4313 = vmatprep.subr.bf16.mxu1 %v2720_v55  ;;  %v2781_v55 = vunpack.c.l.s8.bf16 %v1941_v17 }
 0x53e   :  { %3986 = vmatpush1.bf16.msra.mxu0 %v2717_v29  ;;  %v2792_v29 = vunpack.c.h.s8.bf16 %v1944_v38  ;;  %v1973_v38 = vld [vmem:[#allocation10 + $0xb60] sm:$0xff] }
 0x53f   :  { %4314 = vmatpush1.bf16.msra.mxu1 %v2719_v40  ;;  %3987 = vmatprep.subr.bf16.mxu0 %v2726_v23  ;;  %v1950_v40 = vld [vmem:[#allocation10 + $0xaa8] sm:$0xff]  ;;  %v1952_v23 = vld [vmem:[#allocation10 + $0xab8] sm:$0xff] }
 0x540   :  { %4315 = vmatprep.subr.bf16.mxu1 %v2728_v26  ;;  %v2789_v26 = vunpack.c.h.s8.bf16 %v1941_v17  ;;  %v2808_v44 = vunpack.c.h.s8.bf16 %v1952_v23 }
 0x542   :  { %3988 = vmatpush1.bf16.msra.mxu0 %v2725_v59  ;;  %v2800_v59 = vunpack.c.l.s8.bf16 %v1952_v23  ;;  %v1981_v23 = vld [vmem:[#allocation10 + $0xba0] sm:$0xff] }
 0x543   :  { %4316 = vmatpush1.bf16.msra.mxu1 %v2727_v28  ;;  %3989 = vmatprep.subr.bf16.mxu0 %v2734_v32  ;;  %v1951_v28 = vld [vmem:[#allocation10 + $0xab0] sm:$0xff]  ;;  %v2797_v32 = vunpack.c.l.s8.bf16 %v1949_v30 }
 0x544   :  { %4317 = vmatprep.subr.bf16.mxu1 %v2736_v49  ;;  %v2799_v33 = vunpack.c.l.s8.bf16 %v1951_v28  ;;  %v2806_v49 = vunpack.c.h.s8.bf16 %v1950_v40 }
 0x546   :  { %3990 = vmatpush1.bf16.msra.mxu0 %v2733_v47  ;;  %v1958_v47 = vld [vmem:[#allocation10 + $0xae8] sm:$0xff] }
 0x547   :  { %4318 = vmatpush1.bf16.msra.mxu1 %v2735_v46  ;;  %3991 = vmatprep.subr.bf16.mxu0 %v2742_v48  ;;  %v1960_v46 = vld [vmem:[#allocation10 + $0xaf8] sm:$0xff]  ;;  %v2805_v48 = vunpack.c.h.s8.bf16 %v1949_v30  ;;  %v2814_v51 = vunpack.c.l.s8.bf16 %v1958_v47 }
 0x548   :  { %4319 = vmatprep.subr.bf16.mxu1 %v2744_v31  ;;  %v2807_v31 = vunpack.c.h.s8.bf16 %v1951_v28  ;;  %v2824_v4 = vunpack.c.h.s8.bf16 %v1960_v46 }
 0x54a   :  { %3992 = vmatpush1.bf16.msra.mxu0 %v2741_v25  ;;  %v2816_v25 = vunpack.c.l.s8.bf16 %v1960_v46  ;;  %v1989_v46 = vld [vmem:[#allocation10 + $0xbe0] sm:$0xff] }
 0x54b   :  { %4320 = vmatpush1.bf16.msra.mxu1 %v2743_v58  ;;  %3993 = vmatprep.subr.bf16.mxu0 %v2750_v60  ;;  %v1959_v58 = vld [vmem:[#allocation10 + $0xaf0] sm:$0xff]  ;;  %v2813_v60 = vunpack.c.l.s8.bf16 %v1957_v53 }
 0x54c   :  { %4321 = vmatprep.subr.bf16.mxu1 %v2752_v57  ;;  %v2815_v54 = vunpack.c.l.s8.bf16 %v1959_v58  ;;  %v2822_v57 = vunpack.c.h.s8.bf16 %v1958_v47 }
 0x54e   :  { %3994 = vmatpush1.bf16.msra.mxu0 %v2749_v63  ;;  %v1966_v63 = vld [vmem:[#allocation10 + $0xb28] sm:$0xff] }
 0x54f   :  { %4322 = vmatpush1.bf16.msra.mxu1 %v2751_v45  ;;  %3995 = vmatprep.subr.bf16.mxu0 %v2758_v2  ;;  %v1968_v45 = vld [vmem:[#allocation10 + $0xb38] sm:$0xff]  ;;  %v2821_v2 = vunpack.c.h.s8.bf16 %v1957_v53  ;;  %v2830_v5 = vunpack.c.l.s8.bf16 %v1966_v63 }
 0x550   :  { %4323 = vmatprep.subr.bf16.mxu1 %v2760_v3  ;;  %v2823_v3 = vunpack.c.h.s8.bf16 %v1959_v58  ;;  %v2840_v11 = vunpack.c.h.s8.bf16 %v1968_v45 }
 0x552   :  { %3996 = vmatpush1.bf16.msra.mxu0 %v2757_v52  ;;  %v2832_v52 = vunpack.c.l.s8.bf16 %v1968_v45  ;;  %v1997_v45 = vld [vmem:[#allocation10 + $0xc20] sm:$0xff] }
 0x553   :  { %4324 = vmatpush1.bf16.msra.mxu1 %v2759_v36  ;;  %4006 = vmatprep.subr.bf16.mxu0 %v2766_v6  ;;  %v1967_v36 = vld [vmem:[#allocation10 + $0xb30] sm:$0xff]  ;;  %v2829_v6 = vunpack.c.l.s8.bf16 %v1965_v7 }
 0x554   :  { %4334 = vmatprep.subr.bf16.mxu1 %v2768_v34  ;;  %v2831_v8 = vunpack.c.l.s8.bf16 %v1967_v36  ;;  %v2838_v34 = vunpack.c.h.s8.bf16 %v1966_v63 }
 0x555   :  { %3998 = vmatmul.mubr.bf16.vlgmr.msra.gmra.mrb[20].mxu0 %v5428_v20 }
 0x556   :  { %4326 = vmatmul.mubr.bf16.vlgmr.msra.gmra.mrb[20].mxu1 %v5428_v20  ;;  %4007 = vmatpush1.bf16.msra.mxu0 %v2765_v42  ;;  %v2790_v20 = vunpack.c.h.s8.bf16 %v1942_v43  ;;  %v1974_v42 = vld [vmem:[#allocation10 + $0xb68] sm:$0xff]  ;;  %v2839_v43 = vunpack.c.h.s8.bf16 %v1967_v36 }
 0x557   :  { %4038 = vmatprep.mubr.bf16.mxu0 %v5430_v22  ;;  %4335 = vmatpush1.bf16.msra.mxu1 %v2767_v62  ;;  %v1976_v62 = vld [vmem:[#allocation10 + $0xb78] sm:$0xff]  ;;  %v2006_v36 = vld [vmem:[#allocation10 + $0xc68] sm:$0xff] }
 0x558   :  { %4366 = vmatprep.mubr.bf16.mxu1 %v5430_v22  ;;  %4008 = vmatprep.subr.bf16.mxu0 %v2774_v10  ;;  %v2798_v22 = vunpack.c.l.s8.bf16 %v1950_v40  ;;  %v2837_v10 = vunpack.c.h.s8.bf16 %v1965_v7  ;;  %v2856_v19 = vunpack.c.h.s8.bf16 %v1976_v62 }
 0x559   :  { %4336 = vmatprep.subr.bf16.mxu1 %v2776_v13  ;;  %v2846_v13 = vunpack.c.l.s8.bf16 %v1974_v42 }
 0x55a   :  { %4009 = vmatpush1.bf16.msra.mxu0 %v2773_v21  ;;  %v2848_v21 = vunpack.c.l.s8.bf16 %v1976_v62  ;;  %v2005_v62 = vld [vmem:[#allocation10 + $0xc60] sm:$0xff] }
 0x55b   :  { %4337 = vmatpush1.bf16.msra.mxu1 %v2775_v12  ;;  %4010 = vmatprep.subr.bf16.mxu0 %v2782_v15  ;;  %v1975_v12 = vld [vmem:[#allocation10 + $0xb70] sm:$0xff]  ;;  %v2845_v15 = vunpack.c.l.s8.bf16 %v1973_v38 }
 0x55c   :  { %4338 = vmatprep.subr.bf16.mxu1 %v2784_v24  ;;  %v2847_v17 = vunpack.c.l.s8.bf16 %v1975_v12  ;;  %v2854_v24 = vunpack.c.h.s8.bf16 %v1974_v42  ;;  %v2910_v42 = vunpack.c.l.s8.bf16 %v2006_v36 }
 0x55e   :  { %4011 = vmatpush1.bf16.msra.mxu0 %v2781_v55  ;;  %v1982_v55 = vld [vmem:[#allocation10 + $0xba8] sm:$0xff] }
 0x55f   :  { %4339 = vmatpush1.bf16.msra.mxu1 %v2783_v50  ;;  %4012 = vmatprep.subr.bf16.mxu0 %v2790_v20  ;;  %v1984_v50 = vld [vmem:[#allocation10 + $0xbb8] sm:$0xff]  ;;  %v2853_v20 = vunpack.c.h.s8.bf16 %v1973_v38  ;;  %v2862_v40 = vunpack.c.l.s8.bf16 %v1982_v55 }
 0x560   :  { %4340 = vmatprep.subr.bf16.mxu1 %v2792_v29  ;;  %v2855_v29 = vunpack.c.h.s8.bf16 %v1975_v12  ;;  %v2872_v28 = vunpack.c.h.s8.bf16 %v1984_v50  ;;  %v2014_v12 = vld [vmem:[#allocation10 + $0xca8] sm:$0xff] }
 0x562   :  { %4013 = vmatpush1.bf16.msra.mxu0 %v2789_v26  ;;  %v2864_v26 = vunpack.c.l.s8.bf16 %v1984_v50  ;;  %v2015_v50 = vld [vmem:[#allocation10 + $0xcb0] sm:$0xff] }
 0x563   :  { %4341 = vmatpush1.bf16.msra.mxu1 %v2791_v41  ;;  %4014 = vmatprep.subr.bf16.mxu0 %v2798_v22  ;;  %v1983_v41 = vld [vmem:[#allocation10 + $0xbb0] sm:$0xff]  ;;  %v2861_v22 = vunpack.c.l.s8.bf16 %v1981_v23 }
 0x564   :  { %4342 = vmatprep.subr.bf16.mxu1 %v2800_v59  ;;  %v2863_v30 = vunpack.c.l.s8.bf16 %v1983_v41  ;;  %v2870_v59 = vunpack.c.h.s8.bf16 %v1982_v55 }
 0x566   :  { %4015 = vmatpush1.bf16.msra.mxu0 %v2797_v32  ;;  %v1990_v32 = vld [vmem:[#allocation10 + $0xbe8] sm:$0xff] }
 0x567   :  { %4343 = vmatpush1.bf16.msra.mxu1 %v2799_v33  ;;  %4016 = vmatprep.subr.bf16.mxu0 %v2806_v49  ;;  %v1992_v33 = vld [vmem:[#allocation10 + $0xbf8] sm:$0xff]  ;;  %v2869_v49 = vunpack.c.h.s8.bf16 %v1981_v23  ;;  %v2878_v47 = vunpack.c.l.s8.bf16 %v1990_v32 }
 0x568   :  { %4344 = vmatprep.subr.bf16.mxu1 %v2808_v44  ;;  %v2871_v44 = vunpack.c.h.s8.bf16 %v1983_v41  ;;  %v2888_v58 = vunpack.c.h.s8.bf16 %v1992_v33  ;;  %v2024_v41 = vld [vmem:[#allocation10 + $0xcf8] sm:$0xff] }
 0x56a   :  { %4017 = vmatpush1.bf16.msra.mxu0 %v2805_v48  ;;  %v2880_v48 = vunpack.c.l.s8.bf16 %v1992_v33  ;;  %v2023_v33 = vld [vmem:[#allocation10 + $0xcf0] sm:$0xff] }
 0x56b   :  { %4345 = vmatpush1.bf16.msra.mxu1 %v2807_v31  ;;  %4018 = vmatprep.subr.bf16.mxu0 %v2814_v51  ;;  %v1991_v31 = vld [vmem:[#allocation10 + $0xbf0] sm:$0xff]  ;;  %v2877_v51 = vunpack.c.l.s8.bf16 %v1989_v46 }
 0x56c   :  { %4346 = vmatprep.subr.bf16.mxu1 %v2816_v25  ;;  %v2879_v53 = vunpack.c.l.s8.bf16 %v1991_v31  ;;  %v2886_v25 = vunpack.c.h.s8.bf16 %v1990_v32  ;;  %v2944_v32 = vunpack.c.l.s8.bf16 %v2024_v41 }
 0x56e   :  { %4019 = vmatpush1.bf16.msra.mxu0 %v2813_v60  ;;  %v1998_v60 = vld [vmem:[#allocation10 + $0xc28] sm:$0xff] }
 0x56f   :  { %4347 = vmatpush1.bf16.msra.mxu1 %v2815_v54  ;;  %4020 = vmatprep.subr.bf16.mxu0 %v2822_v57  ;;  %v2000_v54 = vld [vmem:[#allocation10 + $0xc38] sm:$0xff]  ;;  %v2885_v57 = vunpack.c.h.s8.bf16 %v1989_v46  ;;  %v2894_v63 = vunpack.c.l.s8.bf16 %v1998_v60  ;;  %v2952_v46 = vunpack.c.h.s8.bf16 %v2024_v41  ;;  %v2055_v41 = vld [vmem:[#allocation10 + $0xdf0] sm:$0xff] }
 0x570   :  { %4348 = vmatprep.subr.bf16.mxu1 %v2824_v4  ;;  %v2887_v4 = vunpack.c.h.s8.bf16 %v1991_v31  ;;  %v2032_v31 = vld [vmem:[#allocation10 + $0xd38] sm:$0xff] }
 0x572   :  { %4021 = vmatpush1.bf16.msra.mxu0 %v2821_v2  ;;  %v2896_v2 = vunpack.c.l.s8.bf16 %v2000_v54 }
 0x573   :  { %4349 = vmatpush1.bf16.msra.mxu1 %v2823_v3  ;;  %4022 = vmatprep.subr.bf16.mxu0 %v2830_v5  ;;  %v1999_v3 = vld [vmem:[#allocation10 + $0xc30] sm:$0xff]  ;;  %v2893_v5 = vunpack.c.l.s8.bf16 %v1997_v45 }
 0x574   :  { %4350 = vmatprep.subr.bf16.mxu1 %v2832_v52  ;;  %v2895_v7 = vunpack.c.l.s8.bf16 %v1999_v3  ;;  %v2902_v52 = vunpack.c.h.s8.bf16 %v1998_v60  ;;  %v2960_v60 = vunpack.c.l.s8.bf16 %v2032_v31 }
 0x576   :  { %4023 = vmatpush1.bf16.msra.mxu0 %v2829_v6  ;;  %v2904_v6 = vunpack.c.h.s8.bf16 %v2000_v54  ;;  %v2031_v54 = vld [vmem:[#allocation10 + $0xd30] sm:$0xff] }
 0x577   :  { %4351 = vmatpush1.bf16.msra.mxu1 %v2831_v8  ;;  %4024 = vmatprep.subr.bf16.mxu0 %v2838_v34  ;;  %v2008_v8 = vld [vmem:[#allocation10 + $0xc78] sm:$0xff]  ;;  %v2901_v34 = vunpack.c.h.s8.bf16 %v1997_v45  ;;  %v2968_v45 = vunpack.c.h.s8.bf16 %v2032_v31  ;;  %v2063_v31 = vld [vmem:[#allocation10 + $0xe30] sm:$0xff] }
 0x578   :  { %4352 = vmatprep.subr.bf16.mxu1 %v2840_v11  ;;  %v2903_v11 = vunpack.c.h.s8.bf16 %v1999_v3  ;;  %v2040_v3 = vld [vmem:[#allocation10 + $0xd78] sm:$0xff] }
 0x57a   :  { %4025 = vmatpush1.bf16.msra.mxu0 %v2837_v10  ;;  %v2912_v10 = vunpack.c.l.s8.bf16 %v2008_v8 }
 0x57b   :  { %4353 = vmatpush1.bf16.msra.mxu1 %v2839_v43  ;;  %4026 = vmatprep.subr.bf16.mxu0 %v2846_v13  ;;  %v2007_v43 = vld [vmem:[#allocation10 + $0xc70] sm:$0xff]  ;;  %v2909_v13 = vunpack.c.l.s8.bf16 %v2005_v62 }
 0x57c   :  { %4354 = vmatprep.subr.bf16.mxu1 %v2848_v21  ;;  %v2911_v38 = vunpack.c.l.s8.bf16 %v2007_v43  ;;  %v2920_v21 = vunpack.c.h.s8.bf16 %v2008_v8  ;;  %v2039_v8 = vld [vmem:[#allocation10 + $0xd70] sm:$0xff] }
 0x57e   :  { %4027 = vmatpush1.bf16.msra.mxu0 %v2845_v15  ;;  %v2016_v15 = vld [vmem:[#allocation10 + $0xcb8] sm:$0xff] }
 0x57f   :  { %4355 = vmatpush1.bf16.msra.mxu1 %v2847_v17  ;;  %4028 = vmatprep.subr.bf16.mxu0 %v2854_v24  ;;  %v2917_v17 = vunpack.c.h.s8.bf16 %v2005_v62  ;;  %v2919_v24 = vunpack.c.h.s8.bf16 %v2007_v43  ;;  %v2928_v55 = vunpack.c.l.s8.bf16 %v2016_v15  ;;  %v2936_v23 = vunpack.c.h.s8.bf16 %v2016_v15  ;;  %v2048_v43 = vld [vmem:[#allocation10 + $0xdb8] sm:$0xff]  ;;  %v2047_v15 = vld [vmem:[#allocation10 + $0xdb0] sm:$0xff] }
 0x580   :  { %4356 = vmatprep.subr.bf16.mxu1 %v2856_v19  ;;  %v2013_v19 = vld [vmem:[#allocation10 + $0xca0] sm:$0xff]  ;;  %v2984_v62 = vunpack.c.h.s8.bf16 %v2040_v3 }
 0x582   :  { %4029 = vmatpush1.bf16.msra.mxu0 %v2853_v20  ;;  %v2925_v20 = vunpack.c.l.s8.bf16 %v2013_v19 }
 0x583   :  { %4357 = vmatpush1.bf16.msra.mxu1 %v2855_v29  ;;  %4030 = vmatprep.subr.bf16.mxu0 %v2862_v40  ;;  %v2927_v29 = vunpack.c.l.s8.bf16 %v2015_v50  ;;  %v2934_v40 = vunpack.c.h.s8.bf16 %v2014_v12 }
 0x584   :  { %4358 = vmatprep.subr.bf16.mxu1 %v2864_v26  ;;  %v2022_v26 = vld [vmem:[#allocation10 + $0xce8] sm:$0xff] }
 0x586   :  { %4031 = vmatpush1.bf16.msra.mxu0 %v2861_v22  ;;  %v2933_v22 = vunpack.c.h.s8.bf16 %v2013_v19  ;;  %v3000_v19 = vunpack.c.h.s8.bf16 %v2048_v43 }
 0x587   :  { %4359 = vmatpush1.bf16.msra.mxu1 %v2863_v30  ;;  %4032 = vmatprep.subr.bf16.mxu0 %v2870_v59  ;;  %v2935_v30 = vunpack.c.h.s8.bf16 %v2015_v50  ;;  %v2942_v59 = vunpack.c.l.s8.bf16 %v2022_v26  ;;  %v2056_v50 = vld [vmem:[#allocation10 + $0xdf8] sm:$0xff] }
 0x588   :  { %4360 = vmatprep.subr.bf16.mxu1 %v2872_v28  ;;  %v2021_v28 = vld [vmem:[#allocation10 + $0xce0] sm:$0xff] }
 0x58a   :  { %4033 = vmatpush1.bf16.msra.mxu0 %v2869_v49  ;;  %v2941_v49 = vunpack.c.l.s8.bf16 %v2021_v28 }
 0x58b   :  { %4361 = vmatpush1.bf16.msra.mxu1 %v2871_v44  ;;  %4034 = vmatprep.subr.bf16.mxu0 %v2878_v47  ;;  %v2943_v44 = vunpack.c.l.s8.bf16 %v2023_v33  ;;  %v2950_v47 = vunpack.c.h.s8.bf16 %v2022_v26  ;;  %v3008_v26 = vunpack.c.l.s8.bf16 %v2056_v50 }
 0x58c   :  { %4362 = vmatprep.subr.bf16.mxu1 %v2880_v48  ;;  %v2030_v48 = vld [vmem:[#allocation10 + $0xd28] sm:$0xff] }
 0x58e   :  { %4035 = vmatpush1.bf16.msra.mxu0 %v2877_v51  ;;  %v2949_v51 = vunpack.c.h.s8.bf16 %v2021_v28  ;;  %v3016_v28 = vunpack.c.h.s8.bf16 %v2056_v50 }
 0x58f   :  { %4363 = vmatpush1.bf16.msra.mxu1 %v2879_v53  ;;  %4036 = vmatprep.subr.bf16.mxu0 %v2886_v25  ;;  %v2951_v53 = vunpack.c.h.s8.bf16 %v2023_v33  ;;  %v2958_v25 = vunpack.c.l.s8.bf16 %v2030_v48  ;;  %v2064_v33 = vld [vmem:[#allocation10 + $0xe38] sm:$0xff] }
 0x590   :  { %4364 = vmatprep.subr.bf16.mxu1 %v2888_v58  ;;  %v2029_v58 = vld [vmem:[#allocation10 + $0xd20] sm:$0xff] }
 0x592   :  { %4037 = vmatpush1.bf16.msra.mxu0 %v2885_v57  ;;  %v2957_v57 = vunpack.c.l.s8.bf16 %v2029_v58 }
 0x593   :  { %4365 = vmatpush1.bf16.msra.mxu1 %v2887_v4  ;;  %4047 = vmatprep.subr.bf16.mxu0 %v2894_v63  ;;  %v2959_v4 = vunpack.c.l.s8.bf16 %v2031_v54  ;;  %v2966_v63 = vunpack.c.h.s8.bf16 %v2030_v48  ;;  %v3024_v48 = vunpack.c.l.s8.bf16 %v2064_v33 }
 0x594   :  { %4375 = vmatprep.subr.bf16.mxu1 %v2896_v2  ;;  %v2038_v2 = vld [vmem:[#allocation10 + $0xd68] sm:$0xff] }
 0x595   :  { %4039 = vmatmul.mubr.bf16.vlgmr.msra.gmra.mrb[20].mxu0 %v5446_v9 }
 0x596   :  { %4367 = vmatmul.mubr.bf16.vlgmr.msra.gmra.mrb[20].mxu1 %v5446_v9  ;;  %4048 = vmatpush1.bf16.msra.mxu0 %v2893_v5  ;;  %v2918_v9 = vunpack.c.h.s8.bf16 %v2006_v36  ;;  %v2965_v5 = vunpack.c.h.s8.bf16 %v2029_v58  ;;  %v2037_v36 = vld [vmem:[#allocation10 + $0xd60] sm:$0xff]  ;;  %v2070_v58 = vld [vmem:[#allocation10 + $0xe68] sm:$0xff] }
 0x597   :  { %4079 = vmatprep.mubr.bf16.mxu0 %v5448_v14  ;;  %4376 = vmatpush1.bf16.msra.mxu1 %v2895_v7  ;;  %v2967_v7 = vunpack.c.h.s8.bf16 %v2031_v54  ;;  %v2072_v54 = vld [vmem:[#allocation10 + $0xe78] sm:$0xff] }
 0x598   :  { %4407 = vmatprep.mubr.bf16.mxu1 %v5448_v14  ;;  %4049 = vmatprep.subr.bf16.mxu0 %v2902_v52  ;;  %v2926_v14 = vunpack.c.l.s8.bf16 %v2014_v12  ;;  %v2974_v52 = vunpack.c.l.s8.bf16 %v2038_v2  ;;  %v2992_v12 = vunpack.c.l.s8.bf16 %v2048_v43 }
 0x599   :  { %4377 = vmatprep.subr.bf16.mxu1 %v2904_v6  ;;  %v2976_v6 = vunpack.c.l.s8.bf16 %v2040_v3  ;;  %v2071_v3 = vld [vmem:[#allocation10 + $0xe70] sm:$0xff] }
 0x59a   :  { %4050 = vmatpush1.bf16.msra.mxu0 %v2901_v34  ;;  %v2973_v34 = vunpack.c.l.s8.bf16 %v2037_v36 }
 0x59b   :  { %4378 = vmatpush1.bf16.msra.mxu1 %v2903_v11  ;;  %4051 = vmatprep.subr.bf16.mxu0 %v2910_v42  ;;  %v2975_v11 = vunpack.c.l.s8.bf16 %v2039_v8  ;;  %v2982_v42 = vunpack.c.h.s8.bf16 %v2038_v2  ;;  %v3040_v2 = vunpack.c.l.s8.bf16 %v2072_v54 }
 0x59c   :  { %4379 = vmatprep.subr.bf16.mxu1 %v2912_v10  ;;  %v2046_v10 = vld [vmem:[#allocation10 + $0xda8] sm:$0xff] }
 0x59e   :  { %4052 = vmatpush1.bf16.msra.mxu0 %v2909_v13  ;;  %v2981_v13 = vunpack.c.h.s8.bf16 %v2037_v36  ;;  %v2078_v36 = vld [vmem:[#allocation10 + $0xea8] sm:$0xff] }
 0x59f   :  { %4380 = vmatpush1.bf16.msra.mxu1 %v2911_v38  ;;  %4053 = vmatprep.subr.bf16.mxu0 %v2918_v9  ;;  %v2983_v38 = vunpack.c.h.s8.bf16 %v2039_v8  ;;  %v2990_v9 = vunpack.c.l.s8.bf16 %v2046_v10 }
 0x5a0   :  { %4381 = vmatprep.subr.bf16.mxu1 %v2920_v21  ;;  %v2045_v21 = vld [vmem:[#allocation10 + $0xda0] sm:$0xff] }
 0x5a2   :  { %4054 = vmatpush1.bf16.msra.mxu0 %v2917_v17  ;;  %v2989_v17 = vunpack.c.l.s8.bf16 %v2045_v21 }
 0x5a3   :  { %4382 = vmatpush1.bf16.msra.mxu1 %v2919_v24  ;;  %4055 = vmatprep.subr.bf16.mxu0 %v2926_v14  ;;  %v2991_v24 = vunpack.c.l.s8.bf16 %v2047_v15  ;;  %v2998_v14 = vunpack.c.h.s8.bf16 %v2046_v10 }
 0x5a4   :  { %4383 = vmatprep.subr.bf16.mxu1 %v2928_v55  ;;  %v2054_v55 = vld [vmem:[#allocation10 + $0xde8] sm:$0xff] }
 0x5a6   :  { %4056 = vmatpush1.bf16.msra.mxu0 %v2925_v20  ;;  %v2997_v20 = vunpack.c.h.s8.bf16 %v2045_v21  ;;  %v2088_v21 = vld [vmem:[#allocation10 + $0xef8] sm:$0xff] }
 0x5a7   :  { %4384 = vmatpush1.bf16.msra.mxu1 %v2927_v29  ;;  %4057 = vmatprep.subr.bf16.mxu0 %v2934_v40  ;;  %v2999_v29 = vunpack.c.h.s8.bf16 %v2047_v15  ;;  %v3006_v40 = vunpack.c.l.s8.bf16 %v2054_v55 }
 0x5a8   :  { %4385 = vmatprep.subr.bf16.mxu1 %v2936_v23  ;;  %v2053_v23 = vld [vmem:[#allocation10 + $0xde0] sm:$0xff] }
 0x5aa   :  { %4058 = vmatpush1.bf16.msra.mxu0 %v2933_v22  ;;  %v3005_v22 = vunpack.c.l.s8.bf16 %v2053_v23 }
 0x5ab   :  { %4386 = vmatpush1.bf16.msra.mxu1 %v2935_v30  ;;  %4059 = vmatprep.subr.bf16.mxu0 %v2942_v59  ;;  %v3007_v30 = vunpack.c.l.s8.bf16 %v2055_v41  ;;  %v3014_v59 = vunpack.c.h.s8.bf16 %v2054_v55 }
 0x5ac   :  { %4387 = vmatprep.subr.bf16.mxu1 %v2944_v32  ;;  %v2062_v32 = vld [vmem:[#allocation10 + $0xe28] sm:$0xff] }
 0x5ae   :  { %4060 = vmatpush1.bf16.msra.mxu0 %v2941_v49  ;;  %v3013_v49 = vunpack.c.h.s8.bf16 %v2053_v23  ;;  %v2096_v23 = vld [vmem:[#allocation10 + $0xf38] sm:$0xff] }
 0x5af   :  { %4388 = vmatpush1.bf16.msra.mxu1 %v2943_v44  ;;  %4061 = vmatprep.subr.bf16.mxu0 %v2950_v47  ;;  %v3015_v44 = vunpack.c.h.s8.bf16 %v2055_v41  ;;  %v3022_v47 = vunpack.c.l.s8.bf16 %v2062_v32 }
 0x5b0   :  { %4389 = vmatprep.subr.bf16.mxu1 %v2952_v46  ;;  %v2061_v46 = vld [vmem:[#allocation10 + $0xe20] sm:$0xff] }
 0x5b2   :  { %4062 = vmatpush1.bf16.msra.mxu0 %v2949_v51  ;;  %v3021_v51 = vunpack.c.l.s8.bf16 %v2061_v46 }
 0x5b3   :  { %4390 = vmatpush1.bf16.msra.mxu1 %v2951_v53  ;;  %4063 = vmatprep.subr.bf16.mxu0 %v2958_v25  ;;  %v3023_v53 = vunpack.c.l.s8.bf16 %v2063_v31  ;;  %v3030_v25 = vunpack.c.h.s8.bf16 %v2062_v32 }
 0x5b4   :  { %4391 = vmatprep.subr.bf16.mxu1 %v2960_v60  ;;  %v3032_v60 = vunpack.c.h.s8.bf16 %v2064_v33 }
 0x5b6   :  { %4064 = vmatpush1.bf16.msra.mxu0 %v2957_v57  ;;  %v3029_v57 = vunpack.c.h.s8.bf16 %v2061_v46  ;;  %v2104_v46 = vld [vmem:[#allocation10 + $0xf78] sm:$0xff] }
 0x5b7   :  { %4392 = vmatpush1.bf16.msra.mxu1 %v2959_v4  ;;  %4065 = vmatprep.subr.bf16.mxu0 %v2966_v63  ;;  %v3031_v4 = vunpack.c.h.s8.bf16 %v2063_v31  ;;  %v3038_v63 = vunpack.c.l.s8.bf16 %v2070_v58 }
 0x5b8   :  { %4393 = vmatprep.subr.bf16.mxu1 %v2968_v45  ;;  %v2069_v45 = vld [vmem:[#allocation10 + $0xe60] sm:$0xff] }
 0x5b9   :  { %v3045_v8 = vunpack.c.h.s8.bf16 %v2069_v45 }
 0x5ba   :  { %4066 = vmatpush1.bf16.msra.mxu0 %v2965_v5  ;;  %v3037_v5 = vunpack.c.l.s8.bf16 %v2069_v45  ;;  %v2112_v45 = vld [vmem:[#allocation10 + $0xfb8] sm:$0xff] }
 0x5bb   :  { %4394 = vmatpush1.bf16.msra.mxu1 %v2967_v7  ;;  %4067 = vmatprep.subr.bf16.mxu0 %v2974_v52  ;;  %v3039_v7 = vunpack.c.l.s8.bf16 %v2071_v3  ;;  %v3048_v52 = vunpack.c.h.s8.bf16 %v2072_v54 }
 0x5bc   :  { %4395 = vmatprep.subr.bf16.mxu1 %v2976_v6  ;;  %v2080_v6 = vld [vmem:[#allocation10 + $0xeb8] sm:$0xff] }
 0x5be   :  { %4068 = vmatpush1.bf16.msra.mxu0 %v2973_v34  ;;  %v3047_v34 = vunpack.c.h.s8.bf16 %v2071_v3 }
 0x5bf   :  { %4396 = vmatpush1.bf16.msra.mxu1 %v2975_v11  ;;  %4069 = vmatprep.subr.bf16.mxu0 %v2982_v42  ;;  %v2077_v11 = vld [vmem:[#allocation10 + $0xea0] sm:$0xff]  ;;  %v3056_v42 = vunpack.c.l.s8.bf16 %v2080_v6 }
 0x5c0   :  { %4397 = vmatprep.subr.bf16.mxu1 %v2984_v62  ;;  %v2079_v62 = vld [vmem:[#allocation10 + $0xeb0] sm:$0xff]  ;;  %v3053_v10 = vunpack.c.l.s8.bf16 %v2077_v11 }
 0x5c1   :  { %v3055_v43 = vunpack.c.l.s8.bf16 %v2079_v62  ;;  %v3063_v15 = vunpack.c.h.s8.bf16 %v2079_v62 }
 0x5c2   :  { %4070 = vmatpush1.bf16.msra.mxu0 %v2981_v13  ;;  %v3062_v13 = vunpack.c.h.s8.bf16 %v2078_v36 }
 0x5c3   :  { %4398 = vmatpush1.bf16.msra.mxu1 %v2983_v38  ;;  %4071 = vmatprep.subr.bf16.mxu0 %v2990_v9  ;;  %v3064_v38 = vunpack.c.h.s8.bf16 %v2080_v6  ;;  %v2086_v9 = vld [vmem:[#allocation10 + $0xee8] sm:$0xff] }
 0x5c4   :  { %4399 = vmatprep.subr.bf16.mxu1 %v2992_v12  ;;  %v3061_v12 = vunpack.c.h.s8.bf16 %v2077_v11  ;;  %v2120_v11 = vld [vmem:[#allocation10 + $0xff8] sm:$0xff] }
 0x5c6   :  { %4072 = vmatpush1.bf16.msra.mxu0 %v2989_v17  ;;  %v3070_v17 = vunpack.c.l.s8.bf16 %v2086_v9 }
 0x5c7   :  { %4400 = vmatpush1.bf16.msra.mxu1 %v2991_v24  ;;  %4073 = vmatprep.subr.bf16.mxu0 %v2998_v14  ;;  %v2085_v24 = vld [vmem:[#allocation10 + $0xee0] sm:$0xff]  ;;  %v3072_v14 = vunpack.c.l.s8.bf16 %v2088_v21 }
 0x5c8   :  { %4401 = vmatprep.subr.bf16.mxu1 %v3000_v19  ;;  %v2087_v19 = vld [vmem:[#allocation10 + $0xef0] sm:$0xff]  ;;  %v3069_v55 = vunpack.c.l.s8.bf16 %v2085_v24 }
 0x5c9   :  { %v3071_v50 = vunpack.c.l.s8.bf16 %v2087_v19  ;;  %v3079_v41 = vunpack.c.h.s8.bf16 %v2087_v19 }
 0x5ca   :  { %4074 = vmatpush1.bf16.msra.mxu0 %v2997_v20  ;;  %v3078_v20 = vunpack.c.h.s8.bf16 %v2086_v9 }
 0x5cb   :  { %4402 = vmatpush1.bf16.msra.mxu1 %v2999_v29  ;;  %4075 = vmatprep.subr.bf16.mxu0 %v3006_v40  ;;  %v3080_v29 = vunpack.c.h.s8.bf16 %v2088_v21  ;;  %v2094_v40 = vld [vmem:[#allocation10 + $0xf28] sm:$0xff] }
 0x5cc   :  { %4403 = vmatprep.subr.bf16.mxu1 %v3008_v26  ;;  %v3077_v26 = vunpack.c.h.s8.bf16 %v2085_v24 }
 0x5ce   :  { %4076 = vmatpush1.bf16.msra.mxu0 %v3005_v22  ;;  %v3086_v22 = vunpack.c.l.s8.bf16 %v2094_v40 }
 0x5cf   :  { %4404 = vmatpush1.bf16.msra.mxu1 %v3007_v30  ;;  %4077 = vmatprep.subr.bf16.mxu0 %v3014_v59  ;;  %v2093_v30 = vld [vmem:[#allocation10 + $0xf20] sm:$0xff]  ;;  %v3088_v59 = vunpack.c.l.s8.bf16 %v2096_v23 }
 0x5d0   :  { %4405 = vmatprep.subr.bf16.mxu1 %v3016_v28  ;;  %v2095_v28 = vld [vmem:[#allocation10 + $0xf30] sm:$0xff]  ;;  %v3085_v32 = vunpack.c.l.s8.bf16 %v2093_v30 }
 0x5d1   :  { %v3087_v33 = vunpack.c.l.s8.bf16 %v2095_v28  ;;  %v3095_v31 = vunpack.c.h.s8.bf16 %v2095_v28 }
 0x5d2   :  { %4078 = vmatpush1.bf16.msra.mxu0 %v3013_v49  ;;  %v3094_v49 = vunpack.c.h.s8.bf16 %v2094_v40  ;;  %v4876_v40 = vld [vmem:[#allocation14] sm:$0xff] }
 0x5d3   :  { %4406 = vmatpush1.bf16.msra.mxu1 %v3015_v44  ;;  %4088 = vmatprep.subr.bf16.mxu0 %v3022_v47  ;;  %v3096_v44 = vunpack.c.h.s8.bf16 %v2096_v23  ;;  %v2102_v47 = vld [vmem:[#allocation10 + $0xf68] sm:$0xff]  ;;  %v4583_v23 = vunpack.c.h.bf16 %v4876_v40 }
 0x5d4   :  { %4416 = vmatprep.subr.bf16.mxu1 %v3024_v48  ;;  %v3093_v48 = vunpack.c.h.s8.bf16 %v2093_v30 }
 0x5d5   :  { %4080 = vmatmul.mubr.bf16.vlgmr.msra.gmra.mrb[20].mxu0 %v5468_v16 }
 0x5d6   :  { %4408 = vmatmul.mubr.bf16.vlgmr.msra.gmra.mrb[20].mxu1 %v5468_v16  ;;  %4089 = vmatpush1.bf16.msra.mxu0 %v3021_v51  ;;  %v3046_v16 = vunpack.c.h.s8.bf16 %v2070_v58  ;;  %v3102_v51 = vunpack.c.l.s8.bf16 %v2102_v47  ;;  %v2103_v58 = vld [vmem:[#allocation10 + $0xf70] sm:$0xff] }
 0x5d7   :  { %4120 = vmatprep.mubr.bf16.mxu0 %v5470_v1  ;;  %4417 = vmatpush1.bf16.msra.mxu1 %v3023_v53  ;;  %v2101_v53 = vld [vmem:[#allocation10 + $0xf60] sm:$0xff]  ;;  %v3103_v54 = vunpack.c.l.s8.bf16 %v2103_v58  ;;  %v3111_v3 = vunpack.c.h.s8.bf16 %v2103_v58 }
 0x5d8   :  { %4448 = vmatprep.mubr.bf16.mxu1 %v5470_v1  ;;  %4090 = vmatprep.subr.bf16.mxu0 %v3030_v25  ;;  %v3054_v1 = vunpack.c.l.s8.bf16 %v2078_v36  ;;  %v3104_v25 = vunpack.c.l.s8.bf16 %v2104_v46 }
 0x5d9   :  { %4418 = vmatprep.subr.bf16.mxu1 %v3032_v60  ;;  %v3101_v60 = vunpack.c.l.s8.bf16 %v2101_v53 }
 0x5da   :  { %4091 = vmatpush1.bf16.msra.mxu0 %v3029_v57  ;;  %v3110_v57 = vunpack.c.h.s8.bf16 %v2102_v47 }
 0x5db   :  { %4419 = vmatpush1.bf16.msra.mxu1 %v3031_v4  ;;  %4092 = vmatprep.subr.bf16.mxu0 %v3038_v63  ;;  %v3112_v4 = vunpack.c.h.s8.bf16 %v2104_v46  ;;  %v2110_v63 = vld [vmem:[#allocation10 + $0xfa8] sm:$0xff] }
 0x5dc   :  { %4420 = vmatprep.subr.bf16.mxu1 %v3040_v2  ;;  %v3109_v2 = vunpack.c.h.s8.bf16 %v2101_v53 }
 0x5de   :  { %4093 = vmatpush1.bf16.msra.mxu0 %v3037_v5  ;;  %v3118_v5 = vunpack.c.l.s8.bf16 %v2110_v63 }
 0x5df   :  { %4421 = vmatpush1.bf16.msra.mxu1 %v3039_v7  ;;  %4094 = vmatprep.subr.bf16.mxu0 %v3046_v16  ;;  %v2109_v7 = vld [vmem:[#allocation10 + $0xfa0] sm:$0xff]  ;;  %v3120_v16 = vunpack.c.l.s8.bf16 %v2112_v45 }
 0x5e0   :  { %4422 = vmatprep.subr.bf16.mxu1 %v3048_v52  ;;  %v2111_v52 = vld [vmem:[#allocation10 + $0xfb0] sm:$0xff]  ;;  %v3117_v36 = vunpack.c.l.s8.bf16 %v2109_v7 }
 0x5e1   :  { %v3119_v6 = vunpack.c.l.s8.bf16 %v2111_v52  ;;  %v3127_v62 = vunpack.c.h.s8.bf16 %v2111_v52 }
 0x5e2   :  { %4095 = vmatpush1.bf16.msra.mxu0 %v3045_v8  ;;  %v3126_v8 = vunpack.c.h.s8.bf16 %v2110_v63 }
 0x5e3   :  { %4423 = vmatpush1.bf16.msra.mxu1 %v3047_v34  ;;  %4096 = vmatprep.subr.bf16.mxu0 %v3054_v1  ;;  %v3128_v34 = vunpack.c.h.s8.bf16 %v2112_v45  ;;  %v2118_v1 = vld [vmem:[#allocation10 + $0xfe8] sm:$0xff] }
 0x5e4   :  { %4424 = vmatprep.subr.bf16.mxu1 %v3056_v42  ;;  %v3125_v42 = vunpack.c.h.s8.bf16 %v2109_v7 }
 0x5e6   :  { %4097 = vmatpush1.bf16.msra.mxu0 %v3053_v10  ;;  %v3134_v10 = vunpack.c.l.s8.bf16 %v2118_v1 }
 0x5e7   :  { %4425 = vmatpush1.bf16.msra.mxu1 %v3055_v43  ;;  %4098 = vmatprep.subr.bf16.mxu0 %v3062_v13  ;;  %v2117_v43 = vld [vmem:[#allocation10 + $0xfe0] sm:$0xff]  ;;  %v3136_v13 = vunpack.c.l.s8.bf16 %v2120_v11 }
 0x5e8   :  { %4426 = vmatprep.subr.bf16.mxu1 %v3064_v38  ;;  %v2119_v38 = vld [vmem:[#allocation10 + $0xff0] sm:$0xff]  ;;  %v3133_v9 = vunpack.c.l.s8.bf16 %v2117_v43 }
 0x5e9   :  { %v3135_v21 = vunpack.c.l.s8.bf16 %v2119_v38  ;;  %v3143_v24 = vunpack.c.h.s8.bf16 %v2119_v38 }
 0x5ea   :  { %4099 = vmatpush1.bf16.msra.mxu0 %v3061_v12  ;;  %v3142_v12 = vunpack.c.h.s8.bf16 %v2118_v1 }
 0x5eb   :  { %4427 = vmatpush1.bf16.msra.mxu1 %v3063_v15  ;;  %4100 = vmatprep.subr.bf16.mxu0 %v3070_v17  ;;  %v3144_v15 = vunpack.c.h.s8.bf16 %v2120_v11  ;;  %v3141_v17 = vunpack.c.h.s8.bf16 %v2117_v43 }
 0x5ec   :  { %4428 = vmatprep.subr.bf16.mxu1 %v3072_v14  ;;  %v4874_v14 = vld [vmem:[#allocation11] sm:$0xff] }
 0x5ed   :  { %v4478_v19 = vrot.slane %v4874_v14, %v5358_v56 }
 0x5ee   :  { %4101 = vmatpush1.bf16.msra.mxu0 %v3069_v55  ;;  %v4486_v55 = vrot.slane %v4874_v14, %v5394_v39 }
 0x5ef   :  { %4429 = vmatpush1.bf16.msra.mxu1 %v3071_v50  ;;  %4102 = vmatprep.subr.bf16.mxu0 %v3078_v20  ;;  %v4482_v50 = vrot.slane %v4874_v14, %v5329_v35  ;;  %v4875_v20 = vld [vmem:[#allocation13] sm:$0xff] }
 0x5f0   :  { %4430 = vmatprep.subr.bf16.mxu1 %v3080_v29  ;;  %v4528_v29 = vrot.slane %v4875_v20, %v5358_v56  ;;  %v4532_v30 = vrot.slane %v4875_v20, %v5329_v35  ;;  %v4609_v35 = vrot.slane %v4583_v23, %v5326_v27 }
 0x5f2   :  { %4103 = vmatpush1.bf16.msra.mxu0 %v3077_v26  ;;  %v4490_v26 = vrot.slane %v4874_v14, %v5361_v0 }
 0x5f3   :  { %4431 = vmatpush1.bf16.msra.mxu1 %v3079_v41  ;;  %4104 = vmatprep.subr.bf16.mxu0 %v3086_v22  ;;  %v4536_v22 = vrot.slane %v4875_v20, %v5394_v39 }
 0x5f4   :  { %4432 = vmatprep.subr.bf16.mxu1 %v3088_v59 }
 0x5f6   :  { %4105 = vmatpush1.bf16.msra.mxu0 %v3085_v32  ;;  %v4540_v32 = vrot.slane %v4875_v20, %v5361_v0 }
 0x5f7   :  { %4433 = vmatpush1.bf16.msra.mxu1 %v3087_v33  ;;  %4106 = vmatprep.subr.bf16.mxu0 %v3094_v49 }
 0x5f8   :  { %4434 = vmatprep.subr.bf16.mxu1 %v3096_v44 }
 0x5fa   :  { %4107 = vmatpush1.bf16.msra.mxu0 %v3093_v48  ;;  %v4605_v48 = vrot.slane %v4583_v23, %v5302_v18 }
 0x5fb   :  { %4435 = vmatpush1.bf16.msra.mxu1 %v3095_v31  ;;  %4108 = vmatprep.subr.bf16.mxu0 %v3102_v51 }
 0x5fc   :  { %4436 = vmatprep.subr.bf16.mxu1 %v3104_v25  ;;  %v4645_v45 = vrot.slane %v4605_v48, %v5302_v18 }
 0x5fe   :  { %4109 = vmatpush1.bf16.msra.mxu0 %v3101_v60 }
 0x5ff   :  { %4437 = vmatpush1.bf16.msra.mxu1 %v3103_v54  ;;  %4110 = vmatprep.subr.bf16.mxu0 %v3110_v57 }
 0x600   :  { %4438 = vmatprep.subr.bf16.mxu1 %v3112_v4 }
 0x602   :  { %4111 = vmatpush1.bf16.msra.mxu0 %v3109_v2 }
 0x603   :  { %4439 = vmatpush1.bf16.msra.mxu1 %v3111_v3  ;;  %4112 = vmatprep.subr.bf16.mxu0 %v3118_v5  ;;  %v4613_v3 = vrot.slane %v4583_v23, %v5358_v56 }
 0x604   :  { %4440 = vmatprep.subr.bf16.mxu1 %v3120_v16  ;;  %v4649_v16 = vrot.slane %v4609_v35, %v5302_v18 }
 0x605   :  { %v4653_v1 = vrot.slane %v4613_v3, %v5302_v18 }
 0x606   :  { %4113 = vmatpush1.bf16.msra.mxu0 %v3117_v36 }
 0x607   :  { %4441 = vmatpush1.bf16.msra.mxu1 %v3119_v6  ;;  %4114 = vmatprep.subr.bf16.mxu0 %v3126_v8  ;;  %v4617_v6 = vrot.slane %v4583_v23, %v5394_v39 }
 0x608   :  { %4442 = vmatprep.subr.bf16.mxu1 %v3128_v34 }
 0x60a   :  { %4115 = vmatpush1.bf16.msra.mxu0 %v3125_v42 }
 0x60b   :  { %4443 = vmatpush1.bf16.msra.mxu1 %v3127_v62  ;;  %4116 = vmatprep.subr.bf16.mxu0 %v3134_v10  ;;  %v4657_v62 = vrot.slane %v4617_v6, %v5302_v18 }
 0x60c   :  { %4444 = vmatprep.subr.bf16.mxu1 %v3136_v13 }
 0x60e   :  { %4117 = vmatpush1.bf16.msra.mxu0 %v3133_v9 }
 0x60f   :  { %4445 = vmatpush1.bf16.msra.mxu1 %v3135_v21  ;;  %4118 = vmatprep.subr.bf16.mxu0 %v3142_v12  ;;  %v4703_v21 = vld [vmem:[#allocation2] ss:$0 sm:$0xff] }
 0x610   :  { %4446 = vmatprep.subr.bf16.mxu1 %v3144_v15 }
 0x612   :  { %4119 = vmatpush1.bf16.msra.mxu0 %v3141_v17 }
 0x613   :  { %4447 = vmatpush1.bf16.msra.mxu1 %v3143_v24 }
 0x615   :  { %4121 = vmatmul.mubr.bf16.vlgmr.msra.gmra.mrb[20].mxu0 %v5481_v37 }
 0x616   :  { %4449 = vmatmul.mubr.bf16.vlgmr.msra.gmra.mrb[20].mxu1 %v5481_v37 }
 0x6e8   :  { %v4122_v41 = vpop.f32.mrb[20].mxu0 }
 0x6e9   :  { %v4503_v37 = vmul.f32 %v4478_v19, %v4122_v41  ;;  %v4450_v59 = vpop.f32.mrb[20].mxu1  ;;  %v4124_v28 = vpop.f32.mrb[21].mxu0 }
 0x6ea   :  { %v4505_v33 = vmul.f32 %v4486_v55, %v4450_v59  ;;  %v4504_v49 = vmul.f32 %v4482_v50, %v4124_v28  ;;  %v4452_v44 = vpop.f32.mrb[21].mxu1  ;;  %v4126_v47 = vpop.f32.mrb[22].mxu0 }
 0x6eb   :  { %v4553_v46 = vadd.f32 %v4528_v29, %v4503_v37  ;;  %v4506_v31 = vmul.f32 %v4490_v26, %v4452_v44  ;;  %v4454_v51 = vpop.f32.mrb[22].mxu1  ;;  %v4127_v53 = vpop.f32.mrb[23].mxu0 }
 0x6ec   :  { %v4555_v25 = vadd.f32 %v4536_v22, %v4505_v33  ;;  %v4554_v58 = vadd.f32 %v4532_v30, %v4504_v49  ;;  %v4455_v60 = vpop.f32.mrb[23].mxu1 }
 0x6ed   :  { %v4561_v54 = vmax.f32 %v4553_v46, 0.0  ;;  %v4556_v57 = vadd.f32 %v4540_v32, %v4506_v31 }
 0x6ee   :  { %v4563_v4 = vmax.f32 %v4555_v25, 0.0  ;;  %v4562_v63 = vmax.f32 %v4554_v58, 0.0 }
 0x6ef   :  { %v4569_v0 = vpack.c.bf16 %v4561_v54, %v4561_v54  ;;  %v4564_v2 = vmax.f32 %v4556_v57, 0.0 }
 0x6f0   :  { %v4571_v5 = vpack.c.bf16 %v4563_v4, %v4563_v4  ;;  %v4570_v7 = vpack.c.bf16 %v4562_v63, %v4562_v63 }
 0x6f1   :  { %v4577_v52 = vunpack.c.l.bf16 %v4569_v0  ;;  %v4572_v36 = vpack.c.bf16 %v4564_v2, %v4564_v2 }
 0x6f2   :  { %v4578_v8 = vunpack.c.l.bf16 %v4570_v7  ;;  %v4579_v34 = vunpack.c.l.bf16 %v4571_v5 }
 0x6f3   :  { %v4662_v27 = vmul.f32 %v4645_v45, %v4577_v52  ;;  %v4580_v42 = vunpack.c.l.bf16 %v4572_v36 }
 0x6f4   :  { %v4663_v11 = vmul.f32 %v4649_v16, %v4578_v8  ;;  %v4664_v56 = vmul.f32 %v4653_v1, %v4579_v34 }
 0x6f5   :  { %v4669_v10 = vadd.f32 %v5529_v61, %v4662_v27  ;;  %v4665_v13 = vmul.f32 %v4657_v62, %v4580_v42 }
 0x6f7   :  { %v4670_v43 = vadd.f32 %v4669_v10, %v4663_v11 }
 0x6f9   :  { %v4671_v38 = vadd.f32 %v4670_v43, %v4664_v56 }
 0x6fb   :  { %v4672_v9 = vadd.f32 %v4671_v38, %v4665_v13 }
 0x6fd   :  { %4673 = vadd.xlane.f32.xlu0 %v4672_v9 }
 0x78a   :  { %v4674_v12 = vpop.xlane.xlu0 %4673 }
 0x78b   :  { %v4682_v39 = vadd.f32 %v4703_v21, %v4674_v12 }
 0x78d   :  { %v4704_v15 = vmul.f32 -1.442695, %v4682_v39 }
 0x78f   :  { %4865 = vpow2.f32 %v4704_v15 }
 0x799   :  { %v4866_v17 = vpop.eup %4865 }
 0x79a   :  { %v4686_v24 = vadd.f32 1.0, %v4866_v17 }
 0x79c   :  { %4867 = vrcp.f32 %v4686_v24 }
 0x7a6   :  { %v4868_v14 = vpop.eup %4867 }
 0x7a7   :  { %4690 = vst.msk [vmem:[%s5578_s9] sm:$0xff] %vm4689_vm0, %v4868_v14 }
 0x7a8   :  { %4695 = vsyncpa [#allocation4], 1 }
 0x7a9   :  { %4696 = vsyncpa [#allocation6], 1 }
 0x7aa   :  { %4697 = vsyncpa [#allocation9], 1 }
 0x7ab   :  { %4698 = vsyncpa [#allocation12], 1 }
 0x7ac   :  { %4699 = vsyncpa [#allocation15], 1 }

</bundles_post_ra>
